<compile_context>
chip_gen: v5e
topology: v5e:2x2
jax: 0.10.0
libtpu: 0.0.40
codegen_flags: <defaults>
</compile_context>

<pallas_src>
import functools

import jax
import jax.numpy as jnp
from jax import lax
from jax.experimental import pallas as pl
from jax.experimental.pallas import tpu as pltpu


# --------------------------------------------------------------------------
# Fused Pallas kernel: full LSTM stack (all layers, both directions fused).
# --------------------------------------------------------------------------
def _lstm_stack_kernel(x_ref, w_ref, b_ref, out_ref, proj_scr, act_scr, *,
                       num_layers, dirs, T, Bp, H, D0, din_max):
    # x_ref    : (T*Bp, D0)             bf16, time-major, batch padded to Bp
    # w_ref    : (L, din_max + dirs*H, dirs*4H) bf16 weight slab per layer:
    #              rows [0:Din_l]                -> W_ih^T per dir (col blocks)
    #              rows [din_max : din_max+dirs*H] -> block-diagonal W_hh^T
    # b_ref    : (L, 1, dirs*4H)        f32, b_ih + b_hh per dir (col blocks)
    # out_ref  : (Bp, dirs*H)           f32, final hidden states (fwd | bwd)
    # proj_scr : (dirs, T*Bp, 4H)       f32, hoisted input projections
    # act_scr  : (dirs, T*Bp, H)        f32, per-direction layer outputs
    G = 4 * H
    f32 = jnp.float32
    bf16 = jnp.bfloat16

    for layer in range(num_layers):
        is_last = layer == num_layers - 1

        # ---- Hoisted input projection (one big matmul per dir, bias folded) ----
        # Computed entirely before the recurrence so act_scr can be overwritten.
        if layer == 0:
            lhs_parts = [(x_ref[...], 0, D0)]                       # (T*Bp, D0) bf16
        else:
            # Split-matmul: fwd/bwd activations stay in separate lane-dense
            # buffers; W_ih rows [0:H] multiply fwd, rows [H:2H] multiply bwd.
            lhs_parts = [(act_scr[dd, :, :].astype(bf16), dd * H, (dd + 1) * H)
                         for dd in range(dirs)]
        for d in range(dirs):
            p = None
            for lhs, r0, r1 in lhs_parts:
                contrib = jnp.dot(lhs, w_ref[layer, r0:r1, d * G:(d + 1) * G],
                                  preferred_element_type=f32)
                p = contrib if p is None else p + contrib
            p = p + b_ref[layer, 0:1, d * G:(d + 1) * G]            # (T*Bp, G)
            proj_scr[d, :, :] = p

        # ---- Recurrence: both directions fused via block-diagonal W_hh ----
        whh = w_ref[layer, din_max:din_max + dirs * H, :]           # (dirs*H, dirs*G) bf16
        h_cat = jnp.zeros((Bp, dirs * H), f32)
        c = [jnp.zeros((Bp, H), f32) for _ in range(dirs)]
        h_d = [None] * dirs
        # TODO(synk): for T >~ 32 switch this static unroll to
        # lax.fori_loop(..., unroll=4-8) with pl.ds/pl.multiple_of indexing.
        for s in range(T):
            if s == 0:
                hh = jnp.zeros((Bp, dirs * G), f32)                 # h0 == 0
            else:
                hh = jnp.dot(h_cat.astype(bf16), whh,
                             preferred_element_type=f32)            # (Bp, dirs*G)
            for d in range(dirs):
                # In-kernel sequence reversal: backward dir walks t = T-1..0.
                t = s if d == 0 else T - 1 - s
                g_pre = hh[:, d * G:(d + 1) * G] + proj_scr[d, t * Bp:(t + 1) * Bp, :]
                # Gate columns pre-permuted to (i, f, o, g):
                # sigmoid on first 3H columns, tanh only on last H.
                sig = jax.nn.sigmoid(g_pre[:, 0:3 * H])
                i_g = sig[:, 0:H]
                f_g = sig[:, H:2 * H]
                o_g = sig[:, 2 * H:3 * H]
                g_g = jnp.tanh(g_pre[:, 3 * H:4 * H])
                c[d] = f_g * c[d] + i_g * g_g
                h_d[d] = o_g * jnp.tanh(c[d])
                if not is_last:
                    act_scr[d, t * Bp:(t + 1) * Bp, :] = h_d[d]
            h_cat = h_d[0] if dirs == 1 else jnp.concatenate(h_d, axis=1)
        if is_last:
            # Final hidden state of the top layer, per direction.
            for d in range(dirs):
                out_ref[:, d * H:(d + 1) * H] = h_d[d]


# --------------------------------------------------------------------------
# Parameter preparation (done once):
#   * permute gate columns (i,f,g,o) -> (i,f,o,g)
#   * transpose weights, pre-sum biases
#   * pack W_ih^T + block-diagonal W_hh^T into one bf16 slab per layer
# --------------------------------------------------------------------------
def prepare_lstm_params(params, *, num_inputs, hidden_size, num_layers,
                        bidirectional):
    """params: [layer][dir] = (w_ih (4H,Din), w_hh (4H,H), b_ih, b_hh) in PyTorch
    layout.  Returns (wslab bf16 (L, din_max+dirs*H, dirs*4H),
                      bslab f32  (L, 1, dirs*4H))."""
    H = hidden_size
    G = 4 * H
    dirs = 2 if bidirectional else 1
    din_max = max(num_inputs, dirs * H)
    R = din_max + dirs * H

    def permute_gate_rows(w):  # rows (i,f,g,o) -> (i,f,o,g)
        return jnp.concatenate([w[0:H], w[H:2 * H], w[3 * H:4 * H], w[2 * H:3 * H]],
                               axis=0)

    wslab = jnp.zeros((num_layers, R, dirs * G), jnp.float32)
    bslab = jnp.zeros((num_layers, 1, dirs * G), jnp.float32)
    for layer in range(num_layers):
        din_l = num_inputs if layer == 0 else dirs * H
        for d in range(dirs):
            w_ih, w_hh, b_ih, b_hh = params[layer][d]
            wih_t = permute_gate_rows(jnp.asarray(w_ih, jnp.float32)).T   # (Din, 4H)
            whh_t = permute_gate_rows(jnp.asarray(w_hh, jnp.float32)).T   # (H, 4H)
            bias = permute_gate_rows(
                (jnp.asarray(b_ih, jnp.float32)
                 + jnp.asarray(b_hh, jnp.float32)).reshape(4 * H, 1)).reshape(-1)
            c0, c1 = d * G, (d + 1) * G
            wslab = wslab.at[layer, 0:din_l, c0:c1].set(wih_t)
            wslab = wslab.at[layer,
                             din_max + d * H:din_max + (d + 1) * H, c0:c1].set(whh_t)
            bslab = bslab.at[layer, 0, c0:c1].set(bias)
    return wslab.astype(jnp.bfloat16), bslab


# --------------------------------------------------------------------------
# Wrapper reproducing LSTMFeatureExtractor.forward
# --------------------------------------------------------------------------
def lstm_feature_extractor(x, wslab, bslab, *, num_layers, hidden_size,
                           bidirectional):
    """x: (B, T, num_inputs).  Returns F: (B, 2H) if bidirectional else (B, H)."""
    B, T, D0 = x.shape
    H = hidden_size
    G = 4 * H
    dirs = 2 if bidirectional else 1
    din_max = wslab.shape[1] - dirs * H

    # Pad batch to a multiple of 8 sublanes so every per-step slice is an
    # aligned (8, lanes) tile and MXU rows are better utilized.
    Bp = max(8, ((B + 7) // 8) * 8)
    x_tm = jnp.transpose(x, (1, 0, 2)).astype(jnp.float32)         # (T, B, D0)
    x_tm = jnp.pad(x_tm, ((0, 0), (0, Bp - B), (0, 0)))            # (T, Bp, D0)
    x_flat = x_tm.reshape(T * Bp, D0).astype(jnp.bfloat16)         # bf16 MXU LHS

    kernel = functools.partial(
        _lstm_stack_kernel, num_layers=num_layers, dirs=dirs, T=T, Bp=Bp,
        H=H, D0=D0, din_max=din_max)

    # TODO(synk): on v7x, split the two directions across the 2 TensorCores
    # (pl.core_map over create_tensorcore_mesh with a per-layer core_barrier and
    # shared activations); kept single-core here for trivially correct
    # cross-direction layer dependencies.
    # TODO(synk): for large T/B/H, tile the time axis (grid axis "arbitrary" or
    # pltpu.emit_pipeline) and set vmem_limit_bytes explicitly; the whole
    # sequence easily fits in VMEM at these shapes (few hundred KiB).
    out = pl.pallas_call(
        kernel,
        out_shape=jax.ShapeDtypeStruct((Bp, dirs * H), jnp.float32),
        grid=(1,),
        in_specs=[
            pl.BlockSpec((T * Bp, D0), lambda i: (0, 0)),
            pl.BlockSpec(wslab.shape, lambda i: (0, 0, 0)),
            pl.BlockSpec(bslab.shape, lambda i: (0, 0, 0)),
        ],
        out_specs=pl.BlockSpec((Bp, dirs * H), lambda i: (0, 0)),
        scratch_shapes=[
            pltpu.VMEM((dirs, T * Bp, G), jnp.float32),   # hoisted projections
            pltpu.VMEM((dirs, T * Bp, H), jnp.float32),   # inter-layer activations
        ],
        compiler_params=pltpu.CompilerParams(dimension_semantics=("arbitrary",)),
    )(x_flat, wslab, bslab)
    # F = cat(hidden[-2], hidden[-1], dim=1) if bidirectional else hidden[-1].
    return out[:B]


# --------------------------------------------------------------------------
# Deterministic parameter init (PyTorch nn.LSTM shapes & uniform(-k, k), k=1/sqrt(H))
# --------------------------------------------------------------------------
def init_lstm_params(key, num_inputs, hidden_size, num_layers, bidirectional):
    k = 1.0 / float(jnp.sqrt(hidden_size))
    dirs = 2 if bidirectional else 1
    params = []
    for layer in range(num_layers):
        din = num_inputs if layer == 0 else hidden_size * dirs
        layer_params = []
        for _ in range(dirs):
            key, k1, k2, k3, k4 = jax.random.split(key, 5)
            w_ih = jax.random.uniform(k1, (4 * hidden_size, din), jnp.float32, -k, k)
            w_hh = jax.random.uniform(k2, (4 * hidden_size, hidden_size), jnp.float32, -k, k)
            b_ih = jax.random.uniform(k3, (4 * hidden_size,), jnp.float32, -k, k)
            b_hh = jax.random.uniform(k4, (4 * hidden_size,), jnp.float32, -k, k)
            layer_params.append((w_ih, w_hh, b_ih, b_hh))
        params.append(layer_params)
    return params


# --------------------------------------------------------------------------
# Pure-JAX f32 reference (same math as nn.LSTM) for correctness checking
# --------------------------------------------------------------------------
def _lstm_cell_ref(x_tm, w_ih, w_hh, b_ih, b_hh):
    T, B, _ = x_tm.shape
    H = w_hh.shape[1]
    h = jnp.zeros((B, H), jnp.float32)
    c = jnp.zeros((B, H), jnp.float32)

    def step(carry, x_t):
        h, c = carry
        gates = x_t @ w_ih.T + h @ w_hh.T + b_ih + b_hh
        i, f, g, o = jnp.split(gates, 4, axis=1)
        c = jax.nn.sigmoid(f) * c + jax.nn.sigmoid(i) * jnp.tanh(g)
        h = jax.nn.sigmoid(o) * jnp.tanh(c)
        return (h, c), h

    (h, _), ys = lax.scan(step, (h, c), x_tm)
    return ys, h


def lstm_feature_extractor_ref(x, params, *, bidirectional):
    x_tm = jnp.transpose(x, (1, 0, 2))
    dirs = 2 if bidirectional else 1
    h_last = None
    for layer_p in params:
        outs, h_fin = [], []
        for d in range(dirs):
            w_ih, w_hh, b_ih, b_hh = layer_p[d]
            inp = x_tm if d == 0 else x_tm[::-1]
            y, h = _lstm_cell_ref(inp, w_ih, w_hh, b_ih, b_hh)
            if d == 1:
                y = y[::-1]
            outs.append(y)
            h_fin.append(h)
        x_tm = jnp.concatenate(outs, axis=-1) if dirs == 2 else outs[0]
        h_last = h_fin
    if bidirectional:
        return jnp.concatenate([h_last[0], h_last[1]], axis=1)
    return h_last[0]


if __name__ == "__main__":
    # Module config: LSTMFeatureExtractor(num_inputs=16, num_layers=2,
    #                                     hidden_sizes=32, dropout=0.0,
    #                                     bidirectional=True)
    # TODO(synk): inter-layer dropout (training mode, p>0) not applied; demo uses dropout=0.0.
    B, T, NUM_INPUTS, HIDDEN, NUM_LAYERS = 2, 8, 16, 32, 2
    BIDIRECTIONAL = True

    key = jax.random.PRNGKey(0)
    kx, kp = jax.random.split(key)
    x = jax.random.normal(kx, (B, T, NUM_INPUTS), jnp.float32)
    params = init_lstm_params(kp, NUM_INPUTS, HIDDEN, NUM_LAYERS, BIDIRECTIONAL)
    wslab, bslab = prepare_lstm_params(
        params, num_inputs=NUM_INPUTS, hidden_size=HIDDEN,
        num_layers=NUM_LAYERS, bidirectional=BIDIRECTIONAL)

    feats = lstm_feature_extractor(
        x, wslab, bslab, num_layers=NUM_LAYERS, hidden_size=HIDDEN,
        bidirectional=BIDIRECTIONAL)
    feats = jax.block_until_ready(feats)

    expected_dim = HIDDEN * 2 if BIDIRECTIONAL else HIDDEN
    assert feats.shape == (B, expected_dim), feats.shape

    ref = lstm_feature_extractor_ref(x, params, bidirectional=BIDIRECTIONAL)
    # bf16 MXU operands (f32 accumulation/elementwise) => loosened tolerance
    # vs. the pure-f32 reference, as anticipated in the perf review.
    max_err = float(jnp.max(jnp.abs(feats - ref)))
    assert max_err < 5e-2, max_err

    print("KERNEL_OK")
</pallas_src>

<mosaic_0001>
module attributes {stable_mosaic.version = 11 : i64} {
  func.func @_lstm_stack_kernel(%arg0: i32, %arg1: memref<64x16xbf16, #tpu.memory_space<vmem>>, %arg2: memref<2x128x256xbf16, #tpu.memory_space<vmem>>, %arg3: memref<2x1x256xf32, #tpu.memory_space<vmem>>, %arg4: memref<8x64xf32, #tpu.memory_space<vmem>>, %arg5: memref<2x64x128xf32, #tpu.memory_space<vmem>>, %arg6: memref<2x64x32xf32, #tpu.memory_space<vmem>>) attributes {dimension_semantics = [#tpu.dimension_semantics<arbitrary>], iteration_bounds = array<i64: 1>, scalar_prefetch = 0 : i64, scratch_operands = 2 : i64, tpu.core_type = #tpu.core_type<tc>, window_params = [{pipeline_mode = #tpu.pipeline_mode<synchronous>, transform_indices = @transform_0, window_bounds = array<i64: 64, 16>}, {pipeline_mode = #tpu.pipeline_mode<synchronous>, transform_indices = @transform_1, window_bounds = array<i64: 2, 128, 256>}, {pipeline_mode = #tpu.pipeline_mode<synchronous>, transform_indices = @transform_2, window_bounds = array<i64: 2, 1, 256>}, {pipeline_mode = #tpu.pipeline_mode<synchronous>, transform_indices = @transform_3, window_bounds = array<i64: 8, 64>}]} {
    %c0 = arith.constant 0 : index
    %c0_0 = arith.constant 0 : index
    %0 = vector.load %arg1[%c0, %c0_0] : memref<64x16xbf16, #tpu.memory_space<vmem>>, vector<64x16xbf16>
    %c0_1 = arith.constant 0 : index
    %c0_2 = arith.constant 0 : index
    %c0_3 = arith.constant 0 : index
    %1 = vector.load %arg2[%c0_1, %c0_2, %c0_3] : memref<2x128x256xbf16, #tpu.memory_space<vmem>>, vector<1x16x128xbf16>
    %2 = vector.shape_cast %1 : vector<1x16x128xbf16> to vector<16x128xbf16>
    %cst = arith.constant dense<0.000000e+00> : vector<64x128xf32>
    %3 = tpu.matmul %0, %2, %cst {dimension_numbers = #tpu.dot_dimension_numbers<[1], [0], [0], [1], [0, 0, 1, 1], [], []>} : vector<64x16xbf16>, vector<16x128xbf16>, vector<64x128xf32> -> vector<64x128xf32>
    %c0_4 = arith.constant 0 : index
    %c0_5 = arith.constant 0 : index
    %c0_6 = arith.constant 0 : index
    %4 = vector.load %arg3[%c0_4, %c0_5, %c0_6] : memref<2x1x256xf32, #tpu.memory_space<vmem>>, vector<1x1x128xf32>
    %5 = vector.shape_cast %4 : vector<1x1x128xf32> to vector<1x128xf32>
    %6 = vector.broadcast %5 : vector<1x128xf32> to vector<64x128xf32>
    %7 = arith.addf %3, %6 : vector<64x128xf32>
    %c0_7 = arith.constant 0 : index
    %c0_8 = arith.constant 0 : index
    %c0_9 = arith.constant 0 : index
    %8 = vector.load %arg5[%c0_7, %c0_8, %c0_9] : memref<2x64x128xf32, #tpu.memory_space<vmem>>, vector<1x64x128xf32>
    %9 = vector.shape_cast %8 : vector<1x64x128xf32> to vector<64x128xf32>
    %10 = vector.shape_cast %7 : vector<64x128xf32> to vector<1x64x128xf32>
    tpu.vector_store %arg5[%c0_7, %c0_8, %c0_9], %10 {strides = array<i32>} : memref<2x64x128xf32, #tpu.memory_space<vmem>>, vector<1x64x128xf32>,
    %c0_10 = arith.constant 0 : index
    %c0_11 = arith.constant 0 : index
    %c128 = arith.constant 128 : index
    %11 = vector.load %arg2[%c0_10, %c0_11, %c128] : memref<2x128x256xbf16, #tpu.memory_space<vmem>>, vector<1x16x128xbf16>
    %12 = vector.shape_cast %11 : vector<1x16x128xbf16> to vector<16x128xbf16>
    %cst_12 = arith.constant dense<0.000000e+00> : vector<64x128xf32>
    %13 = tpu.matmul %0, %12, %cst_12 {dimension_numbers = #tpu.dot_dimension_numbers<[1], [0], [0], [1], [0, 0, 1, 1], [], []>} : vector<64x16xbf16>, vector<16x128xbf16>, vector<64x128xf32> -> vector<64x128xf32>
    %c0_13 = arith.constant 0 : index
    %c0_14 = arith.constant 0 : index
    %c128_15 = arith.constant 128 : index
    %14 = vector.load %arg3[%c0_13, %c0_14, %c128_15] : memref<2x1x256xf32, #tpu.memory_space<vmem>>, vector<1x1x128xf32>
    %15 = vector.shape_cast %14 : vector<1x1x128xf32> to vector<1x128xf32>
    %16 = vector.broadcast %15 : vector<1x128xf32> to vector<64x128xf32>
    %17 = arith.addf %13, %16 : vector<64x128xf32>
    %c1 = arith.constant 1 : index
    %c0_16 = arith.constant 0 : index
    %c0_17 = arith.constant 0 : index
    %18 = vector.load %arg5[%c1, %c0_16, %c0_17] : memref<2x64x128xf32, #tpu.memory_space<vmem>>, vector<1x64x128xf32>
    %19 = vector.shape_cast %18 : vector<1x64x128xf32> to vector<64x128xf32>
    %20 = vector.shape_cast %17 : vector<64x128xf32> to vector<1x64x128xf32>
    tpu.vector_store %arg5[%c1, %c0_16, %c0_17], %20 {strides = array<i32>} : memref<2x64x128xf32, #tpu.memory_space<vmem>>, vector<1x64x128xf32>,
    %c0_18 = arith.constant 0 : index
    %c64 = arith.constant 64 : index
    %c0_19 = arith.constant 0 : index
    %21 = vector.load %arg2[%c0_18, %c64, %c0_19] : memref<2x128x256xbf16, #tpu.memory_space<vmem>>, vector<1x64x256xbf16>
    %22 = vector.shape_cast %21 : vector<1x64x256xbf16> to vector<64x256xbf16>
    %cst_20 = arith.constant 0.000000e+00 : f32
    %23 = vector.broadcast %cst_20 : f32 to vector<8x32xf32>
    %cst_21 = arith.constant 0.000000e+00 : f32
    %24 = vector.broadcast %cst_21 : f32 to vector<8x32xf32>
    %cst_22 = arith.constant 0.000000e+00 : f32
    %25 = vector.broadcast %cst_22 : f32 to vector<8x256xf32>
    %26 = vector.extract_strided_slice %25 {offsets = [0, 0], sizes = [8, 128], strides = [1, 1]} : vector<8x256xf32> to vector<8x128xf32>
    %c0_23 = arith.constant 0 : index
    %c0_24 = arith.constant 0 : index
    %c0_25 = arith.constant 0 : index
    %27 = vector.load %arg5[%c0_23, %c0_24, %c0_25] : memref<2x64x128xf32, #tpu.memory_space<vmem>>, vector<1x8x128xf32>
    %28 = vector.shape_cast %27 : vector<1x8x128xf32> to vector<8x128xf32>
    %29 = arith.addf %26, %28 : vector<8x128xf32>
    %30 = vector.extract_strided_slice %29 {offsets = [0, 0], sizes = [8, 96], strides = [1, 1]} : vector<8x128xf32> to vector<8x96xf32>
    %31 = arith.negf %30 : vector<8x96xf32>
    %32 = math.exp %31 : vector<8x96xf32>
    %cst_26 = arith.constant 1.000000e+00 : f32
    %33 = vector.broadcast %cst_26 : f32 to vector<8x96xf32>
    %34 = arith.addf %33, %32 : vector<8x96xf32>
    %35 = arith.divf %33, %34 : vector<8x96xf32>
    %36 = vector.extract_strided_slice %35 {offsets = [0, 0], sizes = [8, 32], strides = [1, 1]} : vector<8x96xf32> to vector<8x32xf32>
    %37 = vector.extract_strided_slice %35 {offsets = [0, 32], sizes = [8, 32], strides = [1, 1]} : vector<8x96xf32> to vector<8x32xf32>
    %38 = vector.extract_strided_slice %35 {offsets = [0, 64], sizes = [8, 32], strides = [1, 1]} : vector<8x96xf32> to vector<8x32xf32>
    %39 = vector.extract_strided_slice %29 {offsets = [0, 96], sizes = [8, 32], strides = [1, 1]} : vector<8x128xf32> to vector<8x32xf32>
    %40 = math.tanh %39 : vector<8x32xf32>
    %41 = arith.mulf %37, %23 : vector<8x32xf32>
    %42 = arith.mulf %36, %40 : vector<8x32xf32>
    %43 = arith.addf %41, %42 : vector<8x32xf32>
    %44 = math.tanh %43 : vector<8x32xf32>
    %45 = arith.mulf %38, %44 : vector<8x32xf32>
    %c0_27 = arith.constant 0 : index
    %c0_28 = arith.constant 0 : index
    %c0_29 = arith.constant 0 : index
    %46 = vector.load %arg6[%c0_27, %c0_28, %c0_29] : memref<2x64x32xf32, #tpu.memory_space<vmem>>, vector<1x8x32xf32>
    %47 = vector.shape_cast %46 : vector<1x8x32xf32> to vector<8x32xf32>
    %48 = vector.shape_cast %45 : vector<8x32xf32> to vector<1x8x32xf32>
    tpu.vector_store %arg6[%c0_27, %c0_28, %c0_29], %48 {strides = array<i32>} : memref<2x64x32xf32, #tpu.memory_space<vmem>>, vector<1x8x32xf32>,
    %49 = vector.extract_strided_slice %25 {offsets = [0, 128], sizes = [8, 128], strides = [1, 1]} : vector<8x256xf32> to vector<8x128xf32>
    %c1_30 = arith.constant 1 : index
    %c56 = arith.constant 56 : index
    %c0_31 = arith.constant 0 : index
    %50 = vector.load %arg5[%c1_30, %c56, %c0_31] : memref<2x64x128xf32, #tpu.memory_space<vmem>>, vector<1x8x128xf32>
    %51 = vector.shape_cast %50 : vector<1x8x128xf32> to vector<8x128xf32>
    %52 = arith.addf %49, %51 : vector<8x128xf32>
    %53 = vector.extract_strided_slice %52 {offsets = [0, 0], sizes = [8, 96], strides = [1, 1]} : vector<8x128xf32> to vector<8x96xf32>
    %54 = arith.negf %53 : vector<8x96xf32>
    %55 = math.exp %54 : vector<8x96xf32>
    %cst_32 = arith.constant 1.000000e+00 : f32
    %56 = vector.broadcast %cst_32 : f32 to vector<8x96xf32>
    %57 = arith.addf %56, %55 : vector<8x96xf32>
    %58 = arith.divf %56, %57 : vector<8x96xf32>
    %59 = vector.extract_strided_slice %58 {offsets = [0, 0], sizes = [8, 32], strides = [1, 1]} : vector<8x96xf32> to vector<8x32xf32>
    %60 = vector.extract_strided_slice %58 {offsets = [0, 32], sizes = [8, 32], strides = [1, 1]} : vector<8x96xf32> to vector<8x32xf32>
    %61 = vector.extract_strided_slice %58 {offsets = [0, 64], sizes = [8, 32], strides = [1, 1]} : vector<8x96xf32> to vector<8x32xf32>
    %62 = vector.extract_strided_slice %52 {offsets = [0, 96], sizes = [8, 32], strides = [1, 1]} : vector<8x128xf32> to vector<8x32xf32>
    %63 = math.tanh %62 : vector<8x32xf32>
    %64 = arith.mulf %60, %24 : vector<8x32xf32>
    %65 = arith.mulf %59, %63 : vector<8x32xf32>
    %66 = arith.addf %64, %65 : vector<8x32xf32>
    %67 = math.tanh %66 : vector<8x32xf32>
    %68 = arith.mulf %61, %67 : vector<8x32xf32>
    %c1_33 = arith.constant 1 : index
    %c56_34 = arith.constant 56 : index
    %c0_35 = arith.constant 0 : index
    %69 = vector.load %arg6[%c1_33, %c56_34, %c0_35] : memref<2x64x32xf32, #tpu.memory_space<vmem>>, vector<1x8x32xf32>
    %70 = vector.shape_cast %69 : vector<1x8x32xf32> to vector<8x32xf32>
    %71 = vector.shape_cast %68 : vector<8x32xf32> to vector<1x8x32xf32>
    tpu.vector_store %arg6[%c1_33, %c56_34, %c0_35], %71 {strides = array<i32>} : memref<2x64x32xf32, #tpu.memory_space<vmem>>, vector<1x8x32xf32>,
    %72 = tpu.concatenate %45, %68 in 1 : vector<8x32xf32>, vector<8x32xf32> -> vector<8x64xf32>
    %73 = arith.truncf %72 : vector<8x64xf32> to vector<8x64xbf16>
    %cst_36 = arith.constant dense<0.000000e+00> : vector<8x256xf32>
    %74 = tpu.matmul %73, %22, %cst_36 {dimension_numbers = #tpu.dot_dimension_numbers<[1], [0], [0], [1], [0, 0, 1, 1], [], []>} : vector<8x64xbf16>, vector<64x256xbf16>, vector<8x256xf32> -> vector<8x256xf32>
    %75 = vector.extract_strided_slice %74 {offsets = [0, 0], sizes = [8, 128], strides = [1, 1]} : vector<8x256xf32> to vector<8x128xf32>
    %c0_37 = arith.constant 0 : index
    %c8 = arith.constant 8 : index
    %c0_38 = arith.constant 0 : index
    %76 = vector.load %arg5[%c0_37, %c8, %c0_38] : memref<2x64x128xf32, #tpu.memory_space<vmem>>, vector<1x8x128xf32>
    %77 = vector.shape_cast %76 : vector<1x8x128xf32> to vector<8x128xf32>
    %78 = arith.addf %75, %77 : vector<8x128xf32>
    %79 = vector.extract_strided_slice %78 {offsets = [0, 0], sizes = [8, 96], strides = [1, 1]} : vector<8x128xf32> to vector<8x96xf32>
    %80 = arith.negf %79 : vector<8x96xf32>
    %81 = math.exp %80 : vector<8x96xf32>
    %cst_39 = arith.constant 1.000000e+00 : f32
    %82 = vector.broadcast %cst_39 : f32 to vector<8x96xf32>
    %83 = arith.addf %82, %81 : vector<8x96xf32>
    %84 = arith.divf %82, %83 : vector<8x96xf32>
    %85 = vector.extract_strided_slice %84 {offsets = [0, 0], sizes = [8, 32], strides = [1, 1]} : vector<8x96xf32> to vector<8x32xf32>
    %86 = vector.extract_strided_slice %84 {offsets = [0, 32], sizes = [8, 32], strides = [1, 1]} : vector<8x96xf32> to vector<8x32xf32>
    %87 = vector.extract_strided_slice %84 {offsets = [0, 64], sizes = [8, 32], strides = [1, 1]} : vector<8x96xf32> to vector<8x32xf32>
    %88 = vector.extract_strided_slice %78 {offsets = [0, 96], sizes = [8, 32], strides = [1, 1]} : vector<8x128xf32> to vector<8x32xf32>
    %89 = math.tanh %88 : vector<8x32xf32>
    %90 = arith.mulf %86, %43 : vector<8x32xf32>
    %91 = arith.mulf %85, %89 : vector<8x32xf32>
    %92 = arith.addf %90, %91 : vector<8x32xf32>
    %93 = math.tanh %92 : vector<8x32xf32>
    %94 = arith.mulf %87, %93 : vector<8x32xf32>
    %c0_40 = arith.constant 0 : index
    %c8_41 = arith.constant 8 : index
    %c0_42 = arith.constant 0 : index
    %95 = vector.load %arg6[%c0_40, %c8_41, %c0_42] : memref<2x64x32xf32, #tpu.memory_space<vmem>>, vector<1x8x32xf32>
    %96 = vector.shape_cast %95 : vector<1x8x32xf32> to vector<8x32xf32>
    %97 = vector.shape_cast %94 : vector<8x32xf32> to vector<1x8x32xf32>
    tpu.vector_store %arg6[%c0_40, %c8_41, %c0_42], %97 {strides = array<i32>} : memref<2x64x32xf32, #tpu.memory_space<vmem>>, vector<1x8x32xf32>,
    %98 = vector.extract_strided_slice %74 {offsets = [0, 128], sizes = [8, 128], strides = [1, 1]} : vector<8x256xf32> to vector<8x128xf32>
    %c1_43 = arith.constant 1 : index
    %c48 = arith.constant 48 : index
    %c0_44 = arith.constant 0 : index
    %99 = vector.load %arg5[%c1_43, %c48, %c0_44] : memref<2x64x128xf32, #tpu.memory_space<vmem>>, vector<1x8x128xf32>
    %100 = vector.shape_cast %99 : vector<1x8x128xf32> to vector<8x128xf32>
    %101 = arith.addf %98, %100 : vector<8x128xf32>
    %102 = vector.extract_strided_slice %101 {offsets = [0, 0], sizes = [8, 96], strides = [1, 1]} : vector<8x128xf32> to vector<8x96xf32>
    %103 = arith.negf %102 : vector<8x96xf32>
    %104 = math.exp %103 : vector<8x96xf32>
    %cst_45 = arith.constant 1.000000e+00 : f32
    %105 = vector.broadcast %cst_45 : f32 to vector<8x96xf32>
    %106 = arith.addf %105, %104 : vector<8x96xf32>
    %107 = arith.divf %105, %106 : vector<8x96xf32>
    %108 = vector.extract_strided_slice %107 {offsets = [0, 0], sizes = [8, 32], strides = [1, 1]} : vector<8x96xf32> to vector<8x32xf32>
    %109 = vector.extract_strided_slice %107 {offsets = [0, 32], sizes = [8, 32], strides = [1, 1]} : vector<8x96xf32> to vector<8x32xf32>
    %110 = vector.extract_strided_slice %107 {offsets = [0, 64], sizes = [8, 32], strides = [1, 1]} : vector<8x96xf32> to vector<8x32xf32>
    %111 = vector.extract_strided_slice %101 {offsets = [0, 96], sizes = [8, 32], strides = [1, 1]} : vector<8x128xf32> to vector<8x32xf32>
    %112 = math.tanh %111 : vector<8x32xf32>
    %113 = arith.mulf %109, %66 : vector<8x32xf32>
    %114 = arith.mulf %108, %112 : vector<8x32xf32>
    %115 = arith.addf %113, %114 : vector<8x32xf32>
    %116 = math.tanh %115 : vector<8x32xf32>
    %117 = arith.mulf %110, %116 : vector<8x32xf32>
    %c1_46 = arith.constant 1 : index
    %c48_47 = arith.constant 48 : index
    %c0_48 = arith.constant 0 : index
    %118 = vector.load %arg6[%c1_46, %c48_47, %c0_48] : memref<2x64x32xf32, #tpu.memory_space<vmem>>, vector<1x8x32xf32>
    %119 = vector.shape_cast %118 : vector<1x8x32xf32> to vector<8x32xf32>
    %120 = vector.shape_cast %117 : vector<8x32xf32> to vector<1x8x32xf32>
    tpu.vector_store %arg6[%c1_46, %c48_47, %c0_48], %120 {strides = array<i32>} : memref<2x64x32xf32, #tpu.memory_space<vmem>>, vector<1x8x32xf32>,
    %121 = tpu.concatenate %94, %117 in 1 : vector<8x32xf32>, vector<8x32xf32> -> vector<8x64xf32>
    %122 = arith.truncf %121 : vector<8x64xf32> to vector<8x64xbf16>
    %cst_49 = arith.constant dense<0.000000e+00> : vector<8x256xf32>
    %123 = tpu.matmul %122, %22, %cst_49 {dimension_numbers = #tpu.dot_dimension_numbers<[1], [0], [0], [1], [0, 0, 1, 1], [], []>} : vector<8x64xbf16>, vector<64x256xbf16>, vector<8x256xf32> -> vector<8x256xf32>
    %124 = vector.extract_strided_slice %123 {offsets = [0, 0], sizes = [8, 128], strides = [1, 1]} : vector<8x256xf32> to vector<8x128xf32>
    %c0_50 = arith.constant 0 : index
    %c16 = arith.constant 16 : index
    %c0_51 = arith.constant 0 : index
    %125 = vector.load %arg5[%c0_50, %c16, %c0_51] : memref<2x64x128xf32, #tpu.memory_space<vmem>>, vector<1x8x128xf32>
    %126 = vector.shape_cast %125 : vector<1x8x128xf32> to vector<8x128xf32>
    %127 = arith.addf %124, %126 : vector<8x128xf32>
    %128 = vector.extract_strided_slice %127 {offsets = [0, 0], sizes = [8, 96], strides = [1, 1]} : vector<8x128xf32> to vector<8x96xf32>
    %129 = arith.negf %128 : vector<8x96xf32>
    %130 = math.exp %129 : vector<8x96xf32>
    %cst_52 = arith.constant 1.000000e+00 : f32
    %131 = vector.broadcast %cst_52 : f32 to vector<8x96xf32>
    %132 = arith.addf %131, %130 : vector<8x96xf32>
    %133 = arith.divf %131, %132 : vector<8x96xf32>
    %134 = vector.extract_strided_slice %133 {offsets = [0, 0], sizes = [8, 32], strides = [1, 1]} : vector<8x96xf32> to vector<8x32xf32>
    %135 = vector.extract_strided_slice %133 {offsets = [0, 32], sizes = [8, 32], strides = [1, 1]} : vector<8x96xf32> to vector<8x32xf32>
    %136 = vector.extract_strided_slice %133 {offsets = [0, 64], sizes = [8, 32], strides = [1, 1]} : vector<8x96xf32> to vector<8x32xf32>
    %137 = vector.extract_strided_slice %127 {offsets = [0, 96], sizes = [8, 32], strides = [1, 1]} : vector<8x128xf32> to vector<8x32xf32>
    %138 = math.tanh %137 : vector<8x32xf32>
    %139 = arith.mulf %135, %92 : vector<8x32xf32>
    %140 = arith.mulf %134, %138 : vector<8x32xf32>
    %141 = arith.addf %139, %140 : vector<8x32xf32>
    %142 = math.tanh %141 : vector<8x32xf32>
    %143 = arith.mulf %136, %142 : vector<8x32xf32>
    %c0_53 = arith.constant 0 : index
    %c16_54 = arith.constant 16 : index
    %c0_55 = arith.constant 0 : index
    %144 = vector.load %arg6[%c0_53, %c16_54, %c0_55] : memref<2x64x32xf32, #tpu.memory_space<vmem>>, vector<1x8x32xf32>
    %145 = vector.shape_cast %144 : vector<1x8x32xf32> to vector<8x32xf32>
    %146 = vector.shape_cast %143 : vector<8x32xf32> to vector<1x8x32xf32>
    tpu.vector_store %arg6[%c0_53, %c16_54, %c0_55], %146 {strides = array<i32>} : memref<2x64x32xf32, #tpu.memory_space<vmem>>, vector<1x8x32xf32>,
    %147 = vector.extract_strided_slice %123 {offsets = [0, 128], sizes = [8, 128], strides = [1, 1]} : vector<8x256xf32> to vector<8x128xf32>
    %c1_56 = arith.constant 1 : index
    %c40 = arith.constant 40 : index
    %c0_57 = arith.constant 0 : index
    %148 = vector.load %arg5[%c1_56, %c40, %c0_57] : memref<2x64x128xf32, #tpu.memory_space<vmem>>, vector<1x8x128xf32>
    %149 = vector.shape_cast %148 : vector<1x8x128xf32> to vector<8x128xf32>
    %150 = arith.addf %147, %149 : vector<8x128xf32>
    %151 = vector.extract_strided_slice %150 {offsets = [0, 0], sizes = [8, 96], strides = [1, 1]} : vector<8x128xf32> to vector<8x96xf32>
    %152 = arith.negf %151 : vector<8x96xf32>
    %153 = math.exp %152 : vector<8x96xf32>
    %cst_58 = arith.constant 1.000000e+00 : f32
    %154 = vector.broadcast %cst_58 : f32 to vector<8x96xf32>
    %155 = arith.addf %154, %153 : vector<8x96xf32>
    %156 = arith.divf %154, %155 : vector<8x96xf32>
    %157 = vector.extract_strided_slice %156 {offsets = [0, 0], sizes = [8, 32], strides = [1, 1]} : vector<8x96xf32> to vector<8x32xf32>
    %158 = vector.extract_strided_slice %156 {offsets = [0, 32], sizes = [8, 32], strides = [1, 1]} : vector<8x96xf32> to vector<8x32xf32>
    %159 = vector.extract_strided_slice %156 {offsets = [0, 64], sizes = [8, 32], strides = [1, 1]} : vector<8x96xf32> to vector<8x32xf32>
    %160 = vector.extract_strided_slice %150 {offsets = [0, 96], sizes = [8, 32], strides = [1, 1]} : vector<8x128xf32> to vector<8x32xf32>
    %161 = math.tanh %160 : vector<8x32xf32>
    %162 = arith.mulf %158, %115 : vector<8x32xf32>
    %163 = arith.mulf %157, %161 : vector<8x32xf32>
    %164 = arith.addf %162, %163 : vector<8x32xf32>
    %165 = math.tanh %164 : vector<8x32xf32>
    %166 = arith.mulf %159, %165 : vector<8x32xf32>
    %c1_59 = arith.constant 1 : index
    %c40_60 = arith.constant 40 : index
    %c0_61 = arith.constant 0 : index
    %167 = vector.load %arg6[%c1_59, %c40_60, %c0_61] : memref<2x64x32xf32, #tpu.memory_space<vmem>>, vector<1x8x32xf32>
    %168 = vector.shape_cast %167 : vector<1x8x32xf32> to vector<8x32xf32>
    %169 = vector.shape_cast %166 : vector<8x32xf32> to vector<1x8x32xf32>
    tpu.vector_store %arg6[%c1_59, %c40_60, %c0_61], %169 {strides = array<i32>} : memref<2x64x32xf32, #tpu.memory_space<vmem>>, vector<1x8x32xf32>,
    %170 = tpu.concatenate %143, %166 in 1 : vector<8x32xf32>, vector<8x32xf32> -> vector<8x64xf32>
    %171 = arith.truncf %170 : vector<8x64xf32> to vector<8x64xbf16>
    %cst_62 = arith.constant dense<0.000000e+00> : vector<8x256xf32>
    %172 = tpu.matmul %171, %22, %cst_62 {dimension_numbers = #tpu.dot_dimension_numbers<[1], [0], [0], [1], [0, 0, 1, 1], [], []>} : vector<8x64xbf16>, vector<64x256xbf16>, vector<8x256xf32> -> vector<8x256xf32>
    %173 = vector.extract_strided_slice %172 {offsets = [0, 0], sizes = [8, 128], strides = [1, 1]} : vector<8x256xf32> to vector<8x128xf32>
    %c0_63 = arith.constant 0 : index
    %c24 = arith.constant 24 : index
    %c0_64 = arith.constant 0 : index
    %174 = vector.load %arg5[%c0_63, %c24, %c0_64] : memref<2x64x128xf32, #tpu.memory_space<vmem>>, vector<1x8x128xf32>
    %175 = vector.shape_cast %174 : vector<1x8x128xf32> to vector<8x128xf32>
    %176 = arith.addf %173, %175 : vector<8x128xf32>
    %177 = vector.extract_strided_slice %176 {offsets = [0, 0], sizes = [8, 96], strides = [1, 1]} : vector<8x128xf32> to vector<8x96xf32>
    %178 = arith.negf %177 : vector<8x96xf32>
    %179 = math.exp %178 : vector<8x96xf32>
    %cst_65 = arith.constant 1.000000e+00 : f32
    %180 = vector.broadcast %cst_65 : f32 to vector<8x96xf32>
    %181 = arith.addf %180, %179 : vector<8x96xf32>
    %182 = arith.divf %180, %181 : vector<8x96xf32>
    %183 = vector.extract_strided_slice %182 {offsets = [0, 0], sizes = [8, 32], strides = [1, 1]} : vector<8x96xf32> to vector<8x32xf32>
    %184 = vector.extract_strided_slice %182 {offsets = [0, 32], sizes = [8, 32], strides = [1, 1]} : vector<8x96xf32> to vector<8x32xf32>
    %185 = vector.extract_strided_slice %182 {offsets = [0, 64], sizes = [8, 32], strides = [1, 1]} : vector<8x96xf32> to vector<8x32xf32>
    %186 = vector.extract_strided_slice %176 {offsets = [0, 96], sizes = [8, 32], strides = [1, 1]} : vector<8x128xf32> to vector<8x32xf32>
    %187 = math.tanh %186 : vector<8x32xf32>
    %188 = arith.mulf %184, %141 : vector<8x32xf32>
    %189 = arith.mulf %183, %187 : vector<8x32xf32>
    %190 = arith.addf %188, %189 : vector<8x32xf32>
    %191 = math.tanh %190 : vector<8x32xf32>
    %192 = arith.mulf %185, %191 : vector<8x32xf32>
    %c0_66 = arith.constant 0 : index
    %c24_67 = arith.constant 24 : index
    %c0_68 = arith.constant 0 : index
    %193 = vector.load %arg6[%c0_66, %c24_67, %c0_68] : memref<2x64x32xf32, #tpu.memory_space<vmem>>, vector<1x8x32xf32>
    %194 = vector.shape_cast %193 : vector<1x8x32xf32> to vector<8x32xf32>
    %195 = vector.shape_cast %192 : vector<8x32xf32> to vector<1x8x32xf32>
    tpu.vector_store %arg6[%c0_66, %c24_67, %c0_68], %195 {strides = array<i32>} : memref<2x64x32xf32, #tpu.memory_space<vmem>>, vector<1x8x32xf32>,
    %196 = vector.extract_strided_slice %172 {offsets = [0, 128], sizes = [8, 128], strides = [1, 1]} : vector<8x256xf32> to vector<8x128xf32>
    %c1_69 = arith.constant 1 : index
    %c32 = arith.constant 32 : index
    %c0_70 = arith.constant 0 : index
    %197 = vector.load %arg5[%c1_69, %c32, %c0_70] : memref<2x64x128xf32, #tpu.memory_space<vmem>>, vector<1x8x128xf32>
    %198 = vector.shape_cast %197 : vector<1x8x128xf32> to vector<8x128xf32>
    %199 = arith.addf %196, %198 : vector<8x128xf32>
    %200 = vector.extract_strided_slice %199 {offsets = [0, 0], sizes = [8, 96], strides = [1, 1]} : vector<8x128xf32> to vector<8x96xf32>
    %201 = arith.negf %200 : vector<8x96xf32>
    %202 = math.exp %201 : vector<8x96xf32>
    %cst_71 = arith.constant 1.000000e+00 : f32
    %203 = vector.broadcast %cst_71 : f32 to vector<8x96xf32>
    %204 = arith.addf %203, %202 : vector<8x96xf32>
    %205 = arith.divf %203, %204 : vector<8x96xf32>
    %206 = vector.extract_strided_slice %205 {offsets = [0, 0], sizes = [8, 32], strides = [1, 1]} : vector<8x96xf32> to vector<8x32xf32>
    %207 = vector.extract_strided_slice %205 {offsets = [0, 32], sizes = [8, 32], strides = [1, 1]} : vector<8x96xf32> to vector<8x32xf32>
    %208 = vector.extract_strided_slice %205 {offsets = [0, 64], sizes = [8, 32], strides = [1, 1]} : vector<8x96xf32> to vector<8x32xf32>
    %209 = vector.extract_strided_slice %199 {offsets = [0, 96], sizes = [8, 32], strides = [1, 1]} : vector<8x128xf32> to vector<8x32xf32>
    %210 = math.tanh %209 : vector<8x32xf32>
    %211 = arith.mulf %207, %164 : vector<8x32xf32>
    %212 = arith.mulf %206, %210 : vector<8x32xf32>
    %213 = arith.addf %211, %212 : vector<8x32xf32>
    %214 = math.tanh %213 : vector<8x32xf32>
    %215 = arith.mulf %208, %214 : vector<8x32xf32>
    %c1_72 = arith.constant 1 : index
    %c32_73 = arith.constant 32 : index
    %c0_74 = arith.constant 0 : index
    %216 = vector.load %arg6[%c1_72, %c32_73, %c0_74] : memref<2x64x32xf32, #tpu.memory_space<vmem>>, vector<1x8x32xf32>
    %217 = vector.shape_cast %216 : vector<1x8x32xf32> to vector<8x32xf32>
    %218 = vector.shape_cast %215 : vector<8x32xf32> to vector<1x8x32xf32>
    tpu.vector_store %arg6[%c1_72, %c32_73, %c0_74], %218 {strides = array<i32>} : memref<2x64x32xf32, #tpu.memory_space<vmem>>, vector<1x8x32xf32>,
    %219 = tpu.concatenate %192, %215 in 1 : vector<8x32xf32>, vector<8x32xf32> -> vector<8x64xf32>
    %220 = arith.truncf %219 : vector<8x64xf32> to vector<8x64xbf16>
    %cst_75 = arith.constant dense<0.000000e+00> : vector<8x256xf32>
    %221 = tpu.matmul %220, %22, %cst_75 {dimension_numbers = #tpu.dot_dimension_numbers<[1], [0], [0], [1], [0, 0, 1, 1], [], []>} : vector<8x64xbf16>, vector<64x256xbf16>, vector<8x256xf32> -> vector<8x256xf32>
    %222 = vector.extract_strided_slice %221 {offsets = [0, 0], sizes = [8, 128], strides = [1, 1]} : vector<8x256xf32> to vector<8x128xf32>
    %c0_76 = arith.constant 0 : index
    %c32_77 = arith.constant 32 : index
    %c0_78 = arith.constant 0 : index
    %223 = vector.load %arg5[%c0_76, %c32_77, %c0_78] : memref<2x64x128xf32, #tpu.memory_space<vmem>>, vector<1x8x128xf32>
    %224 = vector.shape_cast %223 : vector<1x8x128xf32> to vector<8x128xf32>
    %225 = arith.addf %222, %224 : vector<8x128xf32>
    %226 = vector.extract_strided_slice %225 {offsets = [0, 0], sizes = [8, 96], strides = [1, 1]} : vector<8x128xf32> to vector<8x96xf32>
    %227 = arith.negf %226 : vector<8x96xf32>
    %228 = math.exp %227 : vector<8x96xf32>
    %cst_79 = arith.constant 1.000000e+00 : f32
    %229 = vector.broadcast %cst_79 : f32 to vector<8x96xf32>
    %230 = arith.addf %229, %228 : vector<8x96xf32>
    %231 = arith.divf %229, %230 : vector<8x96xf32>
    %232 = vector.extract_strided_slice %231 {offsets = [0, 0], sizes = [8, 32], strides = [1, 1]} : vector<8x96xf32> to vector<8x32xf32>
    %233 = vector.extract_strided_slice %231 {offsets = [0, 32], sizes = [8, 32], strides = [1, 1]} : vector<8x96xf32> to vector<8x32xf32>
    %234 = vector.extract_strided_slice %231 {offsets = [0, 64], sizes = [8, 32], strides = [1, 1]} : vector<8x96xf32> to vector<8x32xf32>
    %235 = vector.extract_strided_slice %225 {offsets = [0, 96], sizes = [8, 32], strides = [1, 1]} : vector<8x128xf32> to vector<8x32xf32>
    %236 = math.tanh %235 : vector<8x32xf32>
    %237 = arith.mulf %233, %190 : vector<8x32xf32>
    %238 = arith.mulf %232, %236 : vector<8x32xf32>
    %239 = arith.addf %237, %238 : vector<8x32xf32>
    %240 = math.tanh %239 : vector<8x32xf32>
    %241 = arith.mulf %234, %240 : vector<8x32xf32>
    %c0_80 = arith.constant 0 : index
    %c32_81 = arith.constant 32 : index
    %c0_82 = arith.constant 0 : index
    %242 = vector.load %arg6[%c0_80, %c32_81, %c0_82] : memref<2x64x32xf32, #tpu.memory_space<vmem>>, vector<1x8x32xf32>
    %243 = vector.shape_cast %242 : vector<1x8x32xf32> to vector<8x32xf32>
    %244 = vector.shape_cast %241 : vector<8x32xf32> to vector<1x8x32xf32>
    tpu.vector_store %arg6[%c0_80, %c32_81, %c0_82], %244 {strides = array<i32>} : memref<2x64x32xf32, #tpu.memory_space<vmem>>, vector<1x8x32xf32>,
    %245 = vector.extract_strided_slice %221 {offsets = [0, 128], sizes = [8, 128], strides = [1, 1]} : vector<8x256xf32> to vector<8x128xf32>
    %c1_83 = arith.constant 1 : index
    %c24_84 = arith.constant 24 : index
    %c0_85 = arith.constant 0 : index
    %246 = vector.load %arg5[%c1_83, %c24_84, %c0_85] : memref<2x64x128xf32, #tpu.memory_space<vmem>>, vector<1x8x128xf32>
    %247 = vector.shape_cast %246 : vector<1x8x128xf32> to vector<8x128xf32>
    %248 = arith.addf %245, %247 : vector<8x128xf32>
    %249 = vector.extract_strided_slice %248 {offsets = [0, 0], sizes = [8, 96], strides = [1, 1]} : vector<8x128xf32> to vector<8x96xf32>
    %250 = arith.negf %249 : vector<8x96xf32>
    %251 = math.exp %250 : vector<8x96xf32>
    %cst_86 = arith.constant 1.000000e+00 : f32
    %252 = vector.broadcast %cst_86 : f32 to vector<8x96xf32>
    %253 = arith.addf %252, %251 : vector<8x96xf32>
    %254 = arith.divf %252, %253 : vector<8x96xf32>
    %255 = vector.extract_strided_slice %254 {offsets = [0, 0], sizes = [8, 32], strides = [1, 1]} : vector<8x96xf32> to vector<8x32xf32>
    %256 = vector.extract_strided_slice %254 {offsets = [0, 32], sizes = [8, 32], strides = [1, 1]} : vector<8x96xf32> to vector<8x32xf32>
    %257 = vector.extract_strided_slice %254 {offsets = [0, 64], sizes = [8, 32], strides = [1, 1]} : vector<8x96xf32> to vector<8x32xf32>
    %258 = vector.extract_strided_slice %248 {offsets = [0, 96], sizes = [8, 32], strides = [1, 1]} : vector<8x128xf32> to vector<8x32xf32>
    %259 = math.tanh %258 : vector<8x32xf32>
    %260 = arith.mulf %256, %213 : vector<8x32xf32>
    %261 = arith.mulf %255, %259 : vector<8x32xf32>
    %262 = arith.addf %260, %261 : vector<8x32xf32>
    %263 = math.tanh %262 : vector<8x32xf32>
    %264 = arith.mulf %257, %263 : vector<8x32xf32>
    %c1_87 = arith.constant 1 : index
    %c24_88 = arith.constant 24 : index
    %c0_89 = arith.constant 0 : index
    %265 = vector.load %arg6[%c1_87, %c24_88, %c0_89] : memref<2x64x32xf32, #tpu.memory_space<vmem>>, vector<1x8x32xf32>
    %266 = vector.shape_cast %265 : vector<1x8x32xf32> to vector<8x32xf32>
    %267 = vector.shape_cast %264 : vector<8x32xf32> to vector<1x8x32xf32>
    tpu.vector_store %arg6[%c1_87, %c24_88, %c0_89], %267 {strides = array<i32>} : memref<2x64x32xf32, #tpu.memory_space<vmem>>, vector<1x8x32xf32>,
    %268 = tpu.concatenate %241, %264 in 1 : vector<8x32xf32>, vector<8x32xf32> -> vector<8x64xf32>
    %269 = arith.truncf %268 : vector<8x64xf32> to vector<8x64xbf16>
    %cst_90 = arith.constant dense<0.000000e+00> : vector<8x256xf32>
    %270 = tpu.matmul %269, %22, %cst_90 {dimension_numbers = #tpu.dot_dimension_numbers<[1], [0], [0], [1], [0, 0, 1, 1], [], []>} : vector<8x64xbf16>, vector<64x256xbf16>, vector<8x256xf32> -> vector<8x256xf32>
    %271 = vector.extract_strided_slice %270 {offsets = [0, 0], sizes = [8, 128], strides = [1, 1]} : vector<8x256xf32> to vector<8x128xf32>
    %c0_91 = arith.constant 0 : index
    %c40_92 = arith.constant 40 : index
    %c0_93 = arith.constant 0 : index
    %272 = vector.load %arg5[%c0_91, %c40_92, %c0_93] : memref<2x64x128xf32, #tpu.memory_space<vmem>>, vector<1x8x128xf32>
    %273 = vector.shape_cast %272 : vector<1x8x128xf32> to vector<8x128xf32>
    %274 = arith.addf %271, %273 : vector<8x128xf32>
    %275 = vector.extract_strided_slice %274 {offsets = [0, 0], sizes = [8, 96], strides = [1, 1]} : vector<8x128xf32> to vector<8x96xf32>
    %276 = arith.negf %275 : vector<8x96xf32>
    %277 = math.exp %276 : vector<8x96xf32>
    %cst_94 = arith.constant 1.000000e+00 : f32
    %278 = vector.broadcast %cst_94 : f32 to vector<8x96xf32>
    %279 = arith.addf %278, %277 : vector<8x96xf32>
    %280 = arith.divf %278, %279 : vector<8x96xf32>
    %281 = vector.extract_strided_slice %280 {offsets = [0, 0], sizes = [8, 32], strides = [1, 1]} : vector<8x96xf32> to vector<8x32xf32>
    %282 = vector.extract_strided_slice %280 {offsets = [0, 32], sizes = [8, 32], strides = [1, 1]} : vector<8x96xf32> to vector<8x32xf32>
    %283 = vector.extract_strided_slice %280 {offsets = [0, 64], sizes = [8, 32], strides = [1, 1]} : vector<8x96xf32> to vector<8x32xf32>
    %284 = vector.extract_strided_slice %274 {offsets = [0, 96], sizes = [8, 32], strides = [1, 1]} : vector<8x128xf32> to vector<8x32xf32>
    %285 = math.tanh %284 : vector<8x32xf32>
    %286 = arith.mulf %282, %239 : vector<8x32xf32>
    %287 = arith.mulf %281, %285 : vector<8x32xf32>
    %288 = arith.addf %286, %287 : vector<8x32xf32>
    %289 = math.tanh %288 : vector<8x32xf32>
    %290 = arith.mulf %283, %289 : vector<8x32xf32>
    %c0_95 = arith.constant 0 : index
    %c40_96 = arith.constant 40 : index
    %c0_97 = arith.constant 0 : index
    %291 = vector.load %arg6[%c0_95, %c40_96, %c0_97] : memref<2x64x32xf32, #tpu.memory_space<vmem>>, vector<1x8x32xf32>
    %292 = vector.shape_cast %291 : vector<1x8x32xf32> to vector<8x32xf32>
    %293 = vector.shape_cast %290 : vector<8x32xf32> to vector<1x8x32xf32>
    tpu.vector_store %arg6[%c0_95, %c40_96, %c0_97], %293 {strides = array<i32>} : memref<2x64x32xf32, #tpu.memory_space<vmem>>, vector<1x8x32xf32>,
    %294 = vector.extract_strided_slice %270 {offsets = [0, 128], sizes = [8, 128], strides = [1, 1]} : vector<8x256xf32> to vector<8x128xf32>
    %c1_98 = arith.constant 1 : index
    %c16_99 = arith.constant 16 : index
    %c0_100 = arith.constant 0 : index
    %295 = vector.load %arg5[%c1_98, %c16_99, %c0_100] : memref<2x64x128xf32, #tpu.memory_space<vmem>>, vector<1x8x128xf32>
    %296 = vector.shape_cast %295 : vector<1x8x128xf32> to vector<8x128xf32>
    %297 = arith.addf %294, %296 : vector<8x128xf32>
    %298 = vector.extract_strided_slice %297 {offsets = [0, 0], sizes = [8, 96], strides = [1, 1]} : vector<8x128xf32> to vector<8x96xf32>
    %299 = arith.negf %298 : vector<8x96xf32>
    %300 = math.exp %299 : vector<8x96xf32>
    %cst_101 = arith.constant 1.000000e+00 : f32
    %301 = vector.broadcast %cst_101 : f32 to vector<8x96xf32>
    %302 = arith.addf %301, %300 : vector<8x96xf32>
    %303 = arith.divf %301, %302 : vector<8x96xf32>
    %304 = vector.extract_strided_slice %303 {offsets = [0, 0], sizes = [8, 32], strides = [1, 1]} : vector<8x96xf32> to vector<8x32xf32>
    %305 = vector.extract_strided_slice %303 {offsets = [0, 32], sizes = [8, 32], strides = [1, 1]} : vector<8x96xf32> to vector<8x32xf32>
    %306 = vector.extract_strided_slice %303 {offsets = [0, 64], sizes = [8, 32], strides = [1, 1]} : vector<8x96xf32> to vector<8x32xf32>
    %307 = vector.extract_strided_slice %297 {offsets = [0, 96], sizes = [8, 32], strides = [1, 1]} : vector<8x128xf32> to vector<8x32xf32>
    %308 = math.tanh %307 : vector<8x32xf32>
    %309 = arith.mulf %305, %262 : vector<8x32xf32>
    %310 = arith.mulf %304, %308 : vector<8x32xf32>
    %311 = arith.addf %309, %310 : vector<8x32xf32>
    %312 = math.tanh %311 : vector<8x32xf32>
    %313 = arith.mulf %306, %312 : vector<8x32xf32>
    %c1_102 = arith.constant 1 : index
    %c16_103 = arith.constant 16 : index
    %c0_104 = arith.constant 0 : index
    %314 = vector.load %arg6[%c1_102, %c16_103, %c0_104] : memref<2x64x32xf32, #tpu.memory_space<vmem>>, vector<1x8x32xf32>
    %315 = vector.shape_cast %314 : vector<1x8x32xf32> to vector<8x32xf32>
    %316 = vector.shape_cast %313 : vector<8x32xf32> to vector<1x8x32xf32>
    tpu.vector_store %arg6[%c1_102, %c16_103, %c0_104], %316 {strides = array<i32>} : memref<2x64x32xf32, #tpu.memory_space<vmem>>, vector<1x8x32xf32>,
    %317 = tpu.concatenate %290, %313 in 1 : vector<8x32xf32>, vector<8x32xf32> -> vector<8x64xf32>
    %318 = arith.truncf %317 : vector<8x64xf32> to vector<8x64xbf16>
    %cst_105 = arith.constant dense<0.000000e+00> : vector<8x256xf32>
    %319 = tpu.matmul %318, %22, %cst_105 {dimension_numbers = #tpu.dot_dimension_numbers<[1], [0], [0], [1], [0, 0, 1, 1], [], []>} : vector<8x64xbf16>, vector<64x256xbf16>, vector<8x256xf32> -> vector<8x256xf32>
    %320 = vector.extract_strided_slice %319 {offsets = [0, 0], sizes = [8, 128], strides = [1, 1]} : vector<8x256xf32> to vector<8x128xf32>
    %c0_106 = arith.constant 0 : index
    %c48_107 = arith.constant 48 : index
    %c0_108 = arith.constant 0 : index
    %321 = vector.load %arg5[%c0_106, %c48_107, %c0_108] : memref<2x64x128xf32, #tpu.memory_space<vmem>>, vector<1x8x128xf32>
    %322 = vector.shape_cast %321 : vector<1x8x128xf32> to vector<8x128xf32>
    %323 = arith.addf %320, %322 : vector<8x128xf32>
    %324 = vector.extract_strided_slice %323 {offsets = [0, 0], sizes = [8, 96], strides = [1, 1]} : vector<8x128xf32> to vector<8x96xf32>
    %325 = arith.negf %324 : vector<8x96xf32>
    %326 = math.exp %325 : vector<8x96xf32>
    %cst_109 = arith.constant 1.000000e+00 : f32
    %327 = vector.broadcast %cst_109 : f32 to vector<8x96xf32>
    %328 = arith.addf %327, %326 : vector<8x96xf32>
    %329 = arith.divf %327, %328 : vector<8x96xf32>
    %330 = vector.extract_strided_slice %329 {offsets = [0, 0], sizes = [8, 32], strides = [1, 1]} : vector<8x96xf32> to vector<8x32xf32>
    %331 = vector.extract_strided_slice %329 {offsets = [0, 32], sizes = [8, 32], strides = [1, 1]} : vector<8x96xf32> to vector<8x32xf32>
    %332 = vector.extract_strided_slice %329 {offsets = [0, 64], sizes = [8, 32], strides = [1, 1]} : vector<8x96xf32> to vector<8x32xf32>
    %333 = vector.extract_strided_slice %323 {offsets = [0, 96], sizes = [8, 32], strides = [1, 1]} : vector<8x128xf32> to vector<8x32xf32>
    %334 = math.tanh %333 : vector<8x32xf32>
    %335 = arith.mulf %331, %288 : vector<8x32xf32>
    %336 = arith.mulf %330, %334 : vector<8x32xf32>
    %337 = arith.addf %335, %336 : vector<8x32xf32>
    %338 = math.tanh %337 : vector<8x32xf32>
    %339 = arith.mulf %332, %338 : vector<8x32xf32>
    %c0_110 = arith.constant 0 : index
    %c48_111 = arith.constant 48 : index
    %c0_112 = arith.constant 0 : index
    %340 = vector.load %arg6[%c0_110, %c48_111, %c0_112] : memref<2x64x32xf32, #tpu.memory_space<vmem>>, vector<1x8x32xf32>
    %341 = vector.shape_cast %340 : vector<1x8x32xf32> to vector<8x32xf32>
    %342 = vector.shape_cast %339 : vector<8x32xf32> to vector<1x8x32xf32>
    tpu.vector_store %arg6[%c0_110, %c48_111, %c0_112], %342 {strides = array<i32>} : memref<2x64x32xf32, #tpu.memory_space<vmem>>, vector<1x8x32xf32>,
    %343 = vector.extract_strided_slice %319 {offsets = [0, 128], sizes = [8, 128], strides = [1, 1]} : vector<8x256xf32> to vector<8x128xf32>
    %c1_113 = arith.constant 1 : index
    %c8_114 = arith.constant 8 : index
    %c0_115 = arith.constant 0 : index
    %344 = vector.load %arg5[%c1_113, %c8_114, %c0_115] : memref<2x64x128xf32, #tpu.memory_space<vmem>>, vector<1x8x128xf32>
    %345 = vector.shape_cast %344 : vector<1x8x128xf32> to vector<8x128xf32>
    %346 = arith.addf %343, %345 : vector<8x128xf32>
    %347 = vector.extract_strided_slice %346 {offsets = [0, 0], sizes = [8, 96], strides = [1, 1]} : vector<8x128xf32> to vector<8x96xf32>
    %348 = arith.negf %347 : vector<8x96xf32>
    %349 = math.exp %348 : vector<8x96xf32>
    %cst_116 = arith.constant 1.000000e+00 : f32
    %350 = vector.broadcast %cst_116 : f32 to vector<8x96xf32>
    %351 = arith.addf %350, %349 : vector<8x96xf32>
    %352 = arith.divf %350, %351 : vector<8x96xf32>
    %353 = vector.extract_strided_slice %352 {offsets = [0, 0], sizes = [8, 32], strides = [1, 1]} : vector<8x96xf32> to vector<8x32xf32>
    %354 = vector.extract_strided_slice %352 {offsets = [0, 32], sizes = [8, 32], strides = [1, 1]} : vector<8x96xf32> to vector<8x32xf32>
    %355 = vector.extract_strided_slice %352 {offsets = [0, 64], sizes = [8, 32], strides = [1, 1]} : vector<8x96xf32> to vector<8x32xf32>
    %356 = vector.extract_strided_slice %346 {offsets = [0, 96], sizes = [8, 32], strides = [1, 1]} : vector<8x128xf32> to vector<8x32xf32>
    %357 = math.tanh %356 : vector<8x32xf32>
    %358 = arith.mulf %354, %311 : vector<8x32xf32>
    %359 = arith.mulf %353, %357 : vector<8x32xf32>
    %360 = arith.addf %358, %359 : vector<8x32xf32>
    %361 = math.tanh %360 : vector<8x32xf32>
    %362 = arith.mulf %355, %361 : vector<8x32xf32>
    %c1_117 = arith.constant 1 : index
    %c8_118 = arith.constant 8 : index
    %c0_119 = arith.constant 0 : index
    %363 = vector.load %arg6[%c1_117, %c8_118, %c0_119] : memref<2x64x32xf32, #tpu.memory_space<vmem>>, vector<1x8x32xf32>
    %364 = vector.shape_cast %363 : vector<1x8x32xf32> to vector<8x32xf32>
    %365 = vector.shape_cast %362 : vector<8x32xf32> to vector<1x8x32xf32>
    tpu.vector_store %arg6[%c1_117, %c8_118, %c0_119], %365 {strides = array<i32>} : memref<2x64x32xf32, #tpu.memory_space<vmem>>, vector<1x8x32xf32>,
    %366 = tpu.concatenate %339, %362 in 1 : vector<8x32xf32>, vector<8x32xf32> -> vector<8x64xf32>
    %367 = arith.truncf %366 : vector<8x64xf32> to vector<8x64xbf16>
    %cst_120 = arith.constant dense<0.000000e+00> : vector<8x256xf32>
    %368 = tpu.matmul %367, %22, %cst_120 {dimension_numbers = #tpu.dot_dimension_numbers<[1], [0], [0], [1], [0, 0, 1, 1], [], []>} : vector<8x64xbf16>, vector<64x256xbf16>, vector<8x256xf32> -> vector<8x256xf32>
    %369 = vector.extract_strided_slice %368 {offsets = [0, 0], sizes = [8, 128], strides = [1, 1]} : vector<8x256xf32> to vector<8x128xf32>
    %c0_121 = arith.constant 0 : index
    %c56_122 = arith.constant 56 : index
    %c0_123 = arith.constant 0 : index
    %370 = vector.load %arg5[%c0_121, %c56_122, %c0_123] : memref<2x64x128xf32, #tpu.memory_space<vmem>>, vector<1x8x128xf32>
    %371 = vector.shape_cast %370 : vector<1x8x128xf32> to vector<8x128xf32>
    %372 = arith.addf %369, %371 : vector<8x128xf32>
    %373 = vector.extract_strided_slice %372 {offsets = [0, 0], sizes = [8, 96], strides = [1, 1]} : vector<8x128xf32> to vector<8x96xf32>
    %374 = arith.negf %373 : vector<8x96xf32>
    %375 = math.exp %374 : vector<8x96xf32>
    %cst_124 = arith.constant 1.000000e+00 : f32
    %376 = vector.broadcast %cst_124 : f32 to vector<8x96xf32>
    %377 = arith.addf %376, %375 : vector<8x96xf32>
    %378 = arith.divf %376, %377 : vector<8x96xf32>
    %379 = vector.extract_strided_slice %378 {offsets = [0, 0], sizes = [8, 32], strides = [1, 1]} : vector<8x96xf32> to vector<8x32xf32>
    %380 = vector.extract_strided_slice %378 {offsets = [0, 32], sizes = [8, 32], strides = [1, 1]} : vector<8x96xf32> to vector<8x32xf32>
    %381 = vector.extract_strided_slice %378 {offsets = [0, 64], sizes = [8, 32], strides = [1, 1]} : vector<8x96xf32> to vector<8x32xf32>
    %382 = vector.extract_strided_slice %372 {offsets = [0, 96], sizes = [8, 32], strides = [1, 1]} : vector<8x128xf32> to vector<8x32xf32>
    %383 = math.tanh %382 : vector<8x32xf32>
    %384 = arith.mulf %380, %337 : vector<8x32xf32>
    %385 = arith.mulf %379, %383 : vector<8x32xf32>
    %386 = arith.addf %384, %385 : vector<8x32xf32>
    %387 = math.tanh %386 : vector<8x32xf32>
    %388 = arith.mulf %381, %387 : vector<8x32xf32>
    %c0_125 = arith.constant 0 : index
    %c56_126 = arith.constant 56 : index
    %c0_127 = arith.constant 0 : index
    %389 = vector.load %arg6[%c0_125, %c56_126, %c0_127] : memref<2x64x32xf32, #tpu.memory_space<vmem>>, vector<1x8x32xf32>
    %390 = vector.shape_cast %389 : vector<1x8x32xf32> to vector<8x32xf32>
    %391 = vector.shape_cast %388 : vector<8x32xf32> to vector<1x8x32xf32>
    tpu.vector_store %arg6[%c0_125, %c56_126, %c0_127], %391 {strides = array<i32>} : memref<2x64x32xf32, #tpu.memory_space<vmem>>, vector<1x8x32xf32>,
    %392 = vector.extract_strided_slice %368 {offsets = [0, 128], sizes = [8, 128], strides = [1, 1]} : vector<8x256xf32> to vector<8x128xf32>
    %c1_128 = arith.constant 1 : index
    %c0_129 = arith.constant 0 : index
    %c0_130 = arith.constant 0 : index
    %393 = vector.load %arg5[%c1_128, %c0_129, %c0_130] : memref<2x64x128xf32, #tpu.memory_space<vmem>>, vector<1x8x128xf32>
    %394 = vector.shape_cast %393 : vector<1x8x128xf32> to vector<8x128xf32>
    %395 = arith.addf %392, %394 : vector<8x128xf32>
    %396 = vector.extract_strided_slice %395 {offsets = [0, 0], sizes = [8, 96], strides = [1, 1]} : vector<8x128xf32> to vector<8x96xf32>
    %397 = arith.negf %396 : vector<8x96xf32>
    %398 = math.exp %397 : vector<8x96xf32>
    %cst_131 = arith.constant 1.000000e+00 : f32
    %399 = vector.broadcast %cst_131 : f32 to vector<8x96xf32>
    %400 = arith.addf %399, %398 : vector<8x96xf32>
    %401 = arith.divf %399, %400 : vector<8x96xf32>
    %402 = vector.extract_strided_slice %401 {offsets = [0, 0], sizes = [8, 32], strides = [1, 1]} : vector<8x96xf32> to vector<8x32xf32>
    %403 = vector.extract_strided_slice %401 {offsets = [0, 32], sizes = [8, 32], strides = [1, 1]} : vector<8x96xf32> to vector<8x32xf32>
    %404 = vector.extract_strided_slice %401 {offsets = [0, 64], sizes = [8, 32], strides = [1, 1]} : vector<8x96xf32> to vector<8x32xf32>
    %405 = vector.extract_strided_slice %395 {offsets = [0, 96], sizes = [8, 32], strides = [1, 1]} : vector<8x128xf32> to vector<8x32xf32>
    %406 = math.tanh %405 : vector<8x32xf32>
    %407 = arith.mulf %403, %360 : vector<8x32xf32>
    %408 = arith.mulf %402, %406 : vector<8x32xf32>
    %409 = arith.addf %407, %408 : vector<8x32xf32>
    %410 = math.tanh %409 : vector<8x32xf32>
    %411 = arith.mulf %404, %410 : vector<8x32xf32>
    %c1_132 = arith.constant 1 : index
    %c0_133 = arith.constant 0 : index
    %c0_134 = arith.constant 0 : index
    %412 = vector.load %arg6[%c1_132, %c0_133, %c0_134] : memref<2x64x32xf32, #tpu.memory_space<vmem>>, vector<1x8x32xf32>
    %413 = vector.shape_cast %412 : vector<1x8x32xf32> to vector<8x32xf32>
    %414 = vector.shape_cast %411 : vector<8x32xf32> to vector<1x8x32xf32>
    tpu.vector_store %arg6[%c1_132, %c0_133, %c0_134], %414 {strides = array<i32>} : memref<2x64x32xf32, #tpu.memory_space<vmem>>, vector<1x8x32xf32>,
    %c0_135 = arith.constant 0 : index
    %c0_136 = arith.constant 0 : index
    %c0_137 = arith.constant 0 : index
    %415 = vector.load %arg6[%c0_135, %c0_136, %c0_137] : memref<2x64x32xf32, #tpu.memory_space<vmem>>, vector<1x64x32xf32>
    %416 = vector.shape_cast %415 : vector<1x64x32xf32> to vector<64x32xf32>
    %417 = arith.truncf %416 : vector<64x32xf32> to vector<64x32xbf16>
    %c1_138 = arith.constant 1 : index
    %c0_139 = arith.constant 0 : index
    %c0_140 = arith.constant 0 : index
    %418 = vector.load %arg6[%c1_138, %c0_139, %c0_140] : memref<2x64x32xf32, #tpu.memory_space<vmem>>, vector<1x64x32xf32>
    %419 = vector.shape_cast %418 : vector<1x64x32xf32> to vector<64x32xf32>
    %420 = arith.truncf %419 : vector<64x32xf32> to vector<64x32xbf16>
    %c1_141 = arith.constant 1 : index
    %c0_142 = arith.constant 0 : index
    %c0_143 = arith.constant 0 : index
    %421 = vector.load %arg2[%c1_141, %c0_142, %c0_143] : memref<2x128x256xbf16, #tpu.memory_space<vmem>>, vector<1x32x128xbf16>
    %422 = vector.shape_cast %421 : vector<1x32x128xbf16> to vector<32x128xbf16>
    %cst_144 = arith.constant dense<0.000000e+00> : vector<64x128xf32>
    %423 = tpu.matmul %417, %422, %cst_144 {dimension_numbers = #tpu.dot_dimension_numbers<[1], [0], [0], [1], [0, 0, 1, 1], [], []>} : vector<64x32xbf16>, vector<32x128xbf16>, vector<64x128xf32> -> vector<64x128xf32>
    %c1_145 = arith.constant 1 : index
    %c32_146 = arith.constant 32 : index
    %c0_147 = arith.constant 0 : index
    %424 = vector.load %arg2[%c1_145, %c32_146, %c0_147] : memref<2x128x256xbf16, #tpu.memory_space<vmem>>, vector<1x32x128xbf16>
    %425 = vector.shape_cast %424 : vector<1x32x128xbf16> to vector<32x128xbf16>
    %cst_148 = arith.constant dense<0.000000e+00> : vector<64x128xf32>
    %426 = tpu.matmul %420, %425, %cst_148 {dimension_numbers = #tpu.dot_dimension_numbers<[1], [0], [0], [1], [0, 0, 1, 1], [], []>} : vector<64x32xbf16>, vector<32x128xbf16>, vector<64x128xf32> -> vector<64x128xf32>
    %427 = arith.addf %423, %426 : vector<64x128xf32>
    %c1_149 = arith.constant 1 : index
    %c0_150 = arith.constant 0 : index
    %c0_151 = arith.constant 0 : index
    %428 = vector.load %arg3[%c1_149, %c0_150, %c0_151] : memref<2x1x256xf32, #tpu.memory_space<vmem>>, vector<1x1x128xf32>
    %429 = vector.shape_cast %428 : vector<1x1x128xf32> to vector<1x128xf32>
    %430 = vector.broadcast %429 : vector<1x128xf32> to vector<64x128xf32>
    %431 = arith.addf %427, %430 : vector<64x128xf32>
    %c0_152 = arith.constant 0 : index
    %c0_153 = arith.constant 0 : index
    %c0_154 = arith.constant 0 : index
    %432 = vector.load %arg5[%c0_152, %c0_153, %c0_154] : memref<2x64x128xf32, #tpu.memory_space<vmem>>, vector<1x64x128xf32>
    %433 = vector.shape_cast %432 : vector<1x64x128xf32> to vector<64x128xf32>
    %434 = vector.shape_cast %431 : vector<64x128xf32> to vector<1x64x128xf32>
    tpu.vector_store %arg5[%c0_152, %c0_153, %c0_154], %434 {strides = array<i32>} : memref<2x64x128xf32, #tpu.memory_space<vmem>>, vector<1x64x128xf32>,
    %c1_155 = arith.constant 1 : index
    %c0_156 = arith.constant 0 : index
    %c128_157 = arith.constant 128 : index
    %435 = vector.load %arg2[%c1_155, %c0_156, %c128_157] : memref<2x128x256xbf16, #tpu.memory_space<vmem>>, vector<1x32x128xbf16>
    %436 = vector.shape_cast %435 : vector<1x32x128xbf16> to vector<32x128xbf16>
    %cst_158 = arith.constant dense<0.000000e+00> : vector<64x128xf32>
    %437 = tpu.matmul %417, %436, %cst_158 {dimension_numbers = #tpu.dot_dimension_numbers<[1], [0], [0], [1], [0, 0, 1, 1], [], []>} : vector<64x32xbf16>, vector<32x128xbf16>, vector<64x128xf32> -> vector<64x128xf32>
    %c1_159 = arith.constant 1 : index
    %c32_160 = arith.constant 32 : index
    %c128_161 = arith.constant 128 : index
    %438 = vector.load %arg2[%c1_159, %c32_160, %c128_161] : memref<2x128x256xbf16, #tpu.memory_space<vmem>>, vector<1x32x128xbf16>
    %439 = vector.shape_cast %438 : vector<1x32x128xbf16> to vector<32x128xbf16>
    %cst_162 = arith.constant dense<0.000000e+00> : vector<64x128xf32>
    %440 = tpu.matmul %420, %439, %cst_162 {dimension_numbers = #tpu.dot_dimension_numbers<[1], [0], [0], [1], [0, 0, 1, 1], [], []>} : vector<64x32xbf16>, vector<32x128xbf16>, vector<64x128xf32> -> vector<64x128xf32>
    %441 = arith.addf %437, %440 : vector<64x128xf32>
    %c1_163 = arith.constant 1 : index
    %c0_164 = arith.constant 0 : index
    %c128_165 = arith.constant 128 : index
    %442 = vector.load %arg3[%c1_163, %c0_164, %c128_165] : memref<2x1x256xf32, #tpu.memory_space<vmem>>, vector<1x1x128xf32>
    %443 = vector.shape_cast %442 : vector<1x1x128xf32> to vector<1x128xf32>
    %444 = vector.broadcast %443 : vector<1x128xf32> to vector<64x128xf32>
    %445 = arith.addf %441, %444 : vector<64x128xf32>
    %c1_166 = arith.constant 1 : index
    %c0_167 = arith.constant 0 : index
    %c0_168 = arith.constant 0 : index
    %446 = vector.load %arg5[%c1_166, %c0_167, %c0_168] : memref<2x64x128xf32, #tpu.memory_space<vmem>>, vector<1x64x128xf32>
    %447 = vector.shape_cast %446 : vector<1x64x128xf32> to vector<64x128xf32>
    %448 = vector.shape_cast %445 : vector<64x128xf32> to vector<1x64x128xf32>
    tpu.vector_store %arg5[%c1_166, %c0_167, %c0_168], %448 {strides = array<i32>} : memref<2x64x128xf32, #tpu.memory_space<vmem>>, vector<1x64x128xf32>,
    %c1_169 = arith.constant 1 : index
    %c64_170 = arith.constant 64 : index
    %c0_171 = arith.constant 0 : index
    %449 = vector.load %arg2[%c1_169, %c64_170, %c0_171] : memref<2x128x256xbf16, #tpu.memory_space<vmem>>, vector<1x64x256xbf16>
    %450 = vector.shape_cast %449 : vector<1x64x256xbf16> to vector<64x256xbf16>
    %cst_172 = arith.constant 0.000000e+00 : f32
    %451 = vector.broadcast %cst_172 : f32 to vector<8x32xf32>
    %cst_173 = arith.constant 0.000000e+00 : f32
    %452 = vector.broadcast %cst_173 : f32 to vector<8x32xf32>
    %cst_174 = arith.constant 0.000000e+00 : f32
    %453 = vector.broadcast %cst_174 : f32 to vector<8x256xf32>
    %454 = vector.extract_strided_slice %453 {offsets = [0, 0], sizes = [8, 128], strides = [1, 1]} : vector<8x256xf32> to vector<8x128xf32>
    %c0_175 = arith.constant 0 : index
    %c0_176 = arith.constant 0 : index
    %c0_177 = arith.constant 0 : index
    %455 = vector.load %arg5[%c0_175, %c0_176, %c0_177] : memref<2x64x128xf32, #tpu.memory_space<vmem>>, vector<1x8x128xf32>
    %456 = vector.shape_cast %455 : vector<1x8x128xf32> to vector<8x128xf32>
    %457 = arith.addf %454, %456 : vector<8x128xf32>
    %458 = vector.extract_strided_slice %457 {offsets = [0, 0], sizes = [8, 96], strides = [1, 1]} : vector<8x128xf32> to vector<8x96xf32>
    %459 = arith.negf %458 : vector<8x96xf32>
    %460 = math.exp %459 : vector<8x96xf32>
    %cst_178 = arith.constant 1.000000e+00 : f32
    %461 = vector.broadcast %cst_178 : f32 to vector<8x96xf32>
    %462 = arith.addf %461, %460 : vector<8x96xf32>
    %463 = arith.divf %461, %462 : vector<8x96xf32>
    %464 = vector.extract_strided_slice %463 {offsets = [0, 0], sizes = [8, 32], strides = [1, 1]} : vector<8x96xf32> to vector<8x32xf32>
    %465 = vector.extract_strided_slice %463 {offsets = [0, 32], sizes = [8, 32], strides = [1, 1]} : vector<8x96xf32> to vector<8x32xf32>
    %466 = vector.extract_strided_slice %463 {offsets = [0, 64], sizes = [8, 32], strides = [1, 1]} : vector<8x96xf32> to vector<8x32xf32>
    %467 = vector.extract_strided_slice %457 {offsets = [0, 96], sizes = [8, 32], strides = [1, 1]} : vector<8x128xf32> to vector<8x32xf32>
    %468 = math.tanh %467 : vector<8x32xf32>
    %469 = arith.mulf %465, %451 : vector<8x32xf32>
    %470 = arith.mulf %464, %468 : vector<8x32xf32>
    %471 = arith.addf %469, %470 : vector<8x32xf32>
    %472 = math.tanh %471 : vector<8x32xf32>
    %473 = arith.mulf %466, %472 : vector<8x32xf32>
    %474 = vector.extract_strided_slice %453 {offsets = [0, 128], sizes = [8, 128], strides = [1, 1]} : vector<8x256xf32> to vector<8x128xf32>
    %c1_179 = arith.constant 1 : index
    %c56_180 = arith.constant 56 : index
    %c0_181 = arith.constant 0 : index
    %475 = vector.load %arg5[%c1_179, %c56_180, %c0_181] : memref<2x64x128xf32, #tpu.memory_space<vmem>>, vector<1x8x128xf32>
    %476 = vector.shape_cast %475 : vector<1x8x128xf32> to vector<8x128xf32>
    %477 = arith.addf %474, %476 : vector<8x128xf32>
    %478 = vector.extract_strided_slice %477 {offsets = [0, 0], sizes = [8, 96], strides = [1, 1]} : vector<8x128xf32> to vector<8x96xf32>
    %479 = arith.negf %478 : vector<8x96xf32>
    %480 = math.exp %479 : vector<8x96xf32>
    %cst_182 = arith.constant 1.000000e+00 : f32
    %481 = vector.broadcast %cst_182 : f32 to vector<8x96xf32>
    %482 = arith.addf %481, %480 : vector<8x96xf32>
    %483 = arith.divf %481, %482 : vector<8x96xf32>
    %484 = vector.extract_strided_slice %483 {offsets = [0, 0], sizes = [8, 32], strides = [1, 1]} : vector<8x96xf32> to vector<8x32xf32>
    %485 = vector.extract_strided_slice %483 {offsets = [0, 32], sizes = [8, 32], strides = [1, 1]} : vector<8x96xf32> to vector<8x32xf32>
    %486 = vector.extract_strided_slice %483 {offsets = [0, 64], sizes = [8, 32], strides = [1, 1]} : vector<8x96xf32> to vector<8x32xf32>
    %487 = vector.extract_strided_slice %477 {offsets = [0, 96], sizes = [8, 32], strides = [1, 1]} : vector<8x128xf32> to vector<8x32xf32>
    %488 = math.tanh %487 : vector<8x32xf32>
    %489 = arith.mulf %485, %452 : vector<8x32xf32>
    %490 = arith.mulf %484, %488 : vector<8x32xf32>
    %491 = arith.addf %489, %490 : vector<8x32xf32>
    %492 = math.tanh %491 : vector<8x32xf32>
    %493 = arith.mulf %486, %492 : vector<8x32xf32>
    %494 = tpu.concatenate %473, %493 in 1 : vector<8x32xf32>, vector<8x32xf32> -> vector<8x64xf32>
    %495 = arith.truncf %494 : vector<8x64xf32> to vector<8x64xbf16>
    %cst_183 = arith.constant dense<0.000000e+00> : vector<8x256xf32>
    %496 = tpu.matmul %495, %450, %cst_183 {dimension_numbers = #tpu.dot_dimension_numbers<[1], [0], [0], [1], [0, 0, 1, 1], [], []>} : vector<8x64xbf16>, vector<64x256xbf16>, vector<8x256xf32> -> vector<8x256xf32>
    %497 = vector.extract_strided_slice %496 {offsets = [0, 0], sizes = [8, 128], strides = [1, 1]} : vector<8x256xf32> to vector<8x128xf32>
    %c0_184 = arith.constant 0 : index
    %c8_185 = arith.constant 8 : index
    %c0_186 = arith.constant 0 : index
    %498 = vector.load %arg5[%c0_184, %c8_185, %c0_186] : memref<2x64x128xf32, #tpu.memory_space<vmem>>, vector<1x8x128xf32>
    %499 = vector.shape_cast %498 : vector<1x8x128xf32> to vector<8x128xf32>
    %500 = arith.addf %497, %499 : vector<8x128xf32>
    %501 = vector.extract_strided_slice %500 {offsets = [0, 0], sizes = [8, 96], strides = [1, 1]} : vector<8x128xf32> to vector<8x96xf32>
    %502 = arith.negf %501 : vector<8x96xf32>
    %503 = math.exp %502 : vector<8x96xf32>
    %cst_187 = arith.constant 1.000000e+00 : f32
    %504 = vector.broadcast %cst_187 : f32 to vector<8x96xf32>
    %505 = arith.addf %504, %503 : vector<8x96xf32>
    %506 = arith.divf %504, %505 : vector<8x96xf32>
    %507 = vector.extract_strided_slice %506 {offsets = [0, 0], sizes = [8, 32], strides = [1, 1]} : vector<8x96xf32> to vector<8x32xf32>
    %508 = vector.extract_strided_slice %506 {offsets = [0, 32], sizes = [8, 32], strides = [1, 1]} : vector<8x96xf32> to vector<8x32xf32>
    %509 = vector.extract_strided_slice %506 {offsets = [0, 64], sizes = [8, 32], strides = [1, 1]} : vector<8x96xf32> to vector<8x32xf32>
    %510 = vector.extract_strided_slice %500 {offsets = [0, 96], sizes = [8, 32], strides = [1, 1]} : vector<8x128xf32> to vector<8x32xf32>
    %511 = math.tanh %510 : vector<8x32xf32>
    %512 = arith.mulf %508, %471 : vector<8x32xf32>
    %513 = arith.mulf %507, %511 : vector<8x32xf32>
    %514 = arith.addf %512, %513 : vector<8x32xf32>
    %515 = math.tanh %514 : vector<8x32xf32>
    %516 = arith.mulf %509, %515 : vector<8x32xf32>
    %517 = vector.extract_strided_slice %496 {offsets = [0, 128], sizes = [8, 128], strides = [1, 1]} : vector<8x256xf32> to vector<8x128xf32>
    %c1_188 = arith.constant 1 : index
    %c48_189 = arith.constant 48 : index
    %c0_190 = arith.constant 0 : index
    %518 = vector.load %arg5[%c1_188, %c48_189, %c0_190] : memref<2x64x128xf32, #tpu.memory_space<vmem>>, vector<1x8x128xf32>
    %519 = vector.shape_cast %518 : vector<1x8x128xf32> to vector<8x128xf32>
    %520 = arith.addf %517, %519 : vector<8x128xf32>
    %521 = vector.extract_strided_slice %520 {offsets = [0, 0], sizes = [8, 96], strides = [1, 1]} : vector<8x128xf32> to vector<8x96xf32>
    %522 = arith.negf %521 : vector<8x96xf32>
    %523 = math.exp %522 : vector<8x96xf32>
    %cst_191 = arith.constant 1.000000e+00 : f32
    %524 = vector.broadcast %cst_191 : f32 to vector<8x96xf32>
    %525 = arith.addf %524, %523 : vector<8x96xf32>
    %526 = arith.divf %524, %525 : vector<8x96xf32>
    %527 = vector.extract_strided_slice %526 {offsets = [0, 0], sizes = [8, 32], strides = [1, 1]} : vector<8x96xf32> to vector<8x32xf32>
    %528 = vector.extract_strided_slice %526 {offsets = [0, 32], sizes = [8, 32], strides = [1, 1]} : vector<8x96xf32> to vector<8x32xf32>
    %529 = vector.extract_strided_slice %526 {offsets = [0, 64], sizes = [8, 32], strides = [1, 1]} : vector<8x96xf32> to vector<8x32xf32>
    %530 = vector.extract_strided_slice %520 {offsets = [0, 96], sizes = [8, 32], strides = [1, 1]} : vector<8x128xf32> to vector<8x32xf32>
    %531 = math.tanh %530 : vector<8x32xf32>
    %532 = arith.mulf %528, %491 : vector<8x32xf32>
    %533 = arith.mulf %527, %531 : vector<8x32xf32>
    %534 = arith.addf %532, %533 : vector<8x32xf32>
    %535 = math.tanh %534 : vector<8x32xf32>
    %536 = arith.mulf %529, %535 : vector<8x32xf32>
    %537 = tpu.concatenate %516, %536 in 1 : vector<8x32xf32>, vector<8x32xf32> -> vector<8x64xf32>
    %538 = arith.truncf %537 : vector<8x64xf32> to vector<8x64xbf16>
    %cst_192 = arith.constant dense<0.000000e+00> : vector<8x256xf32>
    %539 = tpu.matmul %538, %450, %cst_192 {dimension_numbers = #tpu.dot_dimension_numbers<[1], [0], [0], [1], [0, 0, 1, 1], [], []>} : vector<8x64xbf16>, vector<64x256xbf16>, vector<8x256xf32> -> vector<8x256xf32>
    %540 = vector.extract_strided_slice %539 {offsets = [0, 0], sizes = [8, 128], strides = [1, 1]} : vector<8x256xf32> to vector<8x128xf32>
    %c0_193 = arith.constant 0 : index
    %c16_194 = arith.constant 16 : index
    %c0_195 = arith.constant 0 : index
    %541 = vector.load %arg5[%c0_193, %c16_194, %c0_195] : memref<2x64x128xf32, #tpu.memory_space<vmem>>, vector<1x8x128xf32>
    %542 = vector.shape_cast %541 : vector<1x8x128xf32> to vector<8x128xf32>
    %543 = arith.addf %540, %542 : vector<8x128xf32>
    %544 = vector.extract_strided_slice %543 {offsets = [0, 0], sizes = [8, 96], strides = [1, 1]} : vector<8x128xf32> to vector<8x96xf32>
    %545 = arith.negf %544 : vector<8x96xf32>
    %546 = math.exp %545 : vector<8x96xf32>
    %cst_196 = arith.constant 1.000000e+00 : f32
    %547 = vector.broadcast %cst_196 : f32 to vector<8x96xf32>
    %548 = arith.addf %547, %546 : vector<8x96xf32>
    %549 = arith.divf %547, %548 : vector<8x96xf32>
    %550 = vector.extract_strided_slice %549 {offsets = [0, 0], sizes = [8, 32], strides = [1, 1]} : vector<8x96xf32> to vector<8x32xf32>
    %551 = vector.extract_strided_slice %549 {offsets = [0, 32], sizes = [8, 32], strides = [1, 1]} : vector<8x96xf32> to vector<8x32xf32>
    %552 = vector.extract_strided_slice %549 {offsets = [0, 64], sizes = [8, 32], strides = [1, 1]} : vector<8x96xf32> to vector<8x32xf32>
    %553 = vector.extract_strided_slice %543 {offsets = [0, 96], sizes = [8, 32], strides = [1, 1]} : vector<8x128xf32> to vector<8x32xf32>
    %554 = math.tanh %553 : vector<8x32xf32>
    %555 = arith.mulf %551, %514 : vector<8x32xf32>
    %556 = arith.mulf %550, %554 : vector<8x32xf32>
    %557 = arith.addf %555, %556 : vector<8x32xf32>
    %558 = math.tanh %557 : vector<8x32xf32>
    %559 = arith.mulf %552, %558 : vector<8x32xf32>
    %560 = vector.extract_strided_slice %539 {offsets = [0, 128], sizes = [8, 128], strides = [1, 1]} : vector<8x256xf32> to vector<8x128xf32>
    %c1_197 = arith.constant 1 : index
    %c40_198 = arith.constant 40 : index
    %c0_199 = arith.constant 0 : index
    %561 = vector.load %arg5[%c1_197, %c40_198, %c0_199] : memref<2x64x128xf32, #tpu.memory_space<vmem>>, vector<1x8x128xf32>
    %562 = vector.shape_cast %561 : vector<1x8x128xf32> to vector<8x128xf32>
    %563 = arith.addf %560, %562 : vector<8x128xf32>
    %564 = vector.extract_strided_slice %563 {offsets = [0, 0], sizes = [8, 96], strides = [1, 1]} : vector<8x128xf32> to vector<8x96xf32>
    %565 = arith.negf %564 : vector<8x96xf32>
    %566 = math.exp %565 : vector<8x96xf32>
    %cst_200 = arith.constant 1.000000e+00 : f32
    %567 = vector.broadcast %cst_200 : f32 to vector<8x96xf32>
    %568 = arith.addf %567, %566 : vector<8x96xf32>
    %569 = arith.divf %567, %568 : vector<8x96xf32>
    %570 = vector.extract_strided_slice %569 {offsets = [0, 0], sizes = [8, 32], strides = [1, 1]} : vector<8x96xf32> to vector<8x32xf32>
    %571 = vector.extract_strided_slice %569 {offsets = [0, 32], sizes = [8, 32], strides = [1, 1]} : vector<8x96xf32> to vector<8x32xf32>
    %572 = vector.extract_strided_slice %569 {offsets = [0, 64], sizes = [8, 32], strides = [1, 1]} : vector<8x96xf32> to vector<8x32xf32>
    %573 = vector.extract_strided_slice %563 {offsets = [0, 96], sizes = [8, 32], strides = [1, 1]} : vector<8x128xf32> to vector<8x32xf32>
    %574 = math.tanh %573 : vector<8x32xf32>
    %575 = arith.mulf %571, %534 : vector<8x32xf32>
    %576 = arith.mulf %570, %574 : vector<8x32xf32>
    %577 = arith.addf %575, %576 : vector<8x32xf32>
    %578 = math.tanh %577 : vector<8x32xf32>
    %579 = arith.mulf %572, %578 : vector<8x32xf32>
    %580 = tpu.concatenate %559, %579 in 1 : vector<8x32xf32>, vector<8x32xf32> -> vector<8x64xf32>
    %581 = arith.truncf %580 : vector<8x64xf32> to vector<8x64xbf16>
    %cst_201 = arith.constant dense<0.000000e+00> : vector<8x256xf32>
    %582 = tpu.matmul %581, %450, %cst_201 {dimension_numbers = #tpu.dot_dimension_numbers<[1], [0], [0], [1], [0, 0, 1, 1], [], []>} : vector<8x64xbf16>, vector<64x256xbf16>, vector<8x256xf32> -> vector<8x256xf32>
    %583 = vector.extract_strided_slice %582 {offsets = [0, 0], sizes = [8, 128], strides = [1, 1]} : vector<8x256xf32> to vector<8x128xf32>
    %c0_202 = arith.constant 0 : index
    %c24_203 = arith.constant 24 : index
    %c0_204 = arith.constant 0 : index
    %584 = vector.load %arg5[%c0_202, %c24_203, %c0_204] : memref<2x64x128xf32, #tpu.memory_space<vmem>>, vector<1x8x128xf32>
    %585 = vector.shape_cast %584 : vector<1x8x128xf32> to vector<8x128xf32>
    %586 = arith.addf %583, %585 : vector<8x128xf32>
    %587 = vector.extract_strided_slice %586 {offsets = [0, 0], sizes = [8, 96], strides = [1, 1]} : vector<8x128xf32> to vector<8x96xf32>
    %588 = arith.negf %587 : vector<8x96xf32>
    %589 = math.exp %588 : vector<8x96xf32>
    %cst_205 = arith.constant 1.000000e+00 : f32
    %590 = vector.broadcast %cst_205 : f32 to vector<8x96xf32>
    %591 = arith.addf %590, %589 : vector<8x96xf32>
    %592 = arith.divf %590, %591 : vector<8x96xf32>
    %593 = vector.extract_strided_slice %592 {offsets = [0, 0], sizes = [8, 32], strides = [1, 1]} : vector<8x96xf32> to vector<8x32xf32>
    %594 = vector.extract_strided_slice %592 {offsets = [0, 32], sizes = [8, 32], strides = [1, 1]} : vector<8x96xf32> to vector<8x32xf32>
    %595 = vector.extract_strided_slice %592 {offsets = [0, 64], sizes = [8, 32], strides = [1, 1]} : vector<8x96xf32> to vector<8x32xf32>
    %596 = vector.extract_strided_slice %586 {offsets = [0, 96], sizes = [8, 32], strides = [1, 1]} : vector<8x128xf32> to vector<8x32xf32>
    %597 = math.tanh %596 : vector<8x32xf32>
    %598 = arith.mulf %594, %557 : vector<8x32xf32>
    %599 = arith.mulf %593, %597 : vector<8x32xf32>
    %600 = arith.addf %598, %599 : vector<8x32xf32>
    %601 = math.tanh %600 : vector<8x32xf32>
    %602 = arith.mulf %595, %601 : vector<8x32xf32>
    %603 = vector.extract_strided_slice %582 {offsets = [0, 128], sizes = [8, 128], strides = [1, 1]} : vector<8x256xf32> to vector<8x128xf32>
    %c1_206 = arith.constant 1 : index
    %c32_207 = arith.constant 32 : index
    %c0_208 = arith.constant 0 : index
    %604 = vector.load %arg5[%c1_206, %c32_207, %c0_208] : memref<2x64x128xf32, #tpu.memory_space<vmem>>, vector<1x8x128xf32>
    %605 = vector.shape_cast %604 : vector<1x8x128xf32> to vector<8x128xf32>
    %606 = arith.addf %603, %605 : vector<8x128xf32>
    %607 = vector.extract_strided_slice %606 {offsets = [0, 0], sizes = [8, 96], strides = [1, 1]} : vector<8x128xf32> to vector<8x96xf32>
    %608 = arith.negf %607 : vector<8x96xf32>
    %609 = math.exp %608 : vector<8x96xf32>
    %cst_209 = arith.constant 1.000000e+00 : f32
    %610 = vector.broadcast %cst_209 : f32 to vector<8x96xf32>
    %611 = arith.addf %610, %609 : vector<8x96xf32>
    %612 = arith.divf %610, %611 : vector<8x96xf32>
    %613 = vector.extract_strided_slice %612 {offsets = [0, 0], sizes = [8, 32], strides = [1, 1]} : vector<8x96xf32> to vector<8x32xf32>
    %614 = vector.extract_strided_slice %612 {offsets = [0, 32], sizes = [8, 32], strides = [1, 1]} : vector<8x96xf32> to vector<8x32xf32>
    %615 = vector.extract_strided_slice %612 {offsets = [0, 64], sizes = [8, 32], strides = [1, 1]} : vector<8x96xf32> to vector<8x32xf32>
    %616 = vector.extract_strided_slice %606 {offsets = [0, 96], sizes = [8, 32], strides = [1, 1]} : vector<8x128xf32> to vector<8x32xf32>
    %617 = math.tanh %616 : vector<8x32xf32>
    %618 = arith.mulf %614, %577 : vector<8x32xf32>
    %619 = arith.mulf %613, %617 : vector<8x32xf32>
    %620 = arith.addf %618, %619 : vector<8x32xf32>
    %621 = math.tanh %620 : vector<8x32xf32>
    %622 = arith.mulf %615, %621 : vector<8x32xf32>
    %623 = tpu.concatenate %602, %622 in 1 : vector<8x32xf32>, vector<8x32xf32> -> vector<8x64xf32>
    %624 = arith.truncf %623 : vector<8x64xf32> to vector<8x64xbf16>
    %cst_210 = arith.constant dense<0.000000e+00> : vector<8x256xf32>
    %625 = tpu.matmul %624, %450, %cst_210 {dimension_numbers = #tpu.dot_dimension_numbers<[1], [0], [0], [1], [0, 0, 1, 1], [], []>} : vector<8x64xbf16>, vector<64x256xbf16>, vector<8x256xf32> -> vector<8x256xf32>
    %626 = vector.extract_strided_slice %625 {offsets = [0, 0], sizes = [8, 128], strides = [1, 1]} : vector<8x256xf32> to vector<8x128xf32>
    %c0_211 = arith.constant 0 : index
    %c32_212 = arith.constant 32 : index
    %c0_213 = arith.constant 0 : index
    %627 = vector.load %arg5[%c0_211, %c32_212, %c0_213] : memref<2x64x128xf32, #tpu.memory_space<vmem>>, vector<1x8x128xf32>
    %628 = vector.shape_cast %627 : vector<1x8x128xf32> to vector<8x128xf32>
    %629 = arith.addf %626, %628 : vector<8x128xf32>
    %630 = vector.extract_strided_slice %629 {offsets = [0, 0], sizes = [8, 96], strides = [1, 1]} : vector<8x128xf32> to vector<8x96xf32>
    %631 = arith.negf %630 : vector<8x96xf32>
    %632 = math.exp %631 : vector<8x96xf32>
    %cst_214 = arith.constant 1.000000e+00 : f32
    %633 = vector.broadcast %cst_214 : f32 to vector<8x96xf32>
    %634 = arith.addf %633, %632 : vector<8x96xf32>
    %635 = arith.divf %633, %634 : vector<8x96xf32>
    %636 = vector.extract_strided_slice %635 {offsets = [0, 0], sizes = [8, 32], strides = [1, 1]} : vector<8x96xf32> to vector<8x32xf32>
    %637 = vector.extract_strided_slice %635 {offsets = [0, 32], sizes = [8, 32], strides = [1, 1]} : vector<8x96xf32> to vector<8x32xf32>
    %638 = vector.extract_strided_slice %635 {offsets = [0, 64], sizes = [8, 32], strides = [1, 1]} : vector<8x96xf32> to vector<8x32xf32>
    %639 = vector.extract_strided_slice %629 {offsets = [0, 96], sizes = [8, 32], strides = [1, 1]} : vector<8x128xf32> to vector<8x32xf32>
    %640 = math.tanh %639 : vector<8x32xf32>
    %641 = arith.mulf %637, %600 : vector<8x32xf32>
    %642 = arith.mulf %636, %640 : vector<8x32xf32>
    %643 = arith.addf %641, %642 : vector<8x32xf32>
    %644 = math.tanh %643 : vector<8x32xf32>
    %645 = arith.mulf %638, %644 : vector<8x32xf32>
    %646 = vector.extract_strided_slice %625 {offsets = [0, 128], sizes = [8, 128], strides = [1, 1]} : vector<8x256xf32> to vector<8x128xf32>
    %c1_215 = arith.constant 1 : index
    %c24_216 = arith.constant 24 : index
    %c0_217 = arith.constant 0 : index
    %647 = vector.load %arg5[%c1_215, %c24_216, %c0_217] : memref<2x64x128xf32, #tpu.memory_space<vmem>>, vector<1x8x128xf32>
    %648 = vector.shape_cast %647 : vector<1x8x128xf32> to vector<8x128xf32>
    %649 = arith.addf %646, %648 : vector<8x128xf32>
    %650 = vector.extract_strided_slice %649 {offsets = [0, 0], sizes = [8, 96], strides = [1, 1]} : vector<8x128xf32> to vector<8x96xf32>
    %651 = arith.negf %650 : vector<8x96xf32>
    %652 = math.exp %651 : vector<8x96xf32>
    %cst_218 = arith.constant 1.000000e+00 : f32
    %653 = vector.broadcast %cst_218 : f32 to vector<8x96xf32>
    %654 = arith.addf %653, %652 : vector<8x96xf32>
    %655 = arith.divf %653, %654 : vector<8x96xf32>
    %656 = vector.extract_strided_slice %655 {offsets = [0, 0], sizes = [8, 32], strides = [1, 1]} : vector<8x96xf32> to vector<8x32xf32>
    %657 = vector.extract_strided_slice %655 {offsets = [0, 32], sizes = [8, 32], strides = [1, 1]} : vector<8x96xf32> to vector<8x32xf32>
    %658 = vector.extract_strided_slice %655 {offsets = [0, 64], sizes = [8, 32], strides = [1, 1]} : vector<8x96xf32> to vector<8x32xf32>
    %659 = vector.extract_strided_slice %649 {offsets = [0, 96], sizes = [8, 32], strides = [1, 1]} : vector<8x128xf32> to vector<8x32xf32>
    %660 = math.tanh %659 : vector<8x32xf32>
    %661 = arith.mulf %657, %620 : vector<8x32xf32>
    %662 = arith.mulf %656, %660 : vector<8x32xf32>
    %663 = arith.addf %661, %662 : vector<8x32xf32>
    %664 = math.tanh %663 : vector<8x32xf32>
    %665 = arith.mulf %658, %664 : vector<8x32xf32>
    %666 = tpu.concatenate %645, %665 in 1 : vector<8x32xf32>, vector<8x32xf32> -> vector<8x64xf32>
    %667 = arith.truncf %666 : vector<8x64xf32> to vector<8x64xbf16>
    %cst_219 = arith.constant dense<0.000000e+00> : vector<8x256xf32>
    %668 = tpu.matmul %667, %450, %cst_219 {dimension_numbers = #tpu.dot_dimension_numbers<[1], [0], [0], [1], [0, 0, 1, 1], [], []>} : vector<8x64xbf16>, vector<64x256xbf16>, vector<8x256xf32> -> vector<8x256xf32>
    %669 = vector.extract_strided_slice %668 {offsets = [0, 0], sizes = [8, 128], strides = [1, 1]} : vector<8x256xf32> to vector<8x128xf32>
    %c0_220 = arith.constant 0 : index
    %c40_221 = arith.constant 40 : index
    %c0_222 = arith.constant 0 : index
    %670 = vector.load %arg5[%c0_220, %c40_221, %c0_222] : memref<2x64x128xf32, #tpu.memory_space<vmem>>, vector<1x8x128xf32>
    %671 = vector.shape_cast %670 : vector<1x8x128xf32> to vector<8x128xf32>
    %672 = arith.addf %669, %671 : vector<8x128xf32>
    %673 = vector.extract_strided_slice %672 {offsets = [0, 0], sizes = [8, 96], strides = [1, 1]} : vector<8x128xf32> to vector<8x96xf32>
    %674 = arith.negf %673 : vector<8x96xf32>
    %675 = math.exp %674 : vector<8x96xf32>
    %cst_223 = arith.constant 1.000000e+00 : f32
    %676 = vector.broadcast %cst_223 : f32 to vector<8x96xf32>
    %677 = arith.addf %676, %675 : vector<8x96xf32>
    %678 = arith.divf %676, %677 : vector<8x96xf32>
    %679 = vector.extract_strided_slice %678 {offsets = [0, 0], sizes = [8, 32], strides = [1, 1]} : vector<8x96xf32> to vector<8x32xf32>
    %680 = vector.extract_strided_slice %678 {offsets = [0, 32], sizes = [8, 32], strides = [1, 1]} : vector<8x96xf32> to vector<8x32xf32>
    %681 = vector.extract_strided_slice %678 {offsets = [0, 64], sizes = [8, 32], strides = [1, 1]} : vector<8x96xf32> to vector<8x32xf32>
    %682 = vector.extract_strided_slice %672 {offsets = [0, 96], sizes = [8, 32], strides = [1, 1]} : vector<8x128xf32> to vector<8x32xf32>
    %683 = math.tanh %682 : vector<8x32xf32>
    %684 = arith.mulf %680, %643 : vector<8x32xf32>
    %685 = arith.mulf %679, %683 : vector<8x32xf32>
    %686 = arith.addf %684, %685 : vector<8x32xf32>
    %687 = math.tanh %686 : vector<8x32xf32>
    %688 = arith.mulf %681, %687 : vector<8x32xf32>
    %689 = vector.extract_strided_slice %668 {offsets = [0, 128], sizes = [8, 128], strides = [1, 1]} : vector<8x256xf32> to vector<8x128xf32>
    %c1_224 = arith.constant 1 : index
    %c16_225 = arith.constant 16 : index
    %c0_226 = arith.constant 0 : index
    %690 = vector.load %arg5[%c1_224, %c16_225, %c0_226] : memref<2x64x128xf32, #tpu.memory_space<vmem>>, vector<1x8x128xf32>
    %691 = vector.shape_cast %690 : vector<1x8x128xf32> to vector<8x128xf32>
    %692 = arith.addf %689, %691 : vector<8x128xf32>
    %693 = vector.extract_strided_slice %692 {offsets = [0, 0], sizes = [8, 96], strides = [1, 1]} : vector<8x128xf32> to vector<8x96xf32>
    %694 = arith.negf %693 : vector<8x96xf32>
    %695 = math.exp %694 : vector<8x96xf32>
    %cst_227 = arith.constant 1.000000e+00 : f32
    %696 = vector.broadcast %cst_227 : f32 to vector<8x96xf32>
    %697 = arith.addf %696, %695 : vector<8x96xf32>
    %698 = arith.divf %696, %697 : vector<8x96xf32>
    %699 = vector.extract_strided_slice %698 {offsets = [0, 0], sizes = [8, 32], strides = [1, 1]} : vector<8x96xf32> to vector<8x32xf32>
    %700 = vector.extract_strided_slice %698 {offsets = [0, 32], sizes = [8, 32], strides = [1, 1]} : vector<8x96xf32> to vector<8x32xf32>
    %701 = vector.extract_strided_slice %698 {offsets = [0, 64], sizes = [8, 32], strides = [1, 1]} : vector<8x96xf32> to vector<8x32xf32>
    %702 = vector.extract_strided_slice %692 {offsets = [0, 96], sizes = [8, 32], strides = [1, 1]} : vector<8x128xf32> to vector<8x32xf32>
    %703 = math.tanh %702 : vector<8x32xf32>
    %704 = arith.mulf %700, %663 : vector<8x32xf32>
    %705 = arith.mulf %699, %703 : vector<8x32xf32>
    %706 = arith.addf %704, %705 : vector<8x32xf32>
    %707 = math.tanh %706 : vector<8x32xf32>
    %708 = arith.mulf %701, %707 : vector<8x32xf32>
    %709 = tpu.concatenate %688, %708 in 1 : vector<8x32xf32>, vector<8x32xf32> -> vector<8x64xf32>
    %710 = arith.truncf %709 : vector<8x64xf32> to vector<8x64xbf16>
    %cst_228 = arith.constant dense<0.000000e+00> : vector<8x256xf32>
    %711 = tpu.matmul %710, %450, %cst_228 {dimension_numbers = #tpu.dot_dimension_numbers<[1], [0], [0], [1], [0, 0, 1, 1], [], []>} : vector<8x64xbf16>, vector<64x256xbf16>, vector<8x256xf32> -> vector<8x256xf32>
    %712 = vector.extract_strided_slice %711 {offsets = [0, 0], sizes = [8, 128], strides = [1, 1]} : vector<8x256xf32> to vector<8x128xf32>
    %c0_229 = arith.constant 0 : index
    %c48_230 = arith.constant 48 : index
    %c0_231 = arith.constant 0 : index
    %713 = vector.load %arg5[%c0_229, %c48_230, %c0_231] : memref<2x64x128xf32, #tpu.memory_space<vmem>>, vector<1x8x128xf32>
    %714 = vector.shape_cast %713 : vector<1x8x128xf32> to vector<8x128xf32>
    %715 = arith.addf %712, %714 : vector<8x128xf32>
    %716 = vector.extract_strided_slice %715 {offsets = [0, 0], sizes = [8, 96], strides = [1, 1]} : vector<8x128xf32> to vector<8x96xf32>
    %717 = arith.negf %716 : vector<8x96xf32>
    %718 = math.exp %717 : vector<8x96xf32>
    %cst_232 = arith.constant 1.000000e+00 : f32
    %719 = vector.broadcast %cst_232 : f32 to vector<8x96xf32>
    %720 = arith.addf %719, %718 : vector<8x96xf32>
    %721 = arith.divf %719, %720 : vector<8x96xf32>
    %722 = vector.extract_strided_slice %721 {offsets = [0, 0], sizes = [8, 32], strides = [1, 1]} : vector<8x96xf32> to vector<8x32xf32>
    %723 = vector.extract_strided_slice %721 {offsets = [0, 32], sizes = [8, 32], strides = [1, 1]} : vector<8x96xf32> to vector<8x32xf32>
    %724 = vector.extract_strided_slice %721 {offsets = [0, 64], sizes = [8, 32], strides = [1, 1]} : vector<8x96xf32> to vector<8x32xf32>
    %725 = vector.extract_strided_slice %715 {offsets = [0, 96], sizes = [8, 32], strides = [1, 1]} : vector<8x128xf32> to vector<8x32xf32>
    %726 = math.tanh %725 : vector<8x32xf32>
    %727 = arith.mulf %723, %686 : vector<8x32xf32>
    %728 = arith.mulf %722, %726 : vector<8x32xf32>
    %729 = arith.addf %727, %728 : vector<8x32xf32>
    %730 = math.tanh %729 : vector<8x32xf32>
    %731 = arith.mulf %724, %730 : vector<8x32xf32>
    %732 = vector.extract_strided_slice %711 {offsets = [0, 128], sizes = [8, 128], strides = [1, 1]} : vector<8x256xf32> to vector<8x128xf32>
    %c1_233 = arith.constant 1 : index
    %c8_234 = arith.constant 8 : index
    %c0_235 = arith.constant 0 : index
    %733 = vector.load %arg5[%c1_233, %c8_234, %c0_235] : memref<2x64x128xf32, #tpu.memory_space<vmem>>, vector<1x8x128xf32>
    %734 = vector.shape_cast %733 : vector<1x8x128xf32> to vector<8x128xf32>
    %735 = arith.addf %732, %734 : vector<8x128xf32>
    %736 = vector.extract_strided_slice %735 {offsets = [0, 0], sizes = [8, 96], strides = [1, 1]} : vector<8x128xf32> to vector<8x96xf32>
    %737 = arith.negf %736 : vector<8x96xf32>
    %738 = math.exp %737 : vector<8x96xf32>
    %cst_236 = arith.constant 1.000000e+00 : f32
    %739 = vector.broadcast %cst_236 : f32 to vector<8x96xf32>
    %740 = arith.addf %739, %738 : vector<8x96xf32>
    %741 = arith.divf %739, %740 : vector<8x96xf32>
    %742 = vector.extract_strided_slice %741 {offsets = [0, 0], sizes = [8, 32], strides = [1, 1]} : vector<8x96xf32> to vector<8x32xf32>
    %743 = vector.extract_strided_slice %741 {offsets = [0, 32], sizes = [8, 32], strides = [1, 1]} : vector<8x96xf32> to vector<8x32xf32>
    %744 = vector.extract_strided_slice %741 {offsets = [0, 64], sizes = [8, 32], strides = [1, 1]} : vector<8x96xf32> to vector<8x32xf32>
    %745 = vector.extract_strided_slice %735 {offsets = [0, 96], sizes = [8, 32], strides = [1, 1]} : vector<8x128xf32> to vector<8x32xf32>
    %746 = math.tanh %745 : vector<8x32xf32>
    %747 = arith.mulf %743, %706 : vector<8x32xf32>
    %748 = arith.mulf %742, %746 : vector<8x32xf32>
    %749 = arith.addf %747, %748 : vector<8x32xf32>
    %750 = math.tanh %749 : vector<8x32xf32>
    %751 = arith.mulf %744, %750 : vector<8x32xf32>
    %752 = tpu.concatenate %731, %751 in 1 : vector<8x32xf32>, vector<8x32xf32> -> vector<8x64xf32>
    %753 = arith.truncf %752 : vector<8x64xf32> to vector<8x64xbf16>
    %cst_237 = arith.constant dense<0.000000e+00> : vector<8x256xf32>
    %754 = tpu.matmul %753, %450, %cst_237 {dimension_numbers = #tpu.dot_dimension_numbers<[1], [0], [0], [1], [0, 0, 1, 1], [], []>} : vector<8x64xbf16>, vector<64x256xbf16>, vector<8x256xf32> -> vector<8x256xf32>
    %755 = vector.extract_strided_slice %754 {offsets = [0, 0], sizes = [8, 128], strides = [1, 1]} : vector<8x256xf32> to vector<8x128xf32>
    %c0_238 = arith.constant 0 : index
    %c56_239 = arith.constant 56 : index
    %c0_240 = arith.constant 0 : index
    %756 = vector.load %arg5[%c0_238, %c56_239, %c0_240] : memref<2x64x128xf32, #tpu.memory_space<vmem>>, vector<1x8x128xf32>
    %757 = vector.shape_cast %756 : vector<1x8x128xf32> to vector<8x128xf32>
    %758 = arith.addf %755, %757 : vector<8x128xf32>
    %759 = vector.extract_strided_slice %758 {offsets = [0, 0], sizes = [8, 96], strides = [1, 1]} : vector<8x128xf32> to vector<8x96xf32>
    %760 = arith.negf %759 : vector<8x96xf32>
    %761 = math.exp %760 : vector<8x96xf32>
    %cst_241 = arith.constant 1.000000e+00 : f32
    %762 = vector.broadcast %cst_241 : f32 to vector<8x96xf32>
    %763 = arith.addf %762, %761 : vector<8x96xf32>
    %764 = arith.divf %762, %763 : vector<8x96xf32>
    %765 = vector.extract_strided_slice %764 {offsets = [0, 0], sizes = [8, 32], strides = [1, 1]} : vector<8x96xf32> to vector<8x32xf32>
    %766 = vector.extract_strided_slice %764 {offsets = [0, 32], sizes = [8, 32], strides = [1, 1]} : vector<8x96xf32> to vector<8x32xf32>
    %767 = vector.extract_strided_slice %764 {offsets = [0, 64], sizes = [8, 32], strides = [1, 1]} : vector<8x96xf32> to vector<8x32xf32>
    %768 = vector.extract_strided_slice %758 {offsets = [0, 96], sizes = [8, 32], strides = [1, 1]} : vector<8x128xf32> to vector<8x32xf32>
    %769 = math.tanh %768 : vector<8x32xf32>
    %770 = arith.mulf %766, %729 : vector<8x32xf32>
    %771 = arith.mulf %765, %769 : vector<8x32xf32>
    %772 = arith.addf %770, %771 : vector<8x32xf32>
    %773 = math.tanh %772 : vector<8x32xf32>
    %774 = arith.mulf %767, %773 : vector<8x32xf32>
    %775 = vector.extract_strided_slice %754 {offsets = [0, 128], sizes = [8, 128], strides = [1, 1]} : vector<8x256xf32> to vector<8x128xf32>
    %c1_242 = arith.constant 1 : index
    %c0_243 = arith.constant 0 : index
    %c0_244 = arith.constant 0 : index
    %776 = vector.load %arg5[%c1_242, %c0_243, %c0_244] : memref<2x64x128xf32, #tpu.memory_space<vmem>>, vector<1x8x128xf32>
    %777 = vector.shape_cast %776 : vector<1x8x128xf32> to vector<8x128xf32>
    %778 = arith.addf %775, %777 : vector<8x128xf32>
    %779 = vector.extract_strided_slice %778 {offsets = [0, 0], sizes = [8, 96], strides = [1, 1]} : vector<8x128xf32> to vector<8x96xf32>
    %780 = arith.negf %779 : vector<8x96xf32>
    %781 = math.exp %780 : vector<8x96xf32>
    %cst_245 = arith.constant 1.000000e+00 : f32
    %782 = vector.broadcast %cst_245 : f32 to vector<8x96xf32>
    %783 = arith.addf %782, %781 : vector<8x96xf32>
    %784 = arith.divf %782, %783 : vector<8x96xf32>
    %785 = vector.extract_strided_slice %784 {offsets = [0, 0], sizes = [8, 32], strides = [1, 1]} : vector<8x96xf32> to vector<8x32xf32>
    %786 = vector.extract_strided_slice %784 {offsets = [0, 32], sizes = [8, 32], strides = [1, 1]} : vector<8x96xf32> to vector<8x32xf32>
    %787 = vector.extract_strided_slice %784 {offsets = [0, 64], sizes = [8, 32], strides = [1, 1]} : vector<8x96xf32> to vector<8x32xf32>
    %788 = vector.extract_strided_slice %778 {offsets = [0, 96], sizes = [8, 32], strides = [1, 1]} : vector<8x128xf32> to vector<8x32xf32>
    %789 = math.tanh %788 : vector<8x32xf32>
    %790 = arith.mulf %786, %749 : vector<8x32xf32>
    %791 = arith.mulf %785, %789 : vector<8x32xf32>
    %792 = arith.addf %790, %791 : vector<8x32xf32>
    %793 = math.tanh %792 : vector<8x32xf32>
    %794 = arith.mulf %787, %793 : vector<8x32xf32>
    %c0_246 = arith.constant 0 : index
    %c0_247 = arith.constant 0 : index
    %795 = vector.load %arg4[%c0_246, %c0_247] : memref<8x64xf32, #tpu.memory_space<vmem>>, vector<8x32xf32>
    tpu.vector_store %arg4[%c0_246, %c0_247], %774 {strides = array<i32>} : memref<8x64xf32, #tpu.memory_space<vmem>>, vector<8x32xf32>,
    %c0_248 = arith.constant 0 : index
    %c32_249 = arith.constant 32 : index
    %796 = vector.load %arg4[%c0_248, %c32_249] : memref<8x64xf32, #tpu.memory_space<vmem>>, vector<8x32xf32>
    tpu.vector_store %arg4[%c0_248, %c32_249], %794 {strides = array<i32>} : memref<8x64xf32, #tpu.memory_space<vmem>>, vector<8x32xf32>,
    return
  }
  func.func @transform_0(%arg0: i32) -> (i32, i32) {
    %c0_i32 = arith.constant 0 : i32
    %c0_i32_0 = arith.constant 0 : i32
    %c0_i32_1 = arith.constant 0 : i32
    return %c0_i32, %c0_i32_0 : i32, i32
  }
  func.func @transform_1(%arg0: i32) -> (i32, i32, i32) {
    %c0_i32 = arith.constant 0 : i32
    %c0_i32_0 = arith.constant 0 : i32
    %c0_i32_1 = arith.constant 0 : i32
    %c0_i32_2 = arith.constant 0 : i32
    return %c0_i32, %c0_i32_0, %c0_i32_1 : i32, i32, i32
  }
  func.func @transform_2(%arg0: i32) -> (i32, i32, i32) {
    %c0_i32 = arith.constant 0 : i32
    %c0_i32_0 = arith.constant 0 : i32
    %c0_i32_1 = arith.constant 0 : i32
    %c0_i32_2 = arith.constant 0 : i32
    return %c0_i32, %c0_i32_0, %c0_i32_1 : i32, i32, i32
  }
  func.func @transform_3(%arg0: i32) -> (i32, i32) {
    %c0_i32 = arith.constant 0 : i32
    %c0_i32_0 = arith.constant 0 : i32
    %c0_i32_1 = arith.constant 0 : i32
    return %c0_i32, %c0_i32_0 : i32, i32
  }
}

</mosaic_0001>

<bundles_post_ra>
// kernel: tpu_custom_call.1
= control target key start
LH: loop header
LB: loop body
LE: loop exit
PB: predicated region body
PF: predicated region fallthrough
CT: control target
= control target key end

     0   :  { %8 = vsyncpa [#allocation5], 0  ;;  %s3630_s0 = inlined_call_operand.vmem [shape: bf16[64,16], index: 0, kind: input, shape index: {}]   ;;  %s3631_s1 = inlined_call_operand.hbm [shape: bf16[2,128,256], index: 1, kind: input, shape index: {}]   ;;  %s3632_s2 = inlined_call_operand.vmem [shape: f32[2,1,256], index: 2, kind: input, shape index: {}]   ;;  %s3633_s3 = inlined_call_operand.hbm [shape: f32[8,64], index: 3, kind: output, shape index: {}]  }
   0x1   :  { %9 = vsyncpa [#allocation6], 0  ;;  %s16_s14 = sshll.u32 %s3631_s1, 4  ;;  %s2966_s15 = smov [#allocation4]   ;;  %s17_s14 = int_to_ptr.hbm [resolvable:$true] %s16_s14 }
   0x2   :  { %s18_s16 = sshll.u32 %s2966_s15, 4  ;;  %s2967_s17 = smov 128   ;;  %s19_s16 = int_to_ptr.vmem [resolvable:$true] %s18_s16 }
   0x3   :  { %s2968_s18 = smov 8  }
   0x4   :  { %24 = dma.hbm_to_vmem [thread:$0]  %s17_s14, 4096, %s19_s16, [#allocation5], %s2967_s17, %s2967_s17, %s2968_s18  }
   0x5   :  { %2962 = dma.done.wait [#allocation5], 4096  }
   0x6   :  { %2963 = vsyncadd [#allocation5], 4294963200  ;;  %v2426_v0 = vld [vmem:[#allocation4] sm:$0xf]  ;;  %v2618_v1 = vld [vmem:[#allocation4 + $0x4] sm:$0xf0] }
   0x7   :  { %v2434_v2 = vld [vmem:[#allocation4 + $0x4] sm:$0xf]  ;;  %v2427_v3 = vor.u32 %v2618_v1, %v2426_v0  ;;  %v2619_v4 = vld [vmem:[#allocation4 + $0x8] sm:$0xf0]  ;;  %vm72_vm0 = vcmask 130048   ;;  %v2616_v8 = vld [vmem:[%s3630_s0 + $0x10] sm:$0xff] }
   0x8   :  { %v2435_v5 = vor.u32 %v2619_v4, %v2434_v2  ;;  %v2614_v6 = vld [vmem:[%s3630_s0] sm:$0xff]  ;;  %v2615_v7 = vld [vmem:[%s3630_s0 + $0x8] sm:$0xff]  ;;  %v2617_v9 = vld [vmem:[%s3630_s0 + $0x18] sm:$0xff]  ;;  %s2969_s0 = smov 32   ;;  %s2970_s30 = smov 64   ;;  %vm223_vm9 = vcmask 261120  }
   0x9   :  { %92 = vmatpush.bf16.msra.mxu0 %v2427_v3  ;;  %v3011_v10 = vld [vmem:[%s3632_s2] ss:$0 sm:$0xff]  ;;  %v2652_v11 = vld [vmem:[%s3632_s2 + $0x1] ss:$0 sm:$0xff]  ;;  %s2971_s4 = smov 96   ;;  %vm315_vm10 = vcmask 523264  }
   0xa   :  { %141 = vmatpush.bf16.msra.mxu1 %v2435_v5  ;;  %s2398_s18 = sshll.u32 %s3633_s3, 4  ;;  %s2399_s18 = int_to_ptr.hbm [resolvable:$true] %s2398_s18 }
   0xc   :  { %2428 = vmatmul.msk.bf16.vlgmr.msra.gmra.mxu0 %vm72_vm0, %v2614_v6 }
   0xd   :  { %2436 = vmatmul.msk.bf16.vlgmr.msra.gmra.mxu1 %vm72_vm0, %v2614_v6 }
  0x1c   :  { %2429 = vmatmul.msk.bf16.gmra.mxu0 %vm72_vm0, %v2615_v7 }
  0x1d   :  { %2437 = vmatmul.msk.bf16.gmra.mxu1 %vm72_vm0, %v2615_v7 }
  0x2c   :  { %2430 = vmatmul.msk.bf16.gmra.mxu0 %vm72_vm0, %v2616_v8 }
  0x2d   :  { %2438 = vmatmul.msk.bf16.gmra.mxu1 %vm72_vm0, %v2616_v8 }
  0x3c   :  { %2431 = vmatmul.msk.bf16.gmra.mxu0 %vm72_vm0, %v2617_v9 }
  0x3d   :  { %2439 = vmatmul.msk.bf16.gmra.mxu1 %vm72_vm0, %v2617_v9  ;;  %v2468_v9 = vld [vmem:[#allocation4 + $0x70] sm:$0xf] }
  0x89   :  { %v94_v12 = vpop.f32.mrf.mxu0 }
  0x8a   :  { %v95_v13 = vadd.f32 %v3011_v10, %v94_v12  ;;  %v143_v14 = vpop.f32.mrf.mxu1  ;;  %v2626_v12 = vld [vmem:[#allocation4 + $0x74] sm:$0xf] }
  0x8b   :  { %v3017_v15 = vadd.f32 %v2652_v11, %v143_v14  ;;  %v2470_v14 = vld [vmem:[#allocation4 + $0x78] sm:$0xf0] }
  0x8c   :  { %2655 = vtanh.f32 %v95_v13  ;;  %v2440_v31 = vmul.f32 -1.442695, %v95_v13 }
  0x92   :  { %v2656_v16 = vpop.eup %2655  ;;  %v3019_v17 = vpop.f32.mrf.mxu1 }
  0x93   :  { %204 = vrot.lane.b32.xlu0 %v2656_v16, %s2969_s0  ;;  %v2460_v16 = vld [vmem:[#allocation4 + $0x60] sm:$0xf] }
  0x9a   :  { %v148_v18 = vpop.f32.mrf.mxu1 }
  0x9b   :  { %v3022_v19 = vadd.f32 %v2652_v11, %v148_v18  ;;  %v2625_v18 = vld [vmem:[#allocation4 + $0x64] sm:$0xf0] }
  0xa2   :  { %v150_v20 = vpop.f32.mrf.mxu1 }
  0xa3   :  { %v3024_v21 = vadd.f32 %v2652_v11, %v150_v20  ;;  %v3050_v20 = vor.u32 %v2626_v12, %v2470_v14 }
  0xa5   :  { %336 = vmatpush.bf16.msra.mxu3 %v3050_v20  ;;  %824 = vmatpush.bf16.msrb.mxu1 %v3050_v20 }
  0xaa   :  { %v153_v22 = vpop.f32.mrf.mxu1 }
  0xab   :  { %v3026_v23 = vadd.f32 %v2652_v11, %v153_v22  ;;  %v2624_v22 = vld [vmem:[#allocation4 + $0x64] sm:$0xf] }
  0xb2   :  { %v155_v24 = vpop.f32.mrf.mxu1 }
  0xb3   :  { %v3028_v25 = vadd.f32 %v2652_v11, %v155_v24  ;;  %v2462_v24 = vld [vmem:[#allocation4 + $0x68] sm:$0xf0] }
  0xba   :  { %v158_v26 = vpop.f32.mrf.mxu1 }
  0xbb   :  { %v3030_v27 = vadd.f32 %v2652_v11, %v158_v26  ;;  %v3053_v26 = vor.u32 %v2625_v18, %v2460_v16 }
  0xc2   :  { %v160_v28 = vpop.f32.mrf.mxu1 }
  0xc3   :  { %v161_v29 = vadd.f32 %v2652_v11, %v160_v28  ;;  %v2627_v11 = vld [vmem:[#allocation4 + $0x74] sm:$0xf0]  ;;  %v3057_v28 = vor.u32 %v2624_v22, %v2462_v24 }
  0xc4   :  { %v3048_v13 = vor.u32 %v2627_v11, %v2468_v9 }
  0xc5   :  { %2657 = vtanh.f32 %v161_v29  ;;  %v2441_v46 = vmul.f32 -1.442695, %v161_v29  ;;  %v2452_v29 = vld [vmem:[#allocation4 + $0x50] sm:$0xf]  ;;  %337 = vmatpush.bf16.msra.mxu3 %v3057_v28  ;;  %825 = vmatpush.bf16.msrb.mxu1 %v3057_v28 }
  0xc6   :  { %2659 = vpow2.f32 %v2440_v31  ;;  %323 = vmatpush.bf16.msra.mxu2 %v3048_v13  ;;  %811 = vmatpush.bf16.msrb.mxu0 %v3048_v13  ;;  %v2622_v31 = vld [vmem:[#allocation4 + $0x54] sm:$0xf] }
  0xca   :  { %324 = vmatpush.bf16.msra.mxu2 %v3053_v26  ;;  %812 = vmatpush.bf16.msrb.mxu0 %v3053_v26 }
  0xcb   :  { %v2658_v30 = vpop.eup %2657 }
  0xcc   :  { %249 = vrot.lane.b32.xlu0 %v2658_v30, %s2969_s0  ;;  %v2660_v32 = vpop.eup %2659  ;;  %v2623_v30 = vld [vmem:[#allocation4 + $0x54] sm:$0xf0] }
  0xcd   :  { %v185_v33 = vadd.f32 1.0, %v2660_v32  ;;  %v2454_v32 = vld [vmem:[#allocation4 + $0x58] sm:$0xf0] }
  0xcf   :  { %2661 = vrcp.f32 %v185_v33  ;;  %vm191_vm1 = vweird.f32 %v185_v33  ;;  %v197_v38 = vand.u32 2147483648, %v185_v33  ;;  %v195_v40 = vand.u32 2147483647, %v185_v33 }
  0xd0   :  { %2663 = vpow2.f32 %v2441_v46 }
  0xd1   :  { %v198_v41 = vor.u32 1.1754944e-38, %v197_v38  ;;  %vm196_vm4 = vcmp.eq.f32.partialorder %v195_v40, 8.507059e+37  ;;  %v2620_v38 = vld [vmem:[#allocation4 + $0x44] sm:$0xf]  ;;  %v2446_v40 = vld [vmem:[#allocation4 + $0x48] sm:$0xf0] }
  0xd5   :  { %v2662_v34 = vpop.eup %2661 }
  0xd6   :  { %v187_v35 = vmul.f32 %v2662_v34, %v185_v33  ;;  %vm192_vm2 = vweird.f32 %v2662_v34  ;;  %v2664_v47 = vpop.eup %2663  ;;  %v3061_v33 = vor.u32 %v2623_v30, %v2452_v29 }
  0xd7   :  { %vm193_vm3 = vmor %vm191_vm1, %vm192_vm2  ;;  %v230_v48 = vadd.f32 1.0, %v2664_v47 }
  0xd8   :  { %v188_v36 = vsub.f32 1.0, %v187_v35  ;;  %325 = vmatpush.bf16.msra.mxu2 %v3061_v33  ;;  %813 = vmatpush.bf16.msrb.mxu0 %v3061_v33 }
  0xd9   :  { %2665 = vrcp.f32 %v230_v48  ;;  %v242_v54 = vand.u32 2147483648, %v230_v48  ;;  %vm236_vm6 = vweird.f32 %v230_v48  ;;  %v240_v55 = vand.u32 2147483647, %v230_v48 }
  0xda   :  { %v189_v37 = vmul.f32 %v2662_v34, %v188_v36  ;;  %v2444_v36 = vld [vmem:[#allocation4 + $0x40] sm:$0xf] }
  0xdb   :  { %v243_v57 = vor.u32 1.1754944e-38, %v242_v54  ;;  %vm241_vm8 = vcmp.eq.f32.partialorder %v240_v55, 8.507059e+37 }
  0xdc   :  { %v190_v39 = vadd.f32 %v2662_v34, %v189_v37  ;;  %v2621_v37 = vld [vmem:[#allocation4 + $0x44] sm:$0xf0] }
  0xde   :  { %v194_v42 = vsel %vm193_vm3, %v2662_v34, %v190_v39  ;;  %v3065_v34 = vor.u32 %v2622_v31, %v2454_v32  ;;  %v3073_v39 = vor.u32 %v2621_v37, %v2444_v36 }
  0xdf   :  { %v199_v44 = vsel %vm196_vm4, %v198_v41, %v194_v42  ;;  %v2666_v49 = vpop.eup %2665  ;;  %v3075_v41 = vor.u32 %v2620_v38, %v2446_v40 }
  0xe0   :  { %v232_v50 = vmul.f32 %v2666_v49, %v230_v48  ;;  %vm237_vm5 = vweird.f32 %v2666_v49  ;;  %v202_v61 = vmul.f32 0.0, %v199_v44  ;;  %338 = vmatpush.bf16.msra.mxu3 %v3065_v34  ;;  %826 = vmatpush.bf16.msrb.mxu1 %v3065_v34 }
  0xe1   :  { %vm238_vm7 = vmor %vm236_vm6, %vm237_vm5  ;;  %326 = vmatpush.bf16.msra.mxu2 %v3073_v39  ;;  %814 = vmatpush.bf16.msrb.mxu0 %v3073_v39 }
  0xe2   :  { %v233_v51 = vsub.f32 1.0, %v232_v50 }
  0xe4   :  { %v234_v52 = vmul.f32 %v2666_v49, %v233_v51  ;;  %339 = vmatpush.bf16.msra.mxu3 %v3075_v41  ;;  %827 = vmatpush.bf16.msrb.mxu1 %v3075_v41 }
  0xe5   :  { %445 = vmatpush.bf16.msrb.mxu2 %v3048_v13  ;;  %1055 = vmatpush.bf16.msra.mxu0 %v3048_v13 }
  0xe6   :  { %v235_v53 = vadd.f32 %v2666_v49, %v234_v52 }
  0xe8   :  { %v239_v56 = vsel %vm238_vm7, %v2666_v49, %v235_v53  ;;  %458 = vmatpush.bf16.msrb.mxu3 %v3050_v20  ;;  %1068 = vmatpush.bf16.msra.mxu1 %v3050_v20 }
  0xe9   :  { %v244_v58 = vsel %vm241_vm8, %v243_v57, %v239_v56  ;;  %446 = vmatpush.bf16.msrb.mxu2 %v3053_v26  ;;  %1056 = vmatpush.bf16.msra.mxu0 %v3053_v26 }
  0xea   :  { %v247_v1 = vmul.f32 0.0, %v244_v58 }
  0xec   :  { %459 = vmatpush.bf16.msrb.mxu3 %v3057_v28  ;;  %1069 = vmatpush.bf16.msra.mxu1 %v3057_v28 }
  0xed   :  { %447 = vmatpush.bf16.msrb.mxu2 %v3061_v33  ;;  %1057 = vmatpush.bf16.msra.mxu0 %v3061_v33 }
  0xf0   :  { %460 = vmatpush.bf16.msrb.mxu3 %v3065_v34  ;;  %1070 = vmatpush.bf16.msra.mxu1 %v3065_v34 }
  0xf1   :  { %448 = vmatpush.bf16.msrb.mxu2 %v3073_v39  ;;  %1058 = vmatpush.bf16.msra.mxu0 %v3073_v39 }
  0xf4   :  { %461 = vmatpush.bf16.msrb.mxu3 %v3075_v41  ;;  %1071 = vmatpush.bf16.msra.mxu1 %v3075_v41 }
 0x105   :  { %v205_v43 = vpop.permute.xlu0 %204 }
 0x106   :  { %v207_v45 = vmul.f32 %v205_v43, %v199_v44 }
 0x108   :  { %209 = vrot.lane.b32.xlu1 %v207_v45, %s2969_s0  ;;  %v96_v45 = vpop.f32.mrf.mxu0 }
 0x109   :  { %v97_v46 = vadd.f32 %v3011_v10, %v96_v45 }
 0x13e   :  { %v250_v59 = vpop.permute.xlu0 %249 }
 0x13f   :  { %v252_v60 = vmul.f32 %v250_v59, %v244_v58 }
 0x141   :  { %254 = vrot.lane.b32.xlu1 %v252_v60, %s2969_s0 }
 0x17a   :  { %v210_v62 = vpop.permute.xlu1 %209 }
 0x17b   :  { %v3035_v63 = vadd.f32 %v210_v62, %v202_v61 }
 0x17d   :  { %2667 = vtanh.f32 %v3035_v63 }
 0x183   :  { %v2668_v0 = vpop.eup %2667 }
 0x184   :  { %215 = vrot.lane.b32.xlu2 %v2668_v0, %s2969_s0 }
 0x1b3   :  { %v255_v2 = vpop.permute.xlu1 %254 }
 0x1b4   :  { %v3039_v3 = vadd.f32 %v255_v2, %v247_v1 }
 0x1b6   :  { %2669 = vtanh.f32 %v3039_v3 }
 0x1bc   :  { %v2670_v4 = vpop.eup %2669 }
 0x1bd   :  { %260 = vrot.lane.b32.xlu2 %v2670_v4, %s2969_s0 }
 0x1de   :  { %v216_v5 = vpop.permute.xlu2 %215 }
 0x1df   :  { %v218_v6 = vmul.f32 %v216_v5, %v199_v44 }
 0x1e1   :  { %220 = vrot.lane.b32.xlu0 %v218_v6, %s2970_s30 }
 0x217   :  { %v261_v7 = vpop.permute.xlu2 %260 }
 0x218   :  { %v3044_v8 = vmul.f32 %v261_v7, %v244_v58 }
 0x21a   :  { %270 = vrot.lane.b32.xlu1 %v3044_v8, %s2971_s4 }
 0x253   :  { %v221_v35 = vpop.permute.xlu0 %220 }
 0x254   :  { %224 = vst.msk [vmem:[#allocation3] sm:$0xff] %vm223_vm9, %v221_v35 }
 0x28c   :  { %v271_v42 = vpop.permute.xlu1 %270 }
 0x28d   :  { %v273_v43 = vsel %vm223_vm9, %v221_v35, %v271_v42 }
 0x28e   :  { %v274_v44 = vpack.c.bf16 %v273_v43, %v273_v43 }
 0x290   :  { %2474 = vmatmul.msk.bf16.vlgmr.msra.gmra.mxu2 %vm315_vm10, %v274_v44  ;;  %2475 = vmatmul.msk.bf16.vlgmr.msra.gmra.mxu3 %vm315_vm10, %v274_v44 }
 0x291   :  { %567 = vmatpush.bf16.msra.mxu2 %v3048_v13  ;;  %580 = vmatpush.bf16.msra.mxu3 %v3050_v20 }
 0x295   :  { %568 = vmatpush.bf16.msra.mxu2 %v3053_v26  ;;  %581 = vmatpush.bf16.msra.mxu3 %v3057_v28 }
 0x299   :  { %569 = vmatpush.bf16.msra.mxu2 %v3061_v33  ;;  %582 = vmatpush.bf16.msra.mxu3 %v3065_v34 }
 0x29d   :  { %570 = vmatpush.bf16.msra.mxu2 %v3073_v39  ;;  %583 = vmatpush.bf16.msra.mxu3 %v3075_v41 }
 0x313   :  { %v328_v47 = vpop.f32.mrf.mxu2  ;;  %v341_v48 = vpop.f32.mrf.mxu3 }
 0x314   :  { %v346_v49 = vadd.f32 %v328_v47, %v97_v46  ;;  %v390_v50 = vadd.f32 %v341_v48, %v3030_v27 }
 0x316   :  { %2671 = vtanh.f32 %v346_v49  ;;  %v2476_v55 = vmul.f32 -1.442695, %v346_v49  ;;  %v2477_v59 = vmul.f32 -1.442695, %v390_v50 }
 0x317   :  { %2673 = vtanh.f32 %v390_v50 }
 0x318   :  { %2675 = vpow2.f32 %v2476_v55 }
 0x31b   :  { %v330_v51 = vpop.f32.mrf.mxu2  ;;  %v343_v52 = vpop.f32.mrf.mxu3 }
 0x31c   :  { %v2672_v53 = vpop.eup %2671 }
 0x31d   :  { %v2674_v54 = vpop.eup %2673  ;;  %369 = vrot.lane.b32.xlu2 %v2672_v53, %s2969_s0  ;;  %v99_v53 = vpop.f32.mrf.mxu0 }
 0x31e   :  { %413 = vrot.lane.b32.xlu0 %v2674_v54, %s2969_s0  ;;  %v2676_v56 = vpop.eup %2675  ;;  %v100_v54 = vadd.f32 %v3011_v10, %v99_v53 }
 0x31f   :  { %v350_v57 = vadd.f32 1.0, %v2676_v56 }
 0x321   :  { %2677 = vrcp.f32 %v350_v57  ;;  %v362_v2 = vand.u32 2147483648, %v350_v57  ;;  %vm356_vm12 = vweird.f32 %v350_v57  ;;  %v360_v4 = vand.u32 2147483647, %v350_v57 }
 0x322   :  { %2679 = vpow2.f32 %v2477_v59 }
 0x323   :  { %v363_v6 = vor.u32 1.1754944e-38, %v362_v2  ;;  %vm361_vm14 = vcmp.eq.f32.partialorder %v360_v4, 8.507059e+37 }
 0x327   :  { %v2678_v58 = vpop.eup %2677 }
 0x328   :  { %v352_v60 = vmul.f32 %v2678_v58, %v350_v57  ;;  %v2680_v62 = vpop.eup %2679  ;;  %vm357_vm11 = vweird.f32 %v2678_v58 }
 0x329   :  { %v394_v0 = vadd.f32 1.0, %v2680_v62  ;;  %vm358_vm13 = vmor %vm356_vm12, %vm357_vm11 }
 0x32a   :  { %v353_v27 = vsub.f32 1.0, %v352_v60 }
 0x32b   :  { %2681 = vrcp.f32 %v394_v0  ;;  %v406_v24 = vand.u32 2147483648, %v394_v0  ;;  %vm400_vm0 = vweird.f32 %v394_v0  ;;  %v404_v29 = vand.u32 2147483647, %v394_v0 }
 0x32c   :  { %v354_v61 = vmul.f32 %v2678_v58, %v353_v27 }
 0x32d   :  { %v407_v31 = vor.u32 1.1754944e-38, %v406_v24  ;;  %vm405_vm2 = vcmp.eq.f32.partialorder %v404_v29, 8.507059e+37 }
 0x32e   :  { %v355_v1 = vadd.f32 %v2678_v58, %v354_v61 }
 0x330   :  { %v359_v5 = vsel %vm358_vm13, %v2678_v58, %v355_v1 }
 0x331   :  { %v364_v9 = vsel %vm361_vm14, %v363_v6, %v359_v5  ;;  %v2682_v12 = vpop.eup %2681 }
 0x332   :  { %v396_v14 = vmul.f32 %v2682_v12, %v394_v0  ;;  %vm401_vm15 = vweird.f32 %v2682_v12  ;;  %v367_v37 = vmul.f32 %v364_v9, %v3035_v63 }
 0x333   :  { %vm402_vm1 = vmor %vm400_vm0, %vm401_vm15 }
 0x334   :  { %v397_v16 = vsub.f32 1.0, %v396_v14 }
 0x336   :  { %v398_v18 = vmul.f32 %v2682_v12, %v397_v16 }
 0x338   :  { %v399_v22 = vadd.f32 %v2682_v12, %v398_v18 }
 0x33a   :  { %v403_v30 = vsel %vm402_vm1, %v2682_v12, %v399_v22 }
 0x33b   :  { %v408_v35 = vsel %vm405_vm2, %v407_v31, %v403_v30 }
 0x33c   :  { %v411_v38 = vmul.f32 %v408_v35, %v3039_v3 }
 0x377   :  { %v370_v7 = vpop.permute.xlu2 %369 }
 0x378   :  { %v372_v11 = vmul.f32 %v370_v7, %v364_v9 }
 0x37a   :  { %374 = vrot.lane.b32.xlu1 %v372_v11, %s2969_s0 }
 0x390   :  { %v414_v32 = vpop.permute.xlu0 %413 }
 0x391   :  { %v416_v36 = vmul.f32 %v414_v32, %v408_v35 }
 0x393   :  { %418 = vrot.lane.b32.xlu2 %v416_v36, %s2969_s0 }
 0x3ec   :  { %v375_v40 = vpop.permute.xlu1 %374 }
 0x3ed   :  { %v419_v42 = vpop.permute.xlu2 %418  ;;  %v3116_v43 = vadd.f32 %v375_v40, %v367_v37 }
 0x3ee   :  { %v3118_v44 = vadd.f32 %v419_v42, %v411_v38 }
 0x3ef   :  { %2683 = vtanh.f32 %v3116_v43 }
 0x3f0   :  { %2685 = vtanh.f32 %v3118_v44 }
 0x3f5   :  { %v2684_v45 = vpop.eup %2683 }
 0x3f6   :  { %v2686_v46 = vpop.eup %2685  ;;  %380 = vrot.lane.b32.xlu0 %v2684_v45, %s2969_s0 }
 0x3f7   :  { %424 = vrot.lane.b32.xlu1 %v2686_v46, %s2969_s0 }
 0x468   :  { %v381_v47 = vpop.permute.xlu0 %380 }
 0x469   :  { %v425_v63 = vpop.permute.xlu1 %424  ;;  %v383_v48 = vmul.f32 %v381_v47, %v364_v9 }
 0x46a   :  { %v3124_v3 = vmul.f32 %v425_v63, %v408_v35 }
 0x46b   :  { %385 = vrot.lane.b32.xlu2 %v383_v48, %s2970_s30 }
 0x46c   :  { %433 = vrot.lane.b32.xlu0 %v3124_v3, %s2971_s4 }
 0x4c5   :  { %v386_v49 = vpop.permute.xlu2 %385 }
 0x4c6   :  { %388 = vst.msk [vmem:[#allocation3 + $0x8] sm:$0xff] %vm223_vm9, %v386_v49 }
 0x4de   :  { %v434_v50 = vpop.permute.xlu0 %433 }
 0x4df   :  { %v436_v51 = vsel %vm223_vm9, %v386_v49, %v434_v50 }
 0x4e0   :  { %v437_v52 = vpack.c.bf16 %v436_v51, %v436_v51 }
 0x4e2   :  { %2478 = vmatmul.msk.bf16.vlgmr.msrb.gmra.mxu2 %vm315_vm10, %v437_v52  ;;  %2479 = vmatmul.msk.bf16.vlgmr.msrb.gmra.mxu3 %vm315_vm10, %v437_v52 }
 0x4e3   :  { %702 = vmatpush.bf16.msrb.mxu3 %v3050_v20  ;;  %689 = vmatpush.bf16.msrb.mxu2 %v3048_v13 }
 0x4e7   :  { %703 = vmatpush.bf16.msrb.mxu3 %v3057_v28  ;;  %690 = vmatpush.bf16.msrb.mxu2 %v3053_v26 }
 0x4eb   :  { %704 = vmatpush.bf16.msrb.mxu3 %v3065_v34  ;;  %691 = vmatpush.bf16.msrb.mxu2 %v3061_v33 }
 0x4ef   :  { %705 = vmatpush.bf16.msrb.mxu3 %v3075_v41  ;;  %692 = vmatpush.bf16.msrb.mxu2 %v3073_v39 }
 0x565   :  { %v450_v55 = vpop.f32.mrf.mxu2  ;;  %v463_v56 = vpop.f32.mrf.mxu3 }
 0x566   :  { %v468_v57 = vadd.f32 %v450_v55, %v100_v54  ;;  %v512_v58 = vadd.f32 %v463_v56, %v3028_v25 }
 0x568   :  { %2687 = vtanh.f32 %v468_v57  ;;  %v2481_v62 = vmul.f32 -1.442695, %v512_v58  ;;  %v2480_v4 = vmul.f32 -1.442695, %v468_v57 }
 0x569   :  { %2689 = vtanh.f32 %v512_v58 }
 0x56a   :  { %2691 = vpow2.f32 %v2481_v62 }
 0x56d   :  { %v452_v59 = vpop.f32.mrf.mxu2  ;;  %v465_v60 = vpop.f32.mrf.mxu3 }
 0x56e   :  { %v2688_v27 = vpop.eup %2687 }
 0x56f   :  { %v2690_v61 = vpop.eup %2689  ;;  %491 = vrot.lane.b32.xlu1 %v2688_v27, %s2969_s0  ;;  %v101_v27 = vpop.f32.mrf.mxu0 }
 0x570   :  { %535 = vrot.lane.b32.xlu2 %v2690_v61, %s2969_s0  ;;  %v2692_v0 = vpop.eup %2691  ;;  %v102_v61 = vadd.f32 %v3011_v10, %v101_v27 }
 0x571   :  { %v516_v1 = vadd.f32 1.0, %v2692_v0 }
 0x573   :  { %2693 = vrcp.f32 %v516_v1  ;;  %v528_v12 = vand.u32 2147483648, %v516_v1  ;;  %vm522_vm4 = vweird.f32 %v516_v1  ;;  %v526_v14 = vand.u32 2147483647, %v516_v1 }
 0x574   :  { %2695 = vpow2.f32 %v2480_v4 }
 0x575   :  { %v529_v18 = vor.u32 1.1754944e-38, %v528_v12  ;;  %vm527_vm6 = vcmp.eq.f32.partialorder %v526_v14, 8.507059e+37 }
 0x577   :  { %v104_v27 = vpop.f32.mrf.mxu0 }
 0x579   :  { %v2694_v2 = vpop.eup %2693 }
 0x57a   :  { %v518_v5 = vmul.f32 %v2694_v2, %v516_v1  ;;  %v2696_v6 = vpop.eup %2695  ;;  %vm523_vm3 = vweird.f32 %v2694_v2 }
 0x57b   :  { %v472_v9 = vadd.f32 1.0, %v2696_v6  ;;  %vm524_vm5 = vmor %vm522_vm4, %vm523_vm3 }
 0x57c   :  { %v519_v25 = vsub.f32 1.0, %v518_v5 }
 0x57d   :  { %2697 = vrcp.f32 %v472_v9  ;;  %v484_v37 = vand.u32 2147483648, %v472_v9  ;;  %vm478_vm8 = vweird.f32 %v472_v9  ;;  %v482_v38 = vand.u32 2147483647, %v472_v9 }
 0x57e   :  { %v520_v7 = vmul.f32 %v2694_v2, %v519_v25 }
 0x57f   :  { %v485_v42 = vor.u32 1.1754944e-38, %v484_v37  ;;  %vm483_vm12 = vcmp.eq.f32.partialorder %v482_v38, 8.507059e+37 }
 0x580   :  { %v521_v11 = vadd.f32 %v2694_v2, %v520_v7 }
 0x582   :  { %v525_v16 = vsel %vm524_vm5, %v2694_v2, %v521_v11 }
 0x583   :  { %v530_v24 = vsel %vm527_vm6, %v529_v18, %v525_v16  ;;  %v2698_v29 = vpop.eup %2697 }
 0x584   :  { %v474_v31 = vmul.f32 %v2698_v29, %v472_v9  ;;  %vm479_vm7 = vweird.f32 %v2698_v29  ;;  %v533_v63 = vmul.f32 %v530_v24, %v3118_v44 }
 0x585   :  { %vm480_vm11 = vmor %vm478_vm8, %vm479_vm7 }
 0x586   :  { %v475_v32 = vsub.f32 1.0, %v474_v31 }
 0x588   :  { %v476_v35 = vmul.f32 %v2698_v29, %v475_v32 }
 0x58a   :  { %v477_v36 = vadd.f32 %v2698_v29, %v476_v35 }
 0x58c   :  { %v481_v40 = vsel %vm480_vm11, %v2698_v29, %v477_v36 }
 0x58d   :  { %v486_v46 = vsel %vm483_vm12, %v485_v42, %v481_v40 }
 0x58e   :  { %v489_v51 = vmul.f32 %v486_v46, %v3116_v43 }
 0x5ca   :  { %v536_v22 = vpop.permute.xlu2 %535 }
 0x5cb   :  { %v538_v30 = vmul.f32 %v536_v22, %v530_v24 }
 0x5cd   :  { %540 = vrot.lane.b32.xlu1 %v538_v30, %s2969_s0 }
 0x5e1   :  { %v492_v45 = vpop.permute.xlu1 %491 }
 0x5e2   :  { %v494_v47 = vmul.f32 %v492_v45, %v486_v46 }
 0x5e4   :  { %496 = vrot.lane.b32.xlu0 %v494_v47, %s2969_s0 }
 0x63f   :  { %v541_v48 = vpop.permute.xlu1 %540 }
 0x640   :  { %v3148_v49 = vadd.f32 %v541_v48, %v533_v63 }
 0x642   :  { %2699 = vtanh.f32 %v3148_v49 }
 0x648   :  { %v2700_v50 = vpop.eup %2699 }
 0x649   :  { %546 = vrot.lane.b32.xlu0 %v2700_v50, %s2969_s0 }
 0x656   :  { %v497_v52 = vpop.permute.xlu0 %496 }
 0x657   :  { %v3153_v53 = vadd.f32 %v497_v52, %v489_v51 }
 0x659   :  { %2701 = vtanh.f32 %v3153_v53 }
 0x65f   :  { %v2702_v54 = vpop.eup %2701 }
 0x660   :  { %502 = vrot.lane.b32.xlu2 %v2702_v54, %s2969_s0 }
 0x6ba   :  { %v503_v55 = vpop.permute.xlu2 %502 }
 0x6bb   :  { %v547_v44 = vpop.permute.xlu0 %546  ;;  %v505_v56 = vmul.f32 %v503_v55, %v486_v46 }
 0x6bc   :  { %v3157_v57 = vmul.f32 %v547_v44, %v530_v24 }
 0x6bd   :  { %507 = vrot.lane.b32.xlu1 %v505_v56, %s2970_s30 }
 0x6be   :  { %555 = vrot.lane.b32.xlu2 %v3157_v57, %s2971_s4 }
 0x718   :  { %v556_v58 = vpop.permute.xlu2 %555 }
 0x72f   :  { %v508_v43 = vpop.permute.xlu1 %507 }
 0x730   :  { %510 = vst.msk [vmem:[#allocation3 + $0x10] sm:$0xff] %vm223_vm9, %v508_v43  ;;  %v558_v59 = vsel %vm223_vm9, %v508_v43, %v556_v58 }
 0x731   :  { %v559_v60 = vpack.c.bf16 %v558_v59, %v558_v59 }
 0x733   :  { %2482 = vmatmul.msk.bf16.vlgmr.msra.gmra.mxu2 %vm315_vm10, %v559_v60  ;;  %2483 = vmatmul.msk.bf16.vlgmr.msra.gmra.mxu3 %vm315_vm10, %v559_v60 }
 0x734   :  { %933 = vmatpush.bf16.msra.mxu2 %v3048_v13  ;;  %946 = vmatpush.bf16.msra.mxu3 %v3050_v20 }
 0x738   :  { %934 = vmatpush.bf16.msra.mxu2 %v3053_v26  ;;  %947 = vmatpush.bf16.msra.mxu3 %v3057_v28 }
 0x73c   :  { %935 = vmatpush.bf16.msra.mxu2 %v3061_v33  ;;  %948 = vmatpush.bf16.msra.mxu3 %v3065_v34 }
 0x740   :  { %936 = vmatpush.bf16.msra.mxu2 %v3073_v39  ;;  %949 = vmatpush.bf16.msra.mxu3 %v3075_v41 }
 0x7b6   :  { %v572_v62 = vpop.f32.mrf.mxu2  ;;  %v585_v0 = vpop.f32.mrf.mxu3 }
 0x7b7   :  { %v590_v13 = vadd.f32 %v572_v62, %v102_v61  ;;  %v634_v20 = vadd.f32 %v585_v0, %v3026_v23  ;;  %v105_v61 = vadd.f32 %v3011_v10, %v104_v27 }
 0x7b9   :  { %2703 = vtanh.f32 %v590_v13  ;;  %v2484_v34 = vmul.f32 -1.442695, %v590_v13  ;;  %v2485_v39 = vmul.f32 -1.442695, %v634_v20 }
 0x7ba   :  { %2705 = vtanh.f32 %v634_v20 }
 0x7bb   :  { %2707 = vpow2.f32 %v2484_v34 }
 0x7bc   :  { %2709 = vpow2.f32 %v2485_v39 }
 0x7be   :  { %v574_v26 = vpop.f32.mrf.mxu2  ;;  %v587_v28 = vpop.f32.mrf.mxu3 }
 0x7bf   :  { %v2704_v1 = vpop.eup %2703 }
 0x7c0   :  { %v2706_v33 = vpop.eup %2705  ;;  %613 = vrot.lane.b32.xlu0 %v2704_v1, %s2969_s0 }
 0x7c1   :  { %657 = vrot.lane.b32.xlu1 %v2706_v33, %s2969_s0  ;;  %v2708_v41 = vpop.eup %2707 }
 0x7c2   :  { %v2710_v2 = vpop.eup %2709  ;;  %v594_v4 = vadd.f32 1.0, %v2708_v41 }
 0x7c3   :  { %v638_v5 = vadd.f32 1.0, %v2710_v2 }
 0x7c4   :  { %2711 = vrcp.f32 %v594_v4  ;;  %v606_v22 = vand.u32 2147483648, %v594_v4  ;;  %vm600_vm15 = vweird.f32 %v594_v4  ;;  %v604_v29 = vand.u32 2147483647, %v594_v4 }
 0x7c5   :  { %2713 = vrcp.f32 %v638_v5  ;;  %v650_v24 = vand.u32 2147483648, %v638_v5  ;;  %vm644_vm0 = vweird.f32 %v638_v5  ;;  %v648_v30 = vand.u32 2147483647, %v638_v5 }
 0x7c6   :  { %v607_v35 = vor.u32 1.1754944e-38, %v606_v22  ;;  %vm605_vm3 = vcmp.eq.f32.partialorder %v604_v29, 8.507059e+37 }
 0x7c7   :  { %v651_v36 = vor.u32 1.1754944e-38, %v650_v24  ;;  %vm649_vm4 = vcmp.eq.f32.partialorder %v648_v30, 8.507059e+37 }
 0x7ca   :  { %v2712_v23 = vpop.eup %2711 }
 0x7cb   :  { %v2714_v25 = vpop.eup %2713  ;;  %v596_v6 = vmul.f32 %v2712_v23, %v594_v4  ;;  %vm601_vm13 = vweird.f32 %v2712_v23 }
 0x7cc   :  { %v640_v7 = vmul.f32 %v2714_v25, %v638_v5  ;;  %vm645_vm14 = vweird.f32 %v2714_v25  ;;  %vm602_vm1 = vmor %vm600_vm15, %vm601_vm13 }
 0x7cd   :  { %v597_v9 = vsub.f32 1.0, %v596_v6  ;;  %vm646_vm2 = vmor %vm644_vm0, %vm645_vm14 }
 0x7ce   :  { %v641_v11 = vsub.f32 1.0, %v640_v7 }
 0x7cf   :  { %v598_v12 = vmul.f32 %v2712_v23, %v597_v9 }
 0x7d0   :  { %v642_v14 = vmul.f32 %v2714_v25, %v641_v11 }
 0x7d1   :  { %v599_v16 = vadd.f32 %v2712_v23, %v598_v12 }
 0x7d2   :  { %v643_v18 = vadd.f32 %v2714_v25, %v642_v14 }
 0x7d3   :  { %v603_v31 = vsel %vm602_vm1, %v2712_v23, %v599_v16 }
 0x7d4   :  { %v647_v32 = vsel %vm646_vm2, %v2714_v25, %v643_v18  ;;  %v608_v38 = vsel %vm605_vm3, %v607_v35, %v603_v31 }
 0x7d5   :  { %v652_v42 = vsel %vm649_vm4, %v651_v36, %v647_v32  ;;  %v611_v47 = vmul.f32 %v608_v38, %v3153_v53 }
 0x7d6   :  { %v655_v51 = vmul.f32 %v652_v42, %v3148_v49 }
 0x832   :  { %v614_v37 = vpop.permute.xlu0 %613 }
 0x833   :  { %v658_v40 = vpop.permute.xlu1 %657  ;;  %v616_v45 = vmul.f32 %v614_v37, %v608_v38 }
 0x834   :  { %v660_v46 = vmul.f32 %v658_v40, %v652_v42 }
 0x835   :  { %618 = vrot.lane.b32.xlu2 %v616_v45, %s2969_s0 }
 0x836   :  { %662 = vrot.lane.b32.xlu0 %v660_v46, %s2969_s0 }
 0x88f   :  { %v619_v63 = vpop.permute.xlu2 %618 }
 0x890   :  { %v3181_v48 = vadd.f32 %v619_v63, %v611_v47 }
 0x892   :  { %2715 = vtanh.f32 %v3181_v48 }
 0x898   :  { %v2716_v50 = vpop.eup %2715 }
 0x899   :  { %624 = vrot.lane.b32.xlu1 %v2716_v50, %s2969_s0 }
 0x8a8   :  { %v663_v52 = vpop.permute.xlu0 %662 }
 0x8a9   :  { %v3186_v54 = vadd.f32 %v663_v52, %v655_v51 }
 0x8ab   :  { %2717 = vtanh.f32 %v3186_v54 }
 0x8b1   :  { %v2718_v55 = vpop.eup %2717 }
 0x8b2   :  { %668 = vrot.lane.b32.xlu2 %v2718_v55, %s2969_s0 }
 0x90b   :  { %v625_v44 = vpop.permute.xlu1 %624 }
 0x90c   :  { %v669_v53 = vpop.permute.xlu2 %668  ;;  %v627_v56 = vmul.f32 %v625_v44, %v608_v38 }
 0x90d   :  { %v3190_v58 = vmul.f32 %v669_v53, %v652_v42 }
 0x90e   :  { %629 = vrot.lane.b32.xlu0 %v627_v56, %s2970_s30 }
 0x90f   :  { %677 = vrot.lane.b32.xlu1 %v3190_v58, %s2971_s4 }
 0x980   :  { %v630_v43 = vpop.permute.xlu0 %629 }
 0x981   :  { %632 = vst.msk [vmem:[#allocation3 + $0x18] sm:$0xff] %vm223_vm9, %v630_v43  ;;  %v678_v49 = vpop.permute.xlu1 %677 }
 0x982   :  { %v680_v59 = vsel %vm223_vm9, %v630_v43, %v678_v49 }
 0x983   :  { %v681_v60 = vpack.c.bf16 %v680_v59, %v680_v59 }
 0x985   :  { %2486 = vmatmul.msk.bf16.vlgmr.msrb.gmra.mxu2 %vm315_vm10, %v681_v60  ;;  %2487 = vmatmul.msk.bf16.vlgmr.msrb.gmra.mxu3 %vm315_vm10, %v681_v60  ;;  %v106_v60 = vpop.f32.mrf.mxu0 }
 0x98d   :  { %v3224_v27 = vpop.f32.mrf.mxu0 }
 0xa08   :  { %v694_v62 = vpop.f32.mrf.mxu2  ;;  %v707_v0 = vpop.f32.mrf.mxu3 }
 0xa09   :  { %v712_v13 = vadd.f32 %v694_v62, %v105_v61  ;;  %v756_v20 = vadd.f32 %v707_v0, %v3024_v21  ;;  %v3226_v61 = vpop.f32.mrf.mxu0  ;;  %v3231_v62 = vld [vmem:[%s3632_s2] ss:$0 sm:$0xff] }
 0xa0a   :  { %v107_v0 = vadd.f32 %v3231_v62, %v106_v60  ;;  %v2516_v60 = vld [vmem:[#allocation4 + $0x80] sm:$0xf] }
 0xa0b   :  { %2719 = vtanh.f32 %v712_v13  ;;  %v2488_v34 = vmul.f32 -1.442695, %v712_v13  ;;  %v2489_v2 = vmul.f32 -1.442695, %v756_v20 }
 0xa0c   :  { %2721 = vtanh.f32 %v756_v20 }
 0xa0d   :  { %2723 = vpow2.f32 %v2488_v34 }
 0xa10   :  { %v696_v26 = vpop.f32.mrf.mxu2  ;;  %v709_v28 = vpop.f32.mrf.mxu3 }
 0xa11   :  { %v2720_v1 = vpop.eup %2719 }
 0xa12   :  { %v2722_v33 = vpop.eup %2721  ;;  %735 = vrot.lane.b32.xlu2 %v2720_v1, %s2969_s0 }
 0xa13   :  { %779 = vrot.lane.b32.xlu0 %v2722_v33, %s2969_s0  ;;  %v2724_v39 = vpop.eup %2723 }
 0xa14   :  { %v716_v41 = vadd.f32 1.0, %v2724_v39 }
 0xa16   :  { %2725 = vrcp.f32 %v716_v41  ;;  %v728_v7 = vand.u32 2147483648, %v716_v41  ;;  %vm722_vm6 = vweird.f32 %v716_v41  ;;  %v726_v9 = vand.u32 2147483647, %v716_v41 }
 0xa17   :  { %2727 = vpow2.f32 %v2489_v2 }
 0xa18   :  { %v729_v12 = vor.u32 1.1754944e-38, %v728_v7  ;;  %vm727_vm8 = vcmp.eq.f32.partialorder %v726_v9, 8.507059e+37 }
 0xa1c   :  { %v2726_v10 = vpop.eup %2725 }
 0xa1d   :  { %v718_v4 = vmul.f32 %v2726_v10, %v716_v41  ;;  %v2728_v23 = vpop.eup %2727  ;;  %vm723_vm5 = vweird.f32 %v2726_v10 }
 0xa1e   :  { %v760_v25 = vadd.f32 1.0, %v2728_v23  ;;  %vm724_vm7 = vmor %vm722_vm6, %vm723_vm5 }
 0xa1f   :  { %v719_v21 = vsub.f32 1.0, %v718_v4 }
 0xa20   :  { %2729 = vrcp.f32 %v760_v25  ;;  %v772_v32 = vand.u32 2147483648, %v760_v25  ;;  %vm766_vm12 = vweird.f32 %v760_v25  ;;  %v770_v35 = vand.u32 2147483647, %v760_v25 }
 0xa21   :  { %v720_v5 = vmul.f32 %v2726_v10, %v719_v21 }
 0xa22   :  { %v773_v37 = vor.u32 1.1754944e-38, %v772_v32  ;;  %vm771_vm14 = vcmp.eq.f32.partialorder %v770_v35, 8.507059e+37 }
 0xa23   :  { %v721_v6 = vadd.f32 %v2726_v10, %v720_v5 }
 0xa25   :  { %v725_v11 = vsel %vm724_vm7, %v2726_v10, %v721_v6 }
 0xa26   :  { %v730_v16 = vsel %vm727_vm8, %v729_v12, %v725_v11  ;;  %v2730_v22 = vpop.eup %2729 }
 0xa27   :  { %v762_v24 = vmul.f32 %v2730_v22, %v760_v25  ;;  %vm767_vm11 = vweird.f32 %v2730_v22  ;;  %v733_v45 = vmul.f32 %v730_v16, %v3181_v48 }
 0xa28   :  { %vm768_vm13 = vmor %vm766_vm12, %vm767_vm11 }
 0xa29   :  { %v763_v29 = vsub.f32 1.0, %v762_v24 }
 0xa2b   :  { %v764_v30 = vmul.f32 %v2730_v22, %v763_v29 }
 0xa2d   :  { %v765_v31 = vadd.f32 %v2730_v22, %v764_v30 }
 0xa2f   :  { %v769_v36 = vsel %vm768_vm13, %v2730_v22, %v765_v31 }
 0xa30   :  { %v774_v40 = vsel %vm771_vm14, %v773_v37, %v769_v36 }
 0xa31   :  { %v777_v46 = vmul.f32 %v774_v40, %v3186_v54 }
 0xa6c   :  { %v736_v14 = vpop.permute.xlu2 %735 }
 0xa6d   :  { %v738_v18 = vmul.f32 %v736_v14, %v730_v16 }
 0xa6f   :  { %740 = vrot.lane.b32.xlu1 %v738_v18, %s2969_s0 }
 0xa85   :  { %v780_v38 = vpop.permute.xlu0 %779 }
 0xa86   :  { %v782_v42 = vmul.f32 %v780_v38, %v774_v40 }
 0xa88   :  { %784 = vrot.lane.b32.xlu2 %v782_v42, %s2969_s0 }
 0xae1   :  { %v741_v47 = vpop.permute.xlu1 %740 }
 0xae2   :  { %v785_v63 = vpop.permute.xlu2 %784  ;;  %v3207_v50 = vadd.f32 %v741_v47, %v733_v45 }
 0xae3   :  { %v3209_v51 = vadd.f32 %v785_v63, %v777_v46 }
 0xae4   :  { %2731 = vtanh.f32 %v3207_v50 }
 0xae5   :  { %2733 = vtanh.f32 %v3209_v51 }
 0xaea   :  { %v2732_v52 = vpop.eup %2731 }
 0xaeb   :  { %v2734_v55 = vpop.eup %2733  ;;  %746 = vrot.lane.b32.xlu0 %v2732_v52, %s2969_s0 }
 0xaec   :  { %790 = vrot.lane.b32.xlu1 %v2734_v55, %s2969_s0 }
 0xb5d   :  { %v747_v44 = vpop.permute.xlu0 %746 }
 0xb5e   :  { %v791_v48 = vpop.permute.xlu1 %790  ;;  %v749_v53 = vmul.f32 %v747_v44, %v730_v16 }
 0xb5f   :  { %v3215_v54 = vmul.f32 %v791_v48, %v774_v40 }
 0xb60   :  { %751 = vrot.lane.b32.xlu2 %v749_v53, %s2970_s30 }
 0xb61   :  { %799 = vrot.lane.b32.xlu0 %v3215_v54, %s2971_s4 }
 0xbba   :  { %v752_v56 = vpop.permute.xlu2 %751 }
 0xbbb   :  { %754 = vst.msk [vmem:[#allocation3 + $0x20] sm:$0xff] %vm223_vm9, %v752_v56 }
 0xbd3   :  { %v800_v43 = vpop.permute.xlu0 %799 }
 0xbd4   :  { %v802_v49 = vsel %vm223_vm9, %v752_v56, %v800_v43 }
 0xbd5   :  { %v803_v59 = vpack.c.bf16 %v802_v49, %v802_v49 }
 0xbd7   :  { %2490 = vmatmul.msk.bf16.vlgmr.msrb.gmra.mxu0 %vm315_vm10, %v803_v59  ;;  %2491 = vmatmul.msk.bf16.vlgmr.msrb.gmra.mxu1 %vm315_vm10, %v803_v59  ;;  %v2520_v59 = vld [vmem:[#allocation4 + $0x90] sm:$0xf] }
 0xc54   :  { %v816_v13 = vpop.f32.mrf.mxu0  ;;  %v829_v20 = vpop.f32.mrf.mxu1 }
 0xc55   :  { %v834_v26 = vadd.f32 %v816_v13, %v107_v0  ;;  %v878_v28 = vadd.f32 %v829_v20, %v3022_v19  ;;  %v2628_v13 = vld [vmem:[#allocation4 + $0x84] sm:$0xf0] }
 0xc56   :  { %v2517_v20 = vor.u32 %v2628_v13, %v2516_v60 }
 0xc57   :  { %2735 = vtanh.f32 %v834_v26  ;;  %v2493_v41 = vmul.f32 -1.442695, %v878_v28  ;;  %v2492_v21 = vmul.f32 -1.442695, %v834_v26 }
 0xc58   :  { %2737 = vtanh.f32 %v878_v28 }
 0xc59   :  { %2739 = vpow2.f32 %v2493_v41 }
 0xc5c   :  { %v818_v1 = vpop.f32.mrf.mxu0  ;;  %v831_v33 = vpop.f32.mrf.mxu1 }
 0xc5d   :  { %v2736_v34 = vpop.eup %2735 }
 0xc5e   :  { %v2738_v39 = vpop.eup %2737  ;;  %857 = vrot.lane.b32.xlu1 %v2736_v34, %s2969_s0  ;;  %v1166_v34 = vld [vmem:[#allocation3 + $0x8] sm:$0xff] }
 0xc5f   :  { %901 = vrot.lane.b32.xlu2 %v2738_v39, %s2969_s0  ;;  %v2740_v10 = vpop.eup %2739  ;;  %v1165_v39 = vld [vmem:[#allocation3] sm:$0xff] }
 0xc60   :  { %v882_v2 = vadd.f32 1.0, %v2740_v10  ;;  %v3258_v41 = vpack.c.bf16 %v1166_v34, %v1165_v39  ;;  %v1168_v10 = vld [vmem:[#allocation3 + $0x18] sm:$0xff] }
 0xc62   :  { %2741 = vrcp.f32 %v882_v2  ;;  %v894_v9 = vand.u32 2147483648, %v882_v2  ;;  %vm888_vm0 = vweird.f32 %v882_v2  ;;  %v892_v11 = vand.u32 2147483647, %v882_v2 }
 0xc63   :  { %2743 = vpow2.f32 %v2492_v21 }
 0xc64   :  { %v895_v14 = vor.u32 1.1754944e-38, %v894_v9  ;;  %vm893_vm2 = vcmp.eq.f32.partialorder %v892_v11, 8.507059e+37 }
 0xc68   :  { %v2742_v4 = vpop.eup %2741 }
 0xc69   :  { %v884_v5 = vmul.f32 %v2742_v4, %v882_v2  ;;  %v2744_v23 = vpop.eup %2743  ;;  %vm889_vm15 = vweird.f32 %v2742_v4  ;;  %v1167_v2 = vld [vmem:[#allocation3 + $0x10] sm:$0xff] }
 0xc6a   :  { %v838_v6 = vadd.f32 1.0, %v2744_v23  ;;  %vm890_vm1 = vmor %vm888_vm0, %vm889_vm15  ;;  %v2912_v23 = vld [vmem:[%s3632_s2 + $0x1] ss:$0 sm:$0xff] }
 0xc6b   :  { %v885_v19 = vsub.f32 1.0, %v884_v5  ;;  %v1169_v5 = vld [vmem:[#allocation3 + $0x20] sm:$0xff] }
 0xc6c   :  { %2745 = vrcp.f32 %v838_v6  ;;  %v850_v35 = vand.u32 2147483648, %v838_v6  ;;  %vm844_vm4 = vweird.f32 %v838_v6  ;;  %v848_v36 = vand.u32 2147483647, %v838_v6 }
 0xc6d   :  { %v886_v25 = vmul.f32 %v2742_v4, %v885_v19 }
 0xc6e   :  { %v851_v38 = vor.u32 1.1754944e-38, %v850_v35  ;;  %vm849_vm6 = vcmp.eq.f32.partialorder %v848_v36, 8.507059e+37 }
 0xc6f   :  { %v887_v7 = vadd.f32 %v2742_v4, %v886_v25  ;;  %v146_v25 = vadd.f32 %v2912_v23, %v3019_v17 }
 0xc71   :  { %v891_v12 = vsel %vm890_vm1, %v2742_v4, %v887_v7  ;;  %v3262_v4 = vpack.c.bf16 %v1168_v10, %v1167_v2 }
 0xc72   :  { %v896_v18 = vsel %vm893_vm2, %v895_v14, %v891_v12  ;;  %v2746_v22 = vpop.eup %2745 }
 0xc73   :  { %v840_v29 = vmul.f32 %v2746_v22, %v838_v6  ;;  %vm845_vm3 = vweird.f32 %v2746_v22  ;;  %v899_v46 = vmul.f32 %v896_v18, %v3209_v51  ;;  %v110_v6 = vadd.f32 %v3231_v62, %v3224_v27 }
 0xc74   :  { %vm846_vm5 = vmor %vm844_vm4, %vm845_vm3 }
 0xc75   :  { %v841_v30 = vsub.f32 1.0, %v840_v29 }
 0xc77   :  { %v842_v31 = vmul.f32 %v2746_v22, %v841_v30 }
 0xc79   :  { %v843_v32 = vadd.f32 %v2746_v22, %v842_v31 }
 0xc7b   :  { %v847_v37 = vsel %vm846_vm5, %v2746_v22, %v843_v32 }
 0xc7c   :  { %v852_v42 = vsel %vm849_vm6, %v851_v38, %v847_v37 }
 0xc7d   :  { %v855_v55 = vmul.f32 %v852_v42, %v3207_v50  ;;  %v2629_v50 = vld [vmem:[#allocation4 + $0x94] sm:$0xf0] }
 0xc7e   :  { %v2521_v0 = vor.u32 %v2629_v50, %v2520_v59 }
 0xc80   :  { %1281 = vmatpush.bf16.msrb.mxu3 %v2521_v0 }
 0xc84   :  { %1282 = vmatpush.bf16.msrb.mxu3 %v2517_v20 }
 0xcb9   :  { %v902_v16 = vpop.permute.xlu2 %901 }
 0xcba   :  { %v904_v24 = vmul.f32 %v902_v16, %v896_v18 }
 0xcbc   :  { %906 = vrot.lane.b32.xlu1 %v904_v24, %s2969_s0 }
 0xcd0   :  { %v858_v40 = vpop.permute.xlu1 %857 }
 0xcd1   :  { %v860_v45 = vmul.f32 %v858_v40, %v852_v42 }
 0xcd3   :  { %862 = vrot.lane.b32.xlu0 %v860_v45, %s2969_s0 }
 0xd2e   :  { %v907_v47 = vpop.permute.xlu1 %906 }
 0xd2f   :  { %v3240_v63 = vadd.f32 %v907_v47, %v899_v46 }
 0xd31   :  { %2747 = vtanh.f32 %v3240_v63 }
 0xd37   :  { %v2748_v52 = vpop.eup %2747 }
 0xd38   :  { %912 = vrot.lane.b32.xlu0 %v2748_v52, %s2969_s0 }
 0xd45   :  { %v863_v44 = vpop.permute.xlu0 %862 }
 0xd46   :  { %v3245_v48 = vadd.f32 %v863_v44, %v855_v55 }
 0xd48   :  { %2749 = vtanh.f32 %v3245_v48 }
 0xd4e   :  { %v2750_v53 = vpop.eup %2749 }
 0xd4f   :  { %868 = vrot.lane.b32.xlu2 %v2750_v53, %s2969_s0 }
 0xda9   :  { %v869_v56 = vpop.permute.xlu2 %868 }
 0xdaa   :  { %v913_v51 = vpop.permute.xlu0 %912  ;;  %v871_v43 = vmul.f32 %v869_v56, %v852_v42 }
 0xdab   :  { %v3249_v49 = vmul.f32 %v913_v51, %v896_v18 }
 0xdac   :  { %873 = vrot.lane.b32.xlu1 %v871_v43, %s2970_s30 }
 0xdad   :  { %921 = vrot.lane.b32.xlu2 %v3249_v49, %s2971_s4 }
 0xe07   :  { %v922_v26 = vpop.permute.xlu2 %921 }
 0xe1e   :  { %v874_v28 = vpop.permute.xlu1 %873 }
 0xe1f   :  { %876 = vst.msk [vmem:[#allocation3 + $0x28] sm:$0xff] %vm223_vm9, %v874_v28  ;;  %v924_v1 = vsel %vm223_vm9, %v874_v28, %v922_v26 }
 0xe20   :  { %v925_v33 = vpack.c.bf16 %v924_v1, %v924_v1 }
 0xe22   :  { %2494 = vmatmul.msk.bf16.vlgmr.msra.gmra.mxu2 %vm315_vm10, %v925_v33  ;;  %2495 = vmatmul.msk.bf16.vlgmr.msra.gmra.mxu3 %vm315_vm10, %v925_v33 }
 0xe26   :  { %v1170_v21 = vld [vmem:[#allocation3 + $0x28] sm:$0xff] }
 0xe27   :  { %v3266_v19 = vpack.c.bf16 %v1170_v21, %v1169_v5 }
 0xe32   :  { %2522 = vmatmul.msk.bf16.vlgmr.msrb.gmra.mxu3 %vm223_vm9, %v3258_v41 }
 0xe42   :  { %2523 = vmatmul.msk.bf16.gmra.mxu3 %vm223_vm9, %v3262_v4 }
 0xe52   :  { %2524 = vmatmul.msk.bf16.gmra.mxu3 %vm223_vm9, %v3266_v19 }
 0xea5   :  { %v938_v7 = vpop.f32.mrf.mxu2  ;;  %v951_v9 = vpop.f32.mrf.mxu3 }
 0xea6   :  { %v956_v11 = vadd.f32 %v938_v7, %v110_v6  ;;  %v1000_v12 = vadd.f32 %v951_v9, %v146_v25  ;;  %v2545_v6 = vld [vmem:[#allocation4 + $0x94] sm:$0xf]  ;;  %v2633_v7 = vld [vmem:[#allocation4 + $0x98] sm:$0xf0]  ;;  %v2541_v9 = vld [vmem:[#allocation4 + $0x84] sm:$0xf] }
 0xea8   :  { %2751 = vtanh.f32 %v956_v11  ;;  %v2496_v24 = vmul.f32 -1.442695, %v956_v11  ;;  %v2497_v29 = vmul.f32 -1.442695, %v1000_v12  ;;  %v2632_v11 = vld [vmem:[#allocation4 + $0x88] sm:$0xf0] }
 0xea9   :  { %2753 = vtanh.f32 %v1000_v12  ;;  %v2542_v12 = vor.u32 %v2632_v11, %v2541_v9  ;;  %v2635_v9 = vld [vmem:[#allocation4 + $0xb8] sm:$0xf0] }
 0xeaa   :  { %2755 = vpow2.f32 %v2496_v24  ;;  %v112_v24 = vadd.f32 %v3231_v62, %v3226_v61 }
 0xeab   :  { %2757 = vpow2.f32 %v2497_v29 }
 0xead   :  { %v940_v14 = vpop.f32.mrf.mxu2  ;;  %v953_v16 = vpop.f32.mrf.mxu3 }
 0xeae   :  { %v2752_v18 = vpop.eup %2751 }
 0xeaf   :  { %v2754_v22 = vpop.eup %2753  ;;  %979 = vrot.lane.b32.xlu0 %v2752_v18, %s2969_s0 }
 0xeb0   :  { %1023 = vrot.lane.b32.xlu1 %v2754_v22, %s2969_s0  ;;  %v2756_v17 = vpop.eup %2755 }
 0xeb1   :  { %v2758_v27 = vpop.eup %2757  ;;  %v960_v30 = vadd.f32 1.0, %v2756_v17 }
 0xeb2   :  { %v1004_v31 = vadd.f32 1.0, %v2758_v27 }
 0xeb3   :  { %2759 = vrcp.f32 %v960_v30  ;;  %v972_v52 = vand.u32 2147483648, %v960_v30  ;;  %vm966_vm11 = vweird.f32 %v960_v30  ;;  %v970_v44 = vand.u32 2147483647, %v960_v30 }
 0xeb4   :  { %2761 = vrcp.f32 %v1004_v31  ;;  %v1016_v55 = vand.u32 2147483648, %v1004_v31  ;;  %vm1010_vm12 = vweird.f32 %v1004_v31  ;;  %v1014_v53 = vand.u32 2147483647, %v1004_v31 }
 0xeb5   :  { %v973_v43 = vor.u32 1.1754944e-38, %v972_v52  ;;  %vm971_vm15 = vcmp.eq.f32.partialorder %v970_v44, 8.507059e+37 }
 0xeb6   :  { %v1017_v59 = vor.u32 1.1754944e-38, %v1016_v55  ;;  %vm1015_vm0 = vcmp.eq.f32.partialorder %v1014_v53, 8.507059e+37 }
 0xeb9   :  { %v2760_v32 = vpop.eup %2759 }
 0xeba   :  { %v2762_v35 = vpop.eup %2761  ;;  %v962_v36 = vmul.f32 %v2760_v32, %v960_v30  ;;  %vm967_vm7 = vweird.f32 %v2760_v32 }
 0xebb   :  { %v1006_v37 = vmul.f32 %v2762_v35, %v1004_v31  ;;  %vm1011_vm8 = vweird.f32 %v2762_v35  ;;  %vm968_vm13 = vmor %vm966_vm11, %vm967_vm7 }
 0xebc   :  { %v963_v38 = vsub.f32 1.0, %v962_v36  ;;  %vm1012_vm14 = vmor %vm1010_vm12, %vm1011_vm8 }
 0xebd   :  { %v1007_v40 = vsub.f32 1.0, %v1006_v37 }
 0xebe   :  { %v964_v42 = vmul.f32 %v2760_v32, %v963_v38 }
 0xebf   :  { %v1008_v45 = vmul.f32 %v2762_v35, %v1007_v40 }
 0xec0   :  { %v965_v46 = vadd.f32 %v2760_v32, %v964_v42 }
 0xec1   :  { %v1009_v47 = vadd.f32 %v2762_v35, %v1008_v45 }
 0xec2   :  { %v969_v56 = vsel %vm968_vm13, %v2760_v32, %v965_v46 }
 0xec3   :  { %v1013_v51 = vsel %vm1012_vm14, %v2762_v35, %v1009_v47  ;;  %v974_v60 = vsel %vm971_vm15, %v973_v43, %v969_v56 }
 0xec4   :  { %v1018_v13 = vsel %vm1015_vm0, %v1017_v59, %v1013_v51  ;;  %v977_v28 = vmul.f32 %v974_v60, %v3245_v48 }
 0xec5   :  { %v1021_v39 = vmul.f32 %v1018_v13, %v3240_v63  ;;  %v2546_v63 = vor.u32 %v2633_v7, %v2545_v6 }
 0xec7   :  { %1392 = vmatpush.bf16.msrb.mxu1 %v2546_v63 }
 0xecb   :  { %1393 = vmatpush.bf16.msrb.mxu1 %v2542_v12 }
 0xf21   :  { %v980_v50 = vpop.permute.xlu0 %979 }
 0xf22   :  { %v1024_v0 = vpop.permute.xlu1 %1023  ;;  %v982_v20 = vmul.f32 %v980_v50, %v974_v60 }
 0xf23   :  { %v1026_v26 = vmul.f32 %v1024_v0, %v1018_v13 }
 0xf24   :  { %984 = vrot.lane.b32.xlu2 %v982_v20, %s2969_s0 }
 0xf25   :  { %1028 = vrot.lane.b32.xlu0 %v1026_v26, %s2969_s0 }
 0xf7e   :  { %v985_v1 = vpop.permute.xlu2 %984 }
 0xf7f   :  { %v3281_v33 = vadd.f32 %v985_v1, %v977_v28 }
 0xf81   :  { %2763 = vtanh.f32 %v3281_v33 }
 0xf87   :  { %v2764_v34 = vpop.eup %2763 }
 0xf88   :  { %990 = vrot.lane.b32.xlu1 %v2764_v34, %s2969_s0 }
 0xf97   :  { %v1029_v10 = vpop.permute.xlu0 %1028 }
 0xf98   :  { %v3286_v2 = vadd.f32 %v1029_v10, %v1021_v39 }
 0xf9a   :  { %2765 = vtanh.f32 %v3286_v2 }
 0xfa0   :  { %v2766_v21 = vpop.eup %2765 }
 0xfa1   :  { %1034 = vrot.lane.b32.xlu2 %v2766_v21, %s2969_s0 }
 0xffa   :  { %v991_v5 = vpop.permute.xlu1 %990 }
 0xffb   :  { %v1035_v48 = vpop.permute.xlu2 %1034  ;;  %v993_v23 = vmul.f32 %v991_v5, %v974_v60 }
 0xffc   :  { %v1037_v25 = vmul.f32 %v1035_v48, %v1018_v13 }
 0xffd   :  { %995 = vrot.lane.b32.xlu0 %v993_v23, %s2970_s30 }
 0xffe   :  { %1043 = vrot.lane.b32.xlu1 %v1037_v25, %s2971_s4 }
0x106f   :  { %v996_v14 = vpop.permute.xlu0 %995 }
0x1070   :  { %998 = vst.msk [vmem:[#allocation3 + $0x30] sm:$0xff] %vm223_vm9, %v996_v14  ;;  %v1044_v16 = vpop.permute.xlu1 %1043 }
0x1071   :  { %v1046_v18 = vsel %vm223_vm9, %v996_v14, %v1044_v16 }
0x1072   :  { %v1047_v22 = vpack.c.bf16 %v1046_v18, %v1046_v18  ;;  %v2634_v18 = vld [vmem:[#allocation4 + $0xa8] sm:$0xf0] }
0x1074   :  { %2498 = vmatmul.msk.bf16.vlgmr.msra.gmra.mxu0 %vm315_vm10, %v1047_v22  ;;  %2499 = vmatmul.msk.bf16.vlgmr.msra.gmra.mxu1 %vm315_vm10, %v1047_v22  ;;  %v2508_v22 = vld [vmem:[#allocation4 + $0xb0] sm:$0xf] }
0x1084   :  { %2547 = vmatmul.msk.bf16.vlgmr.msrb.gmra.mxu1 %vm223_vm9, %v3258_v41 }
0x1094   :  { %2548 = vmatmul.msk.bf16.gmra.mxu1 %vm223_vm9, %v3262_v4 }
0x10a4   :  { %2549 = vmatmul.msk.bf16.gmra.mxu1 %vm223_vm9, %v3266_v19 }
0x10f1   :  { %v1060_v29 = vpop.f32.mrf.mxu0  ;;  %v1073_v17 = vpop.f32.mrf.mxu1 }
0x10f2   :  { %v1078_v27 = vadd.f32 %v1060_v29, %v112_v24  ;;  %v1122_v30 = vadd.f32 %v1073_v17, %v3017_v15  ;;  %v2631_v29 = vld [vmem:[#allocation4 + $0xb4] sm:$0xf0]  ;;  %v2504_v17 = vld [vmem:[#allocation4 + $0xa0] sm:$0xf] }
0x10f4   :  { %2767 = vtanh.f32 %v1078_v27  ;;  %v2501_v61 = vmul.f32 -1.442695, %v1122_v30  ;;  %v2500_v19 = vmul.f32 -1.442695, %v1078_v27  ;;  %v2630_v27 = vld [vmem:[#allocation4 + $0xa4] sm:$0xf0] }
0x10f5   :  { %2769 = vtanh.f32 %v1122_v30  ;;  %v2509_v30 = vor.u32 %v2631_v29, %v2508_v22 }
0x10f6   :  { %2771 = vpow2.f32 %v2501_v61 }
0x10f7   :  { %1228 = vmatpush.bf16.msrb.mxu2 %v2509_v30 }
0x10f9   :  { %v1062_v31 = vpop.f32.mrf.mxu0  ;;  %v1075_v32 = vpop.f32.mrf.mxu1 }
0x10fa   :  { %v2768_v35 = vpop.eup %2767 }
0x10fb   :  { %v2770_v41 = vpop.eup %2769  ;;  %1101 = vrot.lane.b32.xlu1 %v2768_v35, %s2969_s0 }
0x10fc   :  { %1145 = vrot.lane.b32.xlu2 %v2770_v41, %s2969_s0  ;;  %v2772_v15 = vpop.eup %2771 }
0x10fd   :  { %v1126_v62 = vadd.f32 1.0, %v2772_v15 }
0x10ff   :  { %2773 = vrcp.f32 %v1126_v62  ;;  %v1138_v46 = vand.u32 2147483648, %v1126_v62  ;;  %vm1132_vm2 = vweird.f32 %v1126_v62 }
0x1100   :  { %2775 = vpow2.f32 %v2500_v19 }
0x1101   :  { %v1139_v47 = vor.u32 1.1754944e-38, %v1138_v46 }
0x1103   :  { %1039 = vrot.lane.b32.xlu1 %v1037_v25, %s2970_s30 }
0x1105   :  { %v2774_v4 = vpop.eup %2773 }
0x1106   :  { %v1128_v36 = vmul.f32 %v2774_v4, %v1126_v62  ;;  %v2776_v38 = vpop.eup %2775  ;;  %vm1133_vm1 = vweird.f32 %v2774_v4 }
0x1107   :  { %v1082_v42 = vadd.f32 1.0, %v2776_v38  ;;  %vm1134_vm3 = vmor %vm1132_vm2, %vm1133_vm1  ;;  %v1171_v38 = vld [vmem:[#allocation3 + $0x30] sm:$0xff] }
0x1108   :  { %v1129_v37 = vsub.f32 1.0, %v1128_v36 }
0x1109   :  { %2777 = vrcp.f32 %v1082_v42  ;;  %v1094_v50 = vand.u32 2147483648, %v1082_v42  ;;  %vm1088_vm6 = vweird.f32 %v1082_v42  ;;  %v1092_v60 = vand.u32 2147483647, %v1082_v42 }
0x110a   :  { %v1130_v40 = vmul.f32 %v2774_v4, %v1129_v37 }
0x110b   :  { %795 = vrot.lane.b32.xlu1 %v3215_v54, %s2970_s30  ;;  %v1136_v54 = vand.u32 2147483647, %v1126_v62  ;;  %v1095_v13 = vor.u32 1.1754944e-38, %v1094_v50  ;;  %vm1093_vm8 = vcmp.eq.f32.partialorder %v1092_v60, 8.507059e+37 }
0x110c   :  { %v1131_v45 = vadd.f32 %v2774_v4, %v1130_v40 }
0x110d   :  { %vm1137_vm4 = vcmp.eq.f32.partialorder %v1136_v54, 8.507059e+37 }
0x110f   :  { %v2778_v44 = vpop.eup %2777 }
0x1110   :  { %v1084_v56 = vmul.f32 %v2778_v44, %v1082_v42  ;;  %vm1089_vm5 = vweird.f32 %v2778_v44 }
0x1111   :  { %vm1090_vm7 = vmor %vm1088_vm6, %vm1089_vm5 }
0x1112   :  { %v1085_v51 = vsub.f32 1.0, %v1084_v56 }
0x1113   :  { %673 = vrot.lane.b32.xlu1 %v3190_v58, %s2970_s30  ;;  %v1135_v58 = vsel %vm1134_vm3, %v2774_v4, %v1131_v45 }
0x1114   :  { %v1140_v55 = vsel %vm1137_vm4, %v1139_v47, %v1135_v58  ;;  %v1086_v43 = vmul.f32 %v2778_v44, %v1085_v51  ;;  %v1395_v47 = vpop.f32.mrf.mxu1 }
0x1115   :  { %v1143_v10 = vmul.f32 %v1140_v55, %v3286_v2  ;;  %v2533_v2 = vld [vmem:[#allocation4 + $0xb4] sm:$0xf] }
0x1116   :  { %v1087_v59 = vadd.f32 %v2778_v44, %v1086_v43  ;;  %v2534_v63 = vor.u32 %v2635_v9, %v2533_v2  ;;  %v3355_v43 = vld [vmem:[%s3632_s2 + $0x2] ss:$0 sm:$0xff] }
0x1118   :  { %v1091_v0 = vsel %vm1090_vm7, %v2778_v44, %v1087_v59  ;;  %1351 = vmatpush.bf16.msrb.mxu0 %v2534_v63  ;;  %v2654_v44 = vld [vmem:[%s3632_s2 + $0x3] ss:$0 sm:$0xff] }
0x1119   :  { %v1096_v26 = vsel %vm1093_vm8, %v1095_v13, %v1091_v0 }
0x111a   :  { %v1099_v23 = vmul.f32 %v1096_v26, %v3281_v33 }
0x1156   :  { %v1146_v52 = vpop.permute.xlu2 %1145 }
0x1157   :  { %v1148_v53 = vmul.f32 %v1146_v52, %v1140_v55  ;;  %v1284_v52 = vpop.f32.mrf.mxu3 }
0x1159   :  { %1150 = vrot.lane.b32.xlu0 %v1148_v53, %s2969_s0 }
0x115f   :  { %v3357_v59 = vpop.f32.mrf.mxu3 }
0x116d   :  { %v1102_v20 = vpop.permute.xlu1 %1101 }
0x116e   :  { %v1104_v28 = vmul.f32 %v1102_v20, %v1096_v26 }
0x1170   :  { %1106 = vrot.lane.b32.xlu2 %v1104_v28, %s2969_s0 }
0x1175   :  { %v1040_v1 = vpop.permute.xlu1 %1039 }
0x1176   :  { %1042 = vst.msk [vmem:[#allocation3 + $0x48] sm:$0xff] %vm223_vm9, %v1040_v1 }
0x117d   :  { %v796_v34 = vpop.permute.xlu1 %795  ;;  %v1178_v35 = vld [vmem:[#allocation3 + $0x48] sm:$0xff] }
0x117e   :  { %798 = vst.msk [vmem:[#allocation3 + $0x58] sm:$0xff] %vm223_vm9, %v796_v34  ;;  %v1289_v34 = vpop.f32.mrf.mxu3 }
0x1185   :  { %v674_v39 = vpop.permute.xlu1 %673  ;;  %v1180_v62 = vld [vmem:[#allocation3 + $0x58] sm:$0xff] }
0x1186   :  { %676 = vst.msk [vmem:[#allocation3 + $0x60] sm:$0xff] %vm223_vm9, %v674_v39  ;;  %v1291_v9 = vpop.f32.mrf.mxu3 }
0x118d   :  { %v1181_v37 = vld [vmem:[#allocation3 + $0x60] sm:$0xff] }
0x11ca   :  { %v1107_v48 = vpop.permute.xlu2 %1106 }
0x11cb   :  { %v1151_v21 = vpop.permute.xlu0 %1150  ;;  %v1109_v25 = vadd.f32 %v1107_v48, %v1099_v23 }
0x11cc   :  { %v1153_v5 = vadd.f32 %v1151_v21, %v1143_v10 }
0x11ce   :  { %2779 = vtanh.f32 %v1153_v5 }
0x11cf   :  { %2781 = vtanh.f32 %v1109_v25 }
0x11d4   :  { %v2780_v6 = vpop.eup %2779 }
0x11d5   :  { %1156 = vrot.lane.b32.xlu0 %v2780_v6, %s2969_s0  ;;  %v2782_v7 = vpop.eup %2781 }
0x11dd   :  { %1112 = vrot.lane.b32.xlu0 %v2782_v7, %s2969_s0 }
0x11e5   :  { %551 = vrot.lane.b32.xlu0 %v3157_v57, %s2970_s30  ;;  %v2529_v57 = vld [vmem:[#allocation4 + $0xa4] sm:$0xf] }
0x11e6   :  { %v2530_v24 = vor.u32 %v2634_v18, %v2529_v57  ;;  %v1294_v57 = vpop.f32.mrf.mxu3 }
0x11e8   :  { %1352 = vmatpush.bf16.msrb.mxu0 %v2530_v24 }
0x11ed   :  { %429 = vrot.lane.b32.xlu0 %v3124_v3, %s2970_s30 }
0x1247   :  { %v1157_v11 = vpop.permute.xlu0 %1156 }
0x1248   :  { %v1159_v33 = vmul.f32 %v1157_v11, %v1140_v55  ;;  %v1397_v55 = vpop.f32.mrf.mxu1 }
0x124a   :  { %1161 = vrot.lane.b32.xlu2 %v1159_v33, %s2970_s30 }
0x124f   :  { %v1113_v12 = vpop.permute.xlu0 %1112 }
0x1250   :  { %v1115_v14 = vmul.f32 %v1113_v12, %v1096_v26  ;;  %v1400_v13 = vpop.f32.mrf.mxu1 }
0x1252   :  { %917 = vrot.lane.b32.xlu2 %v3249_v49, %s2970_s30  ;;  %1117 = vrot.lane.b32.xlu1 %v1115_v14, %s2970_s30  ;;  %v2505_v49 = vor.u32 %v2630_v27, %v2504_v17 }
0x1254   :  { %1229 = vmatpush.bf16.msrb.mxu2 %v2505_v49 }
0x1257   :  { %v552_v16 = vpop.permute.xlu0 %551 }
0x1258   :  { %554 = vst.msk [vmem:[#allocation3 + $0x68] sm:$0xff] %vm223_vm9, %v552_v16  ;;  %v1402_v5 = vpop.f32.mrf.mxu1 }
0x125a   :  { %265 = vrot.lane.b32.xlu2 %v3044_v8, %s2970_s30 }
0x125f   :  { %v430_v3 = vpop.permute.xlu0 %429  ;;  %v1182_v36 = vld [vmem:[#allocation3 + $0x68] sm:$0xff] }
0x1260   :  { %432 = vst.msk [vmem:[#allocation3 + $0x70] sm:$0xff] %vm223_vm9, %v430_v3  ;;  %v1187_v42 = vpack.c.bf16 %v1182_v36, %v1181_v37  ;;  %v1405_v11 = vpop.f32.mrf.mxu1 }
0x1267   :  { %v1183_v54 = vld [vmem:[#allocation3 + $0x70] sm:$0xff] }
0x1268   :  { %v1407_v24 = vpop.f32.mrf.mxu1 }
0x12a4   :  { %v1162_v31 = vpop.permute.xlu2 %1161 }
0x12a5   :  { %1164 = vst.msk [vmem:[#allocation3 + $0x40] sm:$0xff] %vm223_vm9, %v1162_v31  ;;  %v1296_v31 = vpop.f32.mrf.mxu3 }
0x12ac   :  { %v918_v32 = vpop.permute.xlu2 %917  ;;  %v1177_v8 = vld [vmem:[#allocation3 + $0x40] sm:$0xff] }
0x12ad   :  { %920 = vst.msk [vmem:[#allocation3 + $0x50] sm:$0xff] %vm223_vm9, %v918_v32  ;;  %v1185_v41 = vpack.c.bf16 %v1178_v35, %v1177_v8 }
0x12af   :  { %2510 = vmatmul.msk.bf16.vlgmr.msrb.gmra.mxu2 %vm223_vm9, %v1185_v41  ;;  %2535 = vmatmul.msk.bf16.vlgmr.msrb.gmra.mxu0 %vm223_vm9, %v1185_v41 }
0x12b4   :  { %v266_v61 = vpop.permute.xlu2 %265  ;;  %v1179_v15 = vld [vmem:[#allocation3 + $0x50] sm:$0xff] }
0x12b5   :  { %269 = vst.msk [vmem:[#allocation3 + $0x78] sm:$0xff] %vm223_vm9, %v266_v61  ;;  %v1186_v4 = vpack.c.bf16 %v1180_v62, %v1179_v15 }
0x12bc   :  { %v1184_v46 = vld [vmem:[#allocation3 + $0x78] sm:$0xff] }
0x12bd   :  { %v1188_v58 = vpack.c.bf16 %v1184_v46, %v1183_v54 }
0x12bf   :  { %2511 = vmatmul.msk.bf16.gmra.mxu2 %vm223_vm9, %v1186_v4  ;;  %2536 = vmatmul.msk.bf16.gmra.mxu0 %vm223_vm9, %v1186_v4 }
0x12c4   :  { %v1118_v19 = vpop.permute.xlu1 %1117 }
0x12c5   :  { %1120 = vst.msk [vmem:[#allocation3 + $0x38] sm:$0xff] %vm223_vm9, %v1118_v19 }
0x12cc   :  { %v1172_v40 = vld [vmem:[#allocation3 + $0x38] sm:$0xff] }
0x12cd   :  { %v1176_v45 = vpack.c.bf16 %v1172_v40, %v1171_v38 }
0x12cf   :  { %2512 = vmatmul.msk.bf16.gmra.mxu2 %vm223_vm9, %v1187_v42  ;;  %2525 = vmatmul.msk.bf16.gmra.mxu3 %vm223_vm9, %v1176_v45 }
0x12d0   :  { %2537 = vmatmul.msk.bf16.gmra.mxu0 %vm223_vm9, %v1187_v42  ;;  %2550 = vmatmul.msk.bf16.gmra.mxu1 %vm223_vm9, %v1176_v45 }
0x12df   :  { %2513 = vmatmul.msk.bf16.gmra.mxu2 %vm223_vm9, %v1188_v58 }
0x12e0   :  { %2538 = vmatmul.msk.bf16.gmra.mxu0 %vm223_vm9, %v1188_v58 }
0x132c   :  { %v1354_v53 = vpop.f32.mrf.mxu0 }
0x132d   :  { %v1396_v56 = vadd.f32 %v1395_v47, %v1354_v53 }
0x132f   :  { %v3350_v51 = vadd.f32 %v2654_v44, %v1396_v56 }
0x1332   :  { %v1231_v50 = vpop.f32.mrf.mxu2 }
0x1333   :  { %v1285_v60 = vadd.f32 %v1284_v52, %v1231_v50 }
0x1334   :  { %v1356_v0 = vpop.f32.mrf.mxu0 }
0x1335   :  { %v1309_v20 = vadd.f32 %v3355_v43, %v1285_v60  ;;  %v1398_v26 = vadd.f32 %v1397_v55, %v1356_v0 }
0x1337   :  { %2783 = vtanh.f32 %v1309_v20  ;;  %v3360_v28 = vadd.f32 %v2654_v44, %v1398_v26  ;;  %v2552_v46 = vmul.f32 -1.442695, %v1309_v20 }
0x133a   :  { %v3362_v1 = vpop.f32.mrf.mxu2 }
0x133c   :  { %v1359_v39 = vpop.f32.mrf.mxu0 }
0x133d   :  { %v2784_v10 = vpop.eup %2783  ;;  %v1401_v21 = vadd.f32 %v1400_v13, %v1359_v39 }
0x133e   :  { %1467 = vrot.lane.b32.xlu2 %v2784_v10, %s2969_s0 }
0x133f   :  { %v3365_v48 = vadd.f32 %v2654_v44, %v1401_v21 }
0x1342   :  { %v1236_v23 = vpop.f32.mrf.mxu2 }
0x1343   :  { %v1290_v25 = vadd.f32 %v1289_v34, %v1236_v23 }
0x1344   :  { %v1361_v6 = vpop.f32.mrf.mxu0 }
0x1345   :  { %v1403_v7 = vadd.f32 %v1402_v5, %v1361_v6  ;;  %v3368_v2 = vadd.f32 %v3355_v43, %v1290_v25 }
0x1347   :  { %v3370_v63 = vadd.f32 %v2654_v44, %v1403_v7 }
0x134a   :  { %v1238_v33 = vpop.f32.mrf.mxu2 }
0x134b   :  { %v1292_v12 = vadd.f32 %v1291_v9, %v1238_v33 }
0x134d   :  { %v1364_v14 = vpop.f32.mrf.mxu0  ;;  %v3373_v16 = vadd.f32 %v3355_v43, %v1292_v12  ;;  %v1410_v8 = vpop.f32.mrf.mxu1 }
0x134e   :  { %v1406_v3 = vadd.f32 %v1405_v11, %v1364_v14 }
0x1350   :  { %v3375_v18 = vadd.f32 %v2654_v44, %v1406_v3 }
0x1352   :  { %v1241_v22 = vpop.f32.mrf.mxu2  ;;  %v1299_v4 = vpop.f32.mrf.mxu3 }
0x1353   :  { %v1295_v29 = vadd.f32 %v1294_v57, %v1241_v22 }
0x1355   :  { %v1366_v17 = vpop.f32.mrf.mxu0  ;;  %v3378_v27 = vadd.f32 %v3355_v43, %v1295_v29  ;;  %v1412_v37 = vpop.f32.mrf.mxu1 }
0x1356   :  { %v1408_v30 = vadd.f32 %v1407_v24, %v1366_v17 }
0x1358   :  { %v3380_v49 = vadd.f32 %v2654_v44, %v1408_v30 }
0x135a   :  { %v1243_v32 = vpop.f32.mrf.mxu2 }
0x135b   :  { %v1297_v35 = vadd.f32 %v1296_v31, %v1243_v32 }
0x135d   :  { %v1369_v41 = vpop.f32.mrf.mxu0  ;;  %v3383_v61 = vadd.f32 %v3355_v43, %v1297_v35 }
0x135e   :  { %v1411_v15 = vadd.f32 %v1410_v8, %v1369_v41 }
0x1360   :  { %v3385_v62 = vadd.f32 %v2654_v44, %v1411_v15 }
0x1362   :  { %v1246_v19 = vpop.f32.mrf.mxu2 }
0x1363   :  { %v1300_v36 = vadd.f32 %v1299_v4, %v1246_v19  ;;  %v2580_v19 = vld [vmem:[#allocation4 + $0xf0] sm:$0xf] }
0x1365   :  { %v1371_v38 = vpop.f32.mrf.mxu0  ;;  %v3388_v40 = vadd.f32 %v3355_v43, %v1300_v36  ;;  %v2643_v36 = vld [vmem:[#allocation4 + $0xf4] sm:$0xf0] }
0x1366   :  { %v1413_v42 = vadd.f32 %v1412_v37, %v1371_v38  ;;  %v2572_v37 = vld [vmem:[#allocation4 + $0xe0] sm:$0xf]  ;;  %v3403_v38 = vor.u32 %v2643_v36, %v2580_v19 }
0x1368   :  { %v1426_v45 = vadd.f32 %v2654_v44, %v1413_v42  ;;  %v2641_v42 = vld [vmem:[#allocation4 + $0xe4] sm:$0xf0]  ;;  %1578 = vmatpush.bf16.msra.mxu2 %v3403_v38  ;;  %1695 = vmatpush.bf16.msra.mxu0 %v3403_v38 }
0x136a   :  { %2785 = vtanh.f32 %v1426_v45  ;;  %v2553_v39 = vmul.f32 -1.442695, %v1426_v45  ;;  %v2642_v45 = vld [vmem:[#allocation4 + $0xf4] sm:$0xf] }
0x136b   :  { %2787 = vpow2.f32 %v2552_v46  ;;  %v2582_v46 = vld [vmem:[#allocation4 + $0xf8] sm:$0xf0] }
0x1370   :  { %v2786_v54 = vpop.eup %2785 }
0x1371   :  { %1506 = vrot.lane.b32.xlu0 %v2786_v54, %s2969_s0  ;;  %v2788_v58 = vpop.eup %2787  ;;  %v3405_v54 = vor.u32 %v2642_v45, %v2582_v46 }
0x1372   :  { %v1448_v47 = vadd.f32 1.0, %v2788_v58  ;;  %v2640_v58 = vld [vmem:[#allocation4 + $0xe4] sm:$0xf] }
0x1373   :  { %1591 = vmatpush.bf16.msra.mxu3 %v3405_v54  ;;  %1708 = vmatpush.bf16.msra.mxu1 %v3405_v54 }
0x1374   :  { %2789 = vrcp.f32 %v1448_v47  ;;  %v1460_v60 = vand.u32 2147483648, %v1448_v47  ;;  %vm1454_vm12 = vweird.f32 %v1448_v47  ;;  %v1458_v0 = vand.u32 2147483647, %v1448_v47 }
0x1375   :  { %2791 = vpow2.f32 %v2553_v39  ;;  %v2558_v39 = vld [vmem:[#allocation4 + $0xc8] sm:$0xf0] }
0x1376   :  { %v1461_v13 = vor.u32 1.1754944e-38, %v1460_v60  ;;  %vm1459_vm14 = vcmp.eq.f32.partialorder %v1458_v0, 8.507059e+37  ;;  %v2566_v60 = vld [vmem:[#allocation4 + $0xd8] sm:$0xf0] }
0x137a   :  { %v2790_v52 = vpop.eup %2789 }
0x137b   :  { %v1450_v55 = vmul.f32 %v2790_v52, %v1448_v47  ;;  %vm1455_vm11 = vweird.f32 %v2790_v52  ;;  %v2792_v10 = vpop.eup %2791  ;;  %v3408_v47 = vor.u32 %v2641_v42, %v2572_v37 }
0x137c   :  { %vm1456_vm13 = vmor %vm1454_vm12, %vm1455_vm11  ;;  %v1487_v21 = vadd.f32 1.0, %v2792_v10 }
0x137d   :  { %v1451_v53 = vsub.f32 1.0, %v1450_v55  ;;  %v2564_v55 = vld [vmem:[#allocation4 + $0xd0] sm:$0xf]  ;;  %1579 = vmatpush.bf16.msra.mxu2 %v3408_v47  ;;  %1696 = vmatpush.bf16.msra.mxu0 %v3408_v47 }
0x137e   :  { %2793 = vrcp.f32 %v1487_v21  ;;  %v1499_v9 = vand.u32 2147483648, %v1487_v21  ;;  %vm1493_vm0 = vweird.f32 %v1487_v21  ;;  %v1497_v11 = vand.u32 2147483647, %v1487_v21 }
0x137f   :  { %v1452_v56 = vmul.f32 %v2790_v52, %v1451_v53  ;;  %v2639_v53 = vld [vmem:[#allocation4 + $0xd4] sm:$0xf0] }
0x1380   :  { %v1500_v12 = vor.u32 1.1754944e-38, %v1499_v9  ;;  %vm1498_vm2 = vcmp.eq.f32.partialorder %v1497_v11, 8.507059e+37  ;;  %v3416_v0 = vor.u32 %v2639_v53, %v2564_v55  ;;  %v1287_v9 = vadd.f32 %v3357_v59, %v3362_v1 }
0x1381   :  { %v1453_v50 = vadd.f32 %v2790_v52, %v1452_v56 }
0x1382   :  { %1580 = vmatpush.bf16.msra.mxu2 %v3416_v0  ;;  %1697 = vmatpush.bf16.msra.mxu0 %v3416_v0  ;;  %v1310_v11 = vadd.f32 %v3355_v43, %v1287_v9 }
0x1383   :  { %v1457_v44 = vsel %vm1456_vm13, %v2790_v52, %v1453_v50  ;;  %v2574_v52 = vld [vmem:[#allocation4 + $0xe8] sm:$0xf0]  ;;  %v2638_v50 = vld [vmem:[#allocation4 + $0xd4] sm:$0xf] }
0x1384   :  { %v1462_v26 = vsel %vm1459_vm14, %v1461_v13, %v1457_v44  ;;  %v2794_v5 = vpop.eup %2793  ;;  %v3412_v56 = vor.u32 %v2640_v58, %v2574_v52  ;;  %v2556_v44 = vld [vmem:[#allocation4 + $0xc0] sm:$0xf]  ;;  %v2637_v13 = vld [vmem:[#allocation4 + $0xc4] sm:$0xf0] }
0x1385   :  { %v1489_v23 = vmul.f32 %v2794_v5, %v1487_v21  ;;  %vm1494_vm15 = vweird.f32 %v2794_v5  ;;  %v1465_v22 = vmul.f32 0.0, %v1462_v26 }
0x1386   :  { %vm1495_vm1 = vmor %vm1493_vm0, %vm1494_vm15  ;;  %1592 = vmatpush.bf16.msra.mxu3 %v3412_v56  ;;  %1709 = vmatpush.bf16.msra.mxu1 %v3412_v56 }
0x1387   :  { %v1490_v25 = vsub.f32 1.0, %v1489_v23 }
0x1389   :  { %v1491_v6 = vmul.f32 %v2794_v5, %v1490_v25 }
0x138b   :  { %v1492_v7 = vadd.f32 %v2794_v5, %v1491_v6  ;;  %v3462_v6 = vpop.f32.mrf.mxu3 }
0x138d   :  { %v1496_v33 = vsel %vm1495_vm1, %v2794_v5, %v1492_v7  ;;  %v3464_v7 = vpop.f32.mrf.mxu2 }
0x138e   :  { %v1501_v3 = vsel %vm1498_vm2, %v1500_v12, %v1496_v33 }
0x138f   :  { %v1504_v30 = vmul.f32 0.0, %v1501_v3 }
0x1398   :  { %v1468_v20 = vpop.permute.xlu2 %1467 }
0x1399   :  { %v1470_v34 = vmul.f32 %v1468_v20, %v1462_v26  ;;  %v3420_v20 = vor.u32 %v2638_v50, %v2566_v60 }
0x139b   :  { %1472 = vrot.lane.b32.xlu1 %v1470_v34, %s2969_s0  ;;  %1593 = vmatpush.bf16.msra.mxu3 %v3420_v20  ;;  %v2636_v34 = vld [vmem:[#allocation4 + $0xc4] sm:$0xf] }
0x139c   :  { %1710 = vmatpush.bf16.msra.mxu1 %v3420_v20  ;;  %v3439_v10 = vor.u32 %v2636_v34, %v2558_v39 }
0x139f   :  { %1594 = vmatpush.bf16.msra.mxu3 %v3439_v10 }
0x13a0   :  { %1711 = vmatpush.bf16.msra.mxu1 %v3439_v10 }
0x13a3   :  { %1825 = vmatpush.bf16.msrb.mxu3 %v3405_v54 }
0x13a4   :  { %1942 = vmatpush.bf16.msrb.mxu1 %v3405_v54 }
0x13a7   :  { %1826 = vmatpush.bf16.msrb.mxu3 %v3412_v56 }
0x13a8   :  { %1943 = vmatpush.bf16.msrb.mxu1 %v3412_v56 }
0x13ab   :  { %1827 = vmatpush.bf16.msrb.mxu3 %v3420_v20 }
0x13ac   :  { %1944 = vmatpush.bf16.msrb.mxu1 %v3420_v20 }
0x13af   :  { %1828 = vmatpush.bf16.msrb.mxu3 %v3439_v10 }
0x13b0   :  { %1945 = vmatpush.bf16.msrb.mxu1 %v3439_v10 }
0x13e3   :  { %v1507_v14 = vpop.permute.xlu0 %1506 }
0x13e4   :  { %v1509_v57 = vmul.f32 %v1507_v14, %v1501_v3 }
0x13e6   :  { %1511 = vrot.lane.b32.xlu2 %v1509_v57, %s2969_s0 }
0x140d   :  { %v1473_v24 = vpop.permute.xlu1 %1472 }
0x140e   :  { %v3393_v29 = vadd.f32 %v1473_v24, %v1465_v22 }
0x1410   :  { %2795 = vtanh.f32 %v3393_v29 }
0x1416   :  { %v2796_v17 = vpop.eup %2795 }
0x1417   :  { %1478 = vrot.lane.b32.xlu0 %v2796_v17, %s2969_s0 }
0x1440   :  { %v1512_v31 = vpop.permute.xlu2 %1511 }
0x1441   :  { %v3397_v32 = vadd.f32 %v1512_v31, %v1504_v30 }
0x1443   :  { %2797 = vtanh.f32 %v3397_v32 }
0x1449   :  { %v2798_v8 = vpop.eup %2797 }
0x144a   :  { %1517 = vrot.lane.b32.xlu1 %v2798_v8, %s2969_s0 }
0x1489   :  { %v1479_v35 = vpop.permute.xlu0 %1478 }
0x148a   :  { %v1481_v41 = vmul.f32 %v1479_v35, %v1462_v26  ;;  %v3424_v26 = vor.u32 %v2637_v13, %v2556_v44 }
0x148c   :  { %1522 = vrot.lane.b32.xlu2 %v1481_v41, %s2970_s30  ;;  %1581 = vmatpush.bf16.msra.mxu2 %v3424_v26 }
0x148d   :  { %1698 = vmatpush.bf16.msra.mxu0 %v3424_v26 }
0x1490   :  { %1812 = vmatpush.bf16.msrb.mxu2 %v3403_v38 }
0x1491   :  { %1929 = vmatpush.bf16.msrb.mxu0 %v3403_v38 }
0x1494   :  { %1813 = vmatpush.bf16.msrb.mxu2 %v3408_v47 }
0x1495   :  { %1930 = vmatpush.bf16.msrb.mxu0 %v3408_v47 }
0x1498   :  { %1814 = vmatpush.bf16.msrb.mxu2 %v3416_v0 }
0x1499   :  { %1931 = vmatpush.bf16.msrb.mxu0 %v3416_v0 }
0x149c   :  { %1815 = vmatpush.bf16.msrb.mxu2 %v3424_v26 }
0x149d   :  { %1932 = vmatpush.bf16.msrb.mxu0 %v3424_v26 }
0x14bc   :  { %v1518_v15 = vpop.permute.xlu1 %1517 }
0x14bd   :  { %v1520_v4 = vmul.f32 %v1518_v15, %v1501_v3 }
0x14bf   :  { %1526 = vrot.lane.b32.xlu0 %v1520_v4, %s2971_s4 }
0x14e6   :  { %v1523_v21 = vpop.permute.xlu2 %1522 }
0x1531   :  { %v1527_v5 = vpop.permute.xlu0 %1526 }
0x1532   :  { %v1529_v23 = vsel %vm223_vm9, %v1523_v21, %v1527_v5 }
0x1533   :  { %v1530_v25 = vpack.c.bf16 %v1529_v23, %v1529_v23 }
0x1535   :  { %2586 = vmatmul.msk.bf16.vlgmr.msra.gmra.mxu2 %vm315_vm10, %v1530_v25  ;;  %2587 = vmatmul.msk.bf16.vlgmr.msra.gmra.mxu3 %vm315_vm10, %v1530_v25 }
0x1536   :  { %2046 = vmatpush.bf16.msra.mxu2 %v3403_v38  ;;  %2059 = vmatpush.bf16.msra.mxu3 %v3405_v54 }
0x153a   :  { %2047 = vmatpush.bf16.msra.mxu2 %v3408_v47  ;;  %2060 = vmatpush.bf16.msra.mxu3 %v3412_v56 }
0x153e   :  { %2048 = vmatpush.bf16.msra.mxu2 %v3416_v0  ;;  %2061 = vmatpush.bf16.msra.mxu3 %v3420_v20 }
0x1542   :  { %2049 = vmatpush.bf16.msra.mxu2 %v3424_v26  ;;  %2062 = vmatpush.bf16.msra.mxu3 %v3439_v10 }
0x15b8   :  { %v1583_v33 = vpop.f32.mrf.mxu2  ;;  %v1596_v12 = vpop.f32.mrf.mxu3 }
0x15b9   :  { %v1601_v14 = vadd.f32 %v1583_v33, %v1310_v11  ;;  %v1640_v3 = vadd.f32 %v1596_v12, %v3385_v62 }
0x15bb   :  { %2799 = vtanh.f32 %v1601_v14  ;;  %v2589_v30 = vmul.f32 -1.442695, %v1640_v3  ;;  %v2588_v31 = vmul.f32 -1.442695, %v1601_v14 }
0x15bc   :  { %2801 = vtanh.f32 %v1640_v3 }
0x15bd   :  { %2803 = vpow2.f32 %v2589_v30 }
0x15c0   :  { %v1585_v57 = vpop.f32.mrf.mxu2  ;;  %v1598_v22 = vpop.f32.mrf.mxu3 }
0x15c1   :  { %v2800_v24 = vpop.eup %2799 }
0x15c2   :  { %v2802_v17 = vpop.eup %2801  ;;  %1624 = vrot.lane.b32.xlu1 %v2800_v24, %s2969_s0 }
0x15c3   :  { %1663 = vrot.lane.b32.xlu2 %v2802_v17, %s2969_s0  ;;  %v2804_v59 = vpop.eup %2803 }
0x15c4   :  { %v1644_v1 = vadd.f32 1.0, %v2804_v59 }
0x15c6   :  { %2805 = vrcp.f32 %v1644_v1  ;;  %v1656_v19 = vand.u32 2147483648, %v1644_v1  ;;  %vm1650_vm4 = vweird.f32 %v1644_v1  ;;  %v1654_v36 = vand.u32 2147483647, %v1644_v1 }
0x15c7   :  { %2807 = vpow2.f32 %v2588_v31 }
0x15c8   :  { %v1657_v42 = vor.u32 1.1754944e-38, %v1656_v19  ;;  %vm1655_vm6 = vcmp.eq.f32.partialorder %v1654_v36, 8.507059e+37 }
0x15cc   :  { %v2806_v43 = vpop.eup %2805 }
0x15cd   :  { %v1646_v8 = vmul.f32 %v2806_v43, %v1644_v1  ;;  %v2808_v35 = vpop.eup %2807  ;;  %vm1651_vm3 = vweird.f32 %v2806_v43 }
0x15ce   :  { %v1605_v15 = vadd.f32 1.0, %v2808_v35  ;;  %vm1652_vm5 = vmor %vm1650_vm4, %vm1651_vm3 }
0x15cf   :  { %v1647_v62 = vsub.f32 1.0, %v1646_v8 }
0x15d0   :  { %2809 = vrcp.f32 %v1605_v15  ;;  %v1617_v44 = vand.u32 2147483648, %v1605_v15  ;;  %vm1611_vm8 = vweird.f32 %v1605_v15  ;;  %v1615_v13 = vand.u32 2147483647, %v1605_v15 }
0x15d1   :  { %v1648_v41 = vmul.f32 %v2806_v43, %v1647_v62 }
0x15d2   :  { %v1618_v39 = vor.u32 1.1754944e-38, %v1617_v44  ;;  %vm1616_vm12 = vcmp.eq.f32.partialorder %v1615_v13, 8.507059e+37 }
0x15d3   :  { %v1649_v4 = vadd.f32 %v2806_v43, %v1648_v41 }
0x15d5   :  { %v1653_v37 = vsel %vm1652_vm5, %v2806_v43, %v1649_v4 }
0x15d6   :  { %v1658_v46 = vsel %vm1655_vm6, %v1657_v42, %v1653_v37  ;;  %v2810_v58 = vpop.eup %2809 }
0x15d7   :  { %v1607_v55 = vmul.f32 %v2810_v58, %v1605_v15  ;;  %vm1612_vm7 = vweird.f32 %v2810_v58  ;;  %v1661_v25 = vmul.f32 %v1658_v46, %v3397_v32 }
0x15d8   :  { %vm1613_vm11 = vmor %vm1611_vm8, %vm1612_vm7 }
0x15d9   :  { %v1608_v53 = vsub.f32 1.0, %v1607_v55 }
0x15db   :  { %v1609_v50 = vmul.f32 %v2810_v58, %v1608_v53 }
0x15dd   :  { %v1610_v60 = vadd.f32 %v2810_v58, %v1609_v50 }
0x15df   :  { %v1614_v34 = vsel %vm1613_vm11, %v2810_v58, %v1610_v60 }
0x15e0   :  { %v1619_v5 = vsel %vm1616_vm12, %v1618_v39, %v1614_v34 }
0x15e1   :  { %v1622_v12 = vmul.f32 %v1619_v5, %v3393_v29 }
0x161d   :  { %v1664_v45 = vpop.permute.xlu2 %1663 }
0x161e   :  { %v1666_v52 = vmul.f32 %v1664_v45, %v1658_v46 }
0x1620   :  { %1668 = vrot.lane.b32.xlu1 %v1666_v52, %s2969_s0 }
0x1634   :  { %v1625_v21 = vpop.permute.xlu1 %1624 }
0x1635   :  { %v1627_v23 = vmul.f32 %v1625_v21, %v1619_v5 }
0x1637   :  { %1629 = vrot.lane.b32.xlu0 %v1627_v23, %s2969_s0 }
0x1692   :  { %v1669_v9 = vpop.permute.xlu1 %1668 }
0x1693   :  { %v3475_v11 = vadd.f32 %v1669_v9, %v1661_v25 }
0x1695   :  { %2811 = vtanh.f32 %v3475_v11 }
0x169b   :  { %v2812_v33 = vpop.eup %2811 }
0x169c   :  { %1674 = vrot.lane.b32.xlu0 %v2812_v33, %s2969_s0 }
0x16a9   :  { %v1630_v14 = vpop.permute.xlu0 %1629 }
0x16aa   :  { %v3480_v3 = vadd.f32 %v1630_v14, %v1622_v12 }
0x16ac   :  { %2813 = vtanh.f32 %v3480_v3 }
0x16b2   :  { %v2814_v57 = vpop.eup %2813 }
0x16b3   :  { %1635 = vrot.lane.b32.xlu2 %v2814_v57, %s2969_s0 }
0x170d   :  { %v1636_v22 = vpop.permute.xlu2 %1635 }
0x170e   :  { %v1675_v32 = vpop.permute.xlu0 %1674  ;;  %v1638_v24 = vmul.f32 %v1636_v22, %v1619_v5 }
0x170f   :  { %v1677_v17 = vmul.f32 %v1675_v32, %v1658_v46 }
0x1710   :  { %1679 = vrot.lane.b32.xlu1 %v1638_v24, %s2970_s30 }
0x1711   :  { %1683 = vrot.lane.b32.xlu2 %v1677_v17, %s2971_s4 }
0x176b   :  { %v1684_v30 = vpop.permute.xlu2 %1683 }
0x1782   :  { %v1680_v59 = vpop.permute.xlu1 %1679 }
0x1783   :  { %v1686_v29 = vsel %vm223_vm9, %v1680_v59, %v1684_v30 }
0x1784   :  { %v1687_v1 = vpack.c.bf16 %v1686_v29, %v1686_v29 }
0x1786   :  { %2590 = vmatmul.msk.bf16.vlgmr.msra.gmra.mxu0 %vm315_vm10, %v1687_v1  ;;  %2591 = vmatmul.msk.bf16.vlgmr.msra.gmra.mxu1 %vm315_vm10, %v1687_v1 }
0x1787   :  { %2176 = vmatpush.bf16.msra.mxu1 %v3405_v54  ;;  %2163 = vmatpush.bf16.msra.mxu0 %v3403_v38 }
0x178b   :  { %2177 = vmatpush.bf16.msra.mxu1 %v3412_v56  ;;  %2164 = vmatpush.bf16.msra.mxu0 %v3408_v47 }
0x178f   :  { %2178 = vmatpush.bf16.msra.mxu1 %v3420_v20  ;;  %2165 = vmatpush.bf16.msra.mxu0 %v3416_v0 }
0x1793   :  { %2179 = vmatpush.bf16.msra.mxu1 %v3439_v10  ;;  %2166 = vmatpush.bf16.msra.mxu0 %v3424_v26 }
0x1803   :  { %v1700_v43 = vpop.f32.mrf.mxu0  ;;  %v1713_v31 = vpop.f32.mrf.mxu1 }
0x1804   :  { %v1718_v8 = vadd.f32 %v1700_v43, %v3368_v2  ;;  %v1757_v62 = vadd.f32 %v1713_v31, %v3380_v49 }
0x1806   :  { %2815 = vtanh.f32 %v1718_v8  ;;  %v2592_v19 = vmul.f32 -1.442695, %v1718_v8  ;;  %v2593_v36 = vmul.f32 -1.442695, %v1757_v62 }
0x1807   :  { %2817 = vtanh.f32 %v1757_v62 }
0x1808   :  { %2819 = vpow2.f32 %v2592_v19 }
0x1809   :  { %2821 = vpow2.f32 %v2593_v36 }
0x180b   :  { %v1702_v35 = vpop.f32.mrf.mxu0  ;;  %v1715_v41 = vpop.f32.mrf.mxu1 }
0x180c   :  { %v2816_v15 = vpop.eup %2815 }
0x180d   :  { %v2818_v4 = vpop.eup %2817  ;;  %1741 = vrot.lane.b32.xlu0 %v2816_v15, %s2969_s0 }
0x180e   :  { %1780 = vrot.lane.b32.xlu1 %v2818_v4, %s2969_s0  ;;  %v2820_v37 = vpop.eup %2819 }
0x180f   :  { %v2822_v42 = vpop.eup %2821  ;;  %v1722_v45 = vadd.f32 1.0, %v2820_v37 }
0x1810   :  { %v1761_v2 = vadd.f32 1.0, %v2822_v42 }
0x1811   :  { %2823 = vrcp.f32 %v1722_v45  ;;  %v1734_v34 = vand.u32 2147483648, %v1722_v45  ;;  %vm1728_vm15 = vweird.f32 %v1722_v45  ;;  %v1732_v21 = vand.u32 2147483647, %v1722_v45 }
0x1812   :  { %2825 = vrcp.f32 %v1761_v2  ;;  %v1773_v39 = vand.u32 2147483648, %v1761_v2  ;;  %vm1767_vm0 = vweird.f32 %v1761_v2  ;;  %v1771_v5 = vand.u32 2147483647, %v1761_v2 }
0x1813   :  { %v1735_v9 = vor.u32 1.1754944e-38, %v1734_v34  ;;  %vm1733_vm3 = vcmp.eq.f32.partialorder %v1732_v21, 8.507059e+37 }
0x1814   :  { %v1774_v33 = vor.u32 1.1754944e-38, %v1773_v39  ;;  %vm1772_vm4 = vcmp.eq.f32.partialorder %v1771_v5, 8.507059e+37 }
0x1817   :  { %v2824_v49 = vpop.eup %2823 }
0x1818   :  { %v2826_v46 = vpop.eup %2825  ;;  %v1724_v58 = vmul.f32 %v2824_v49, %v1722_v45  ;;  %vm1729_vm13 = vweird.f32 %v2824_v49 }
0x1819   :  { %v1763_v52 = vmul.f32 %v2826_v46, %v1761_v2  ;;  %vm1768_vm14 = vweird.f32 %v2826_v46  ;;  %vm1730_vm1 = vmor %vm1728_vm15, %vm1729_vm13 }
0x181a   :  { %v1725_v55 = vsub.f32 1.0, %v1724_v58  ;;  %vm1769_vm2 = vmor %vm1767_vm0, %vm1768_vm14 }
0x181b   :  { %v1764_v53 = vsub.f32 1.0, %v1763_v52 }
0x181c   :  { %v1726_v50 = vmul.f32 %v2824_v49, %v1725_v55 }
0x181d   :  { %v1765_v60 = vmul.f32 %v2826_v46, %v1764_v53 }
0x181e   :  { %v1727_v44 = vadd.f32 %v2824_v49, %v1726_v50 }
0x181f   :  { %v1766_v13 = vadd.f32 %v2826_v46, %v1765_v60 }
0x1820   :  { %v1731_v23 = vsel %vm1730_vm1, %v2824_v49, %v1727_v44 }
0x1821   :  { %v1770_v25 = vsel %vm1769_vm2, %v2826_v46, %v1766_v13  ;;  %v1736_v14 = vsel %vm1733_vm3, %v1735_v9, %v1731_v23 }
0x1822   :  { %v1775_v22 = vsel %vm1772_vm4, %v1774_v33, %v1770_v25  ;;  %v1739_v17 = vmul.f32 %v1736_v14, %v3480_v3 }
0x1823   :  { %v1778_v1 = vmul.f32 %v1775_v22, %v3475_v11 }
0x187f   :  { %v1742_v12 = vpop.permute.xlu0 %1741 }
0x1880   :  { %v1781_v57 = vpop.permute.xlu1 %1780  ;;  %v1744_v32 = vmul.f32 %v1742_v12, %v1736_v14 }
0x1881   :  { %v1783_v24 = vmul.f32 %v1781_v57, %v1775_v22 }
0x1882   :  { %1746 = vrot.lane.b32.xlu2 %v1744_v32, %s2969_s0 }
0x1883   :  { %1785 = vrot.lane.b32.xlu0 %v1783_v24, %s2969_s0 }
0x18dc   :  { %v1747_v30 = vpop.permute.xlu2 %1746 }
0x18dd   :  { %v3504_v59 = vadd.f32 %v1747_v30, %v1739_v17 }
0x18df   :  { %2827 = vtanh.f32 %v3504_v59 }
0x18e5   :  { %v2828_v29 = vpop.eup %2827 }
0x18e6   :  { %1752 = vrot.lane.b32.xlu1 %v2828_v29, %s2969_s0 }
0x18f5   :  { %v1786_v43 = vpop.permute.xlu0 %1785 }
0x18f6   :  { %v3509_v31 = vadd.f32 %v1786_v43, %v1778_v1 }
0x18f8   :  { %2829 = vtanh.f32 %v3509_v31 }
0x18fe   :  { %v2830_v8 = vpop.eup %2829 }
0x18ff   :  { %1791 = vrot.lane.b32.xlu2 %v2830_v8, %s2969_s0 }
0x1958   :  { %v1753_v62 = vpop.permute.xlu1 %1752 }
0x1959   :  { %v1792_v3 = vpop.permute.xlu2 %1791  ;;  %v1755_v35 = vmul.f32 %v1753_v62, %v1736_v14 }
0x195a   :  { %v1794_v41 = vmul.f32 %v1792_v3, %v1775_v22 }
0x195b   :  { %1796 = vrot.lane.b32.xlu0 %v1755_v35, %s2970_s30 }
0x195c   :  { %1800 = vrot.lane.b32.xlu1 %v1794_v41, %s2971_s4 }
0x19cd   :  { %v1797_v15 = vpop.permute.xlu0 %1796 }
0x19ce   :  { %v1801_v4 = vpop.permute.xlu1 %1800 }
0x19cf   :  { %v1803_v11 = vsel %vm223_vm9, %v1797_v15, %v1801_v4 }
0x19d0   :  { %v1804_v19 = vpack.c.bf16 %v1803_v11, %v1803_v11 }
0x19d2   :  { %2594 = vmatmul.msk.bf16.vlgmr.msrb.gmra.mxu2 %vm315_vm10, %v1804_v19  ;;  %2595 = vmatmul.msk.bf16.vlgmr.msrb.gmra.mxu3 %vm315_vm10, %v1804_v19 }
0x19d3   :  { %2280 = vmatpush.bf16.msrb.mxu2 %v3403_v38  ;;  %2293 = vmatpush.bf16.msrb.mxu3 %v3405_v54 }
0x19d7   :  { %2281 = vmatpush.bf16.msrb.mxu2 %v3408_v47  ;;  %2294 = vmatpush.bf16.msrb.mxu3 %v3412_v56 }
0x19db   :  { %2282 = vmatpush.bf16.msrb.mxu2 %v3416_v0  ;;  %2295 = vmatpush.bf16.msrb.mxu3 %v3420_v20 }
0x19df   :  { %2283 = vmatpush.bf16.msrb.mxu2 %v3424_v26  ;;  %2296 = vmatpush.bf16.msrb.mxu3 %v3439_v10 }
0x1a55   :  { %v1817_v36 = vpop.f32.mrf.mxu2  ;;  %v1830_v37 = vpop.f32.mrf.mxu3 }
0x1a56   :  { %v1835_v42 = vadd.f32 %v1817_v36, %v3373_v16  ;;  %v1874_v38 = vadd.f32 %v1830_v37, %v3375_v18 }
0x1a58   :  { %2831 = vtanh.f32 %v1835_v42  ;;  %v2596_v0 = vmul.f32 -1.442695, %v1835_v42  ;;  %v2597_v2 = vmul.f32 -1.442695, %v1874_v38 }
0x1a59   :  { %2833 = vtanh.f32 %v1874_v38 }
0x1a5a   :  { %2835 = vpow2.f32 %v2596_v0 }
0x1a5d   :  { %v1819_v54 = vpop.f32.mrf.mxu2  ;;  %v1832_v47 = vpop.f32.mrf.mxu3 }
0x1a5e   :  { %v2832_v45 = vpop.eup %2831 }
0x1a5f   :  { %v2834_v56 = vpop.eup %2833  ;;  %1858 = vrot.lane.b32.xlu2 %v2832_v45, %s2969_s0 }
0x1a60   :  { %1897 = vrot.lane.b32.xlu0 %v2834_v56, %s2969_s0  ;;  %v2836_v20 = vpop.eup %2835 }
0x1a61   :  { %v1839_v26 = vadd.f32 1.0, %v2836_v20 }
0x1a63   :  { %2837 = vrcp.f32 %v1839_v26  ;;  %v1851_v55 = vand.u32 2147483648, %v1839_v26  ;;  %vm1845_vm6 = vweird.f32 %v1839_v26  ;;  %v1849_v53 = vand.u32 2147483647, %v1839_v26 }
0x1a64   :  { %2839 = vpow2.f32 %v2597_v2 }
0x1a65   :  { %v1852_v60 = vor.u32 1.1754944e-38, %v1851_v55  ;;  %vm1850_vm8 = vcmp.eq.f32.partialorder %v1849_v53, 8.507059e+37 }
0x1a69   :  { %v2838_v10 = vpop.eup %2837 }
0x1a6a   :  { %v1841_v16 = vmul.f32 %v2838_v10, %v1839_v26  ;;  %v2840_v46 = vpop.eup %2839  ;;  %vm1846_vm5 = vweird.f32 %v2838_v10 }
0x1a6b   :  { %v1878_v58 = vadd.f32 1.0, %v2840_v46  ;;  %vm1847_vm7 = vmor %vm1845_vm6, %vm1846_vm5 }
0x1a6c   :  { %v1842_v18 = vsub.f32 1.0, %v1841_v16 }
0x1a6d   :  { %2841 = vrcp.f32 %v1878_v58  ;;  %v1890_v9 = vand.u32 2147483648, %v1878_v58  ;;  %vm1884_vm12 = vweird.f32 %v1878_v58  ;;  %v1888_v33 = vand.u32 2147483647, %v1878_v58 }
0x1a6e   :  { %v1843_v49 = vmul.f32 %v2838_v10, %v1842_v18 }
0x1a6f   :  { %v1891_v14 = vor.u32 1.1754944e-38, %v1890_v9  ;;  %vm1889_vm14 = vcmp.eq.f32.partialorder %v1888_v33, 8.507059e+37 }
0x1a70   :  { %v1844_v52 = vadd.f32 %v2838_v10, %v1843_v49 }
0x1a72   :  { %v1848_v50 = vsel %vm1847_vm7, %v2838_v10, %v1844_v52 }
0x1a73   :  { %v1853_v13 = vsel %vm1850_vm8, %v1852_v60, %v1848_v50  ;;  %v2842_v39 = vpop.eup %2841 }
0x1a74   :  { %v1880_v21 = vmul.f32 %v2842_v39, %v1878_v58  ;;  %vm1885_vm11 = vweird.f32 %v2842_v39  ;;  %v1856_v24 = vmul.f32 %v1853_v13, %v3504_v59 }
0x1a75   :  { %vm1886_vm13 = vmor %vm1884_vm12, %vm1885_vm11 }
0x1a76   :  { %v1881_v5 = vsub.f32 1.0, %v1880_v21 }
0x1a78   :  { %v1882_v23 = vmul.f32 %v2842_v39, %v1881_v5 }
0x1a7a   :  { %v1883_v25 = vadd.f32 %v2842_v39, %v1882_v23 }
0x1a7c   :  { %v1887_v12 = vsel %vm1886_vm13, %v2842_v39, %v1883_v25 }
0x1a7d   :  { %v1892_v22 = vsel %vm1889_vm14, %v1891_v14, %v1887_v12 }
0x1a7e   :  { %v1895_v17 = vmul.f32 %v1892_v22, %v3509_v31 }
0x1ab9   :  { %v1859_v44 = vpop.permute.xlu2 %1858 }
0x1aba   :  { %v1861_v34 = vmul.f32 %v1859_v44, %v1853_v13 }
0x1abc   :  { %1863 = vrot.lane.b32.xlu1 %v1861_v34, %s2969_s0 }
0x1ad2   :  { %v1898_v57 = vpop.permute.xlu0 %1897 }
0x1ad3   :  { %v1900_v32 = vmul.f32 %v1898_v57, %v1892_v22 }
0x1ad5   :  { %1902 = vrot.lane.b32.xlu2 %v1900_v32, %s2969_s0 }
0x1b2e   :  { %v1864_v30 = vpop.permute.xlu1 %1863 }
0x1b2f   :  { %v1903_v29 = vpop.permute.xlu2 %1902  ;;  %v3534_v1 = vadd.f32 %v1864_v30, %v1856_v24 }
0x1b30   :  { %v3536_v43 = vadd.f32 %v1903_v29, %v1895_v17 }
0x1b31   :  { %2843 = vtanh.f32 %v3534_v1 }
0x1b32   :  { %2845 = vtanh.f32 %v3536_v43 }
0x1b37   :  { %v2844_v8 = vpop.eup %2843 }
0x1b38   :  { %v2846_v62 = vpop.eup %2845  ;;  %1869 = vrot.lane.b32.xlu0 %v2844_v8, %s2969_s0 }
0x1b39   :  { %1908 = vrot.lane.b32.xlu1 %v2846_v62, %s2969_s0 }
0x1baa   :  { %v1870_v3 = vpop.permute.xlu0 %1869 }
0x1bab   :  { %v1909_v59 = vpop.permute.xlu1 %1908  ;;  %v1872_v35 = vmul.f32 %v1870_v3, %v1853_v13 }
0x1bac   :  { %v1911_v31 = vmul.f32 %v1909_v59, %v1892_v22 }
0x1bad   :  { %1913 = vrot.lane.b32.xlu2 %v1872_v35, %s2970_s30 }
0x1bae   :  { %1917 = vrot.lane.b32.xlu0 %v1911_v31, %s2971_s4 }
0x1c07   :  { %v1914_v41 = vpop.permute.xlu2 %1913 }
0x1c20   :  { %v1918_v15 = vpop.permute.xlu0 %1917 }
0x1c21   :  { %v1920_v4 = vsel %vm223_vm9, %v1914_v41, %v1918_v15 }
0x1c22   :  { %v1921_v11 = vpack.c.bf16 %v1920_v4, %v1920_v4 }
0x1c24   :  { %2598 = vmatmul.msk.bf16.vlgmr.msrb.gmra.mxu0 %vm315_vm10, %v1921_v11  ;;  %2599 = vmatmul.msk.bf16.vlgmr.msrb.gmra.mxu1 %vm315_vm10, %v1921_v11 }
0x1ca1   :  { %v1934_v19 = vpop.f32.mrf.mxu0  ;;  %v1947_v36 = vpop.f32.mrf.mxu1 }
0x1ca2   :  { %v1952_v37 = vadd.f32 %v1934_v19, %v3378_v27  ;;  %v1991_v42 = vadd.f32 %v1947_v36, %v3370_v63 }
0x1ca4   :  { %2847 = vtanh.f32 %v1952_v37  ;;  %v2601_v56 = vmul.f32 -1.442695, %v1991_v42  ;;  %v2600_v10 = vmul.f32 -1.442695, %v1952_v37 }
0x1ca5   :  { %2849 = vtanh.f32 %v1991_v42 }
0x1ca6   :  { %2851 = vpow2.f32 %v2601_v56 }
0x1ca9   :  { %v1936_v38 = vpop.f32.mrf.mxu0  ;;  %v1949_v54 = vpop.f32.mrf.mxu1 }
0x1caa   :  { %v2848_v47 = vpop.eup %2847 }
0x1cab   :  { %v2850_v45 = vpop.eup %2849  ;;  %1975 = vrot.lane.b32.xlu1 %v2848_v47, %s2969_s0 }
0x1cac   :  { %2014 = vrot.lane.b32.xlu2 %v2850_v45, %s2969_s0  ;;  %v2852_v0 = vpop.eup %2851 }
0x1cad   :  { %v1995_v20 = vadd.f32 1.0, %v2852_v0 }
0x1caf   :  { %2853 = vrcp.f32 %v1995_v20  ;;  %v2007_v46 = vand.u32 2147483648, %v1995_v20  ;;  %vm2001_vm0 = vweird.f32 %v1995_v20  ;;  %v2005_v58 = vand.u32 2147483647, %v1995_v20 }
0x1cb0   :  { %2855 = vpow2.f32 %v2600_v10 }
0x1cb1   :  { %v2008_v55 = vor.u32 1.1754944e-38, %v2007_v46  ;;  %vm2006_vm2 = vcmp.eq.f32.partialorder %v2005_v58, 8.507059e+37 }
0x1cb5   :  { %v2854_v26 = vpop.eup %2853 }
0x1cb6   :  { %v1997_v27 = vmul.f32 %v2854_v26, %v1995_v20  ;;  %v2856_v2 = vpop.eup %2855  ;;  %vm2002_vm15 = vweird.f32 %v2854_v26 }
0x1cb7   :  { %v1956_v18 = vadd.f32 1.0, %v2856_v2  ;;  %vm2003_vm1 = vmor %vm2001_vm0, %vm2002_vm15 }
0x1cb8   :  { %v1998_v63 = vsub.f32 1.0, %v1997_v27 }
0x1cb9   :  { %2857 = vrcp.f32 %v1956_v18  ;;  %v1968_v5 = vand.u32 2147483648, %v1956_v18  ;;  %vm1962_vm4 = vweird.f32 %v1956_v18  ;;  %v1966_v23 = vand.u32 2147483647, %v1956_v18 }
0x1cba   :  { %v1999_v16 = vmul.f32 %v2854_v26, %v1998_v63 }
0x1cbb   :  { %v1969_v9 = vor.u32 1.1754944e-38, %v1968_v5  ;;  %vm1967_vm6 = vcmp.eq.f32.partialorder %v1966_v23, 8.507059e+37 }
0x1cbc   :  { %v2000_v49 = vadd.f32 %v2854_v26, %v1999_v16 }
0x1cbe   :  { %v2004_v52 = vsel %vm2003_vm1, %v2854_v26, %v2000_v49 }
0x1cbf   :  { %v2009_v50 = vsel %vm2006_vm2, %v2008_v55, %v2004_v52  ;;  %v2858_v60 = vpop.eup %2857 }
0x1cc0   :  { %v1958_v13 = vmul.f32 %v2858_v60, %v1956_v18  ;;  %vm1963_vm3 = vweird.f32 %v2858_v60  ;;  %v2012_v57 = vmul.f32 %v2009_v50, %v3536_v43 }
0x1cc1   :  { %vm1964_vm5 = vmor %vm1962_vm4, %vm1963_vm3 }
0x1cc2   :  { %v1959_v34 = vsub.f32 1.0, %v1958_v13 }
0x1cc4   :  { %v1960_v39 = vmul.f32 %v2858_v60, %v1959_v34 }
0x1cc6   :  { %v1961_v21 = vadd.f32 %v2858_v60, %v1960_v39 }
0x1cc8   :  { %v1965_v25 = vsel %vm1964_vm5, %v2858_v60, %v1961_v21 }
0x1cc9   :  { %v1970_v12 = vsel %vm1967_vm6, %v1969_v9, %v1965_v25 }
0x1cca   :  { %v1973_v17 = vmul.f32 %v1970_v12, %v3534_v1 }
0x1d06   :  { %v2015_v53 = vpop.permute.xlu2 %2014 }
0x1d07   :  { %v2017_v44 = vmul.f32 %v2015_v53, %v2009_v50 }
0x1d09   :  { %2019 = vrot.lane.b32.xlu1 %v2017_v44, %s2969_s0 }
0x1d1d   :  { %v1976_v33 = vpop.permute.xlu1 %1975 }
0x1d1e   :  { %v1978_v14 = vmul.f32 %v1976_v33, %v1970_v12 }
0x1d20   :  { %1980 = vrot.lane.b32.xlu0 %v1978_v14, %s2969_s0 }
0x1d7b   :  { %v2020_v22 = vpop.permute.xlu1 %2019 }
0x1d7c   :  { %v3554_v32 = vadd.f32 %v2020_v22, %v2012_v57 }
0x1d7e   :  { %2859 = vtanh.f32 %v3554_v32 }
0x1d84   :  { %v2860_v24 = vpop.eup %2859 }
0x1d85   :  { %2025 = vrot.lane.b32.xlu0 %v2860_v24, %s2969_s0 }
0x1d92   :  { %v1981_v30 = vpop.permute.xlu0 %1980 }
0x1d93   :  { %v3559_v29 = vadd.f32 %v1981_v30, %v1973_v17 }
0x1d95   :  { %2861 = vtanh.f32 %v3559_v29 }
0x1d9b   :  { %v2862_v8 = vpop.eup %2861 }
0x1d9c   :  { %1986 = vrot.lane.b32.xlu2 %v2862_v8, %s2969_s0 }
0x1df6   :  { %v1987_v62 = vpop.permute.xlu2 %1986 }
0x1df7   :  { %v2026_v43 = vpop.permute.xlu0 %2025  ;;  %v1989_v3 = vmul.f32 %v1987_v62, %v1970_v12 }
0x1df8   :  { %v2028_v59 = vmul.f32 %v2026_v43, %v2009_v50 }
0x1df9   :  { %2030 = vrot.lane.b32.xlu1 %v1989_v3, %s2970_s30 }
0x1dfa   :  { %2034 = vrot.lane.b32.xlu2 %v2028_v59, %s2971_s4 }
0x1e54   :  { %v2035_v35 = vpop.permute.xlu2 %2034 }
0x1e6b   :  { %v2031_v31 = vpop.permute.xlu1 %2030 }
0x1e6c   :  { %v2037_v1 = vsel %vm223_vm9, %v2031_v31, %v2035_v35 }
0x1e6d   :  { %v2038_v41 = vpack.c.bf16 %v2037_v1, %v2037_v1 }
0x1e6f   :  { %2602 = vmatmul.msk.bf16.vlgmr.msra.gmra.mxu2 %vm315_vm10, %v2038_v41  ;;  %2603 = vmatmul.msk.bf16.vlgmr.msra.gmra.mxu3 %vm315_vm10, %v2038_v41 }
0x1ef2   :  { %v2051_v15 = vpop.f32.mrf.mxu2  ;;  %v2064_v4 = vpop.f32.mrf.mxu3 }
0x1ef3   :  { %v2069_v11 = vadd.f32 %v2051_v15, %v3383_v61  ;;  %v2108_v19 = vadd.f32 %v2064_v4, %v3365_v48 }
0x1ef5   :  { %2863 = vtanh.f32 %v2069_v11  ;;  %v2604_v54 = vmul.f32 -1.442695, %v2069_v11  ;;  %v2605_v47 = vmul.f32 -1.442695, %v2108_v19 }
0x1ef6   :  { %2865 = vtanh.f32 %v2108_v19 }
0x1ef7   :  { %2867 = vpow2.f32 %v2604_v54 }
0x1ef8   :  { %2869 = vpow2.f32 %v2605_v47 }
0x1efa   :  { %v2053_v36 = vpop.f32.mrf.mxu2  ;;  %v2066_v37 = vpop.f32.mrf.mxu3 }
0x1efb   :  { %v2864_v42 = vpop.eup %2863 }
0x1efc   :  { %v2866_v38 = vpop.eup %2865  ;;  %2092 = vrot.lane.b32.xlu0 %v2864_v42, %s2969_s0 }
0x1efd   :  { %2131 = vrot.lane.b32.xlu1 %v2866_v38, %s2969_s0  ;;  %v2868_v45 = vpop.eup %2867 }
0x1efe   :  { %v2870_v56 = vpop.eup %2869  ;;  %v2073_v0 = vadd.f32 1.0, %v2868_v45 }
0x1eff   :  { %v2112_v61 = vadd.f32 1.0, %v2870_v56 }
0x1f00   :  { %2871 = vrcp.f32 %v2073_v0  ;;  %v2085_v46 = vand.u32 2147483648, %v2073_v0  ;;  %vm2079_vm11 = vweird.f32 %v2073_v0  ;;  %v2083_v52 = vand.u32 2147483647, %v2073_v0 }
0x1f01   :  { %2873 = vrcp.f32 %v2112_v61  ;;  %v2124_v58 = vand.u32 2147483648, %v2112_v61  ;;  %vm2118_vm12 = vweird.f32 %v2112_v61  ;;  %v2122_v55 = vand.u32 2147483647, %v2112_v61 }
0x1f02   :  { %v2086_v60 = vor.u32 1.1754944e-38, %v2085_v46  ;;  %vm2084_vm15 = vcmp.eq.f32.partialorder %v2083_v52, 8.507059e+37 }
0x1f03   :  { %v2125_v44 = vor.u32 1.1754944e-38, %v2124_v58  ;;  %vm2123_vm0 = vcmp.eq.f32.partialorder %v2122_v55, 8.507059e+37 }
0x1f06   :  { %v2872_v48 = vpop.eup %2871 }
0x1f07   :  { %v2874_v20 = vpop.eup %2873  ;;  %v2075_v26 = vmul.f32 %v2872_v48, %v2073_v0  ;;  %vm2080_vm7 = vweird.f32 %v2872_v48 }
0x1f08   :  { %v2114_v10 = vmul.f32 %v2874_v20, %v2112_v61  ;;  %vm2119_vm8 = vweird.f32 %v2874_v20  ;;  %vm2081_vm13 = vmor %vm2079_vm11, %vm2080_vm7 }
0x1f09   :  { %v2076_v27 = vsub.f32 1.0, %v2075_v26  ;;  %vm2120_vm14 = vmor %vm2118_vm12, %vm2119_vm8 }
0x1f0a   :  { %v2115_v63 = vsub.f32 1.0, %v2114_v10 }
0x1f0b   :  { %v2077_v2 = vmul.f32 %v2872_v48, %v2076_v27 }
0x1f0c   :  { %v2116_v16 = vmul.f32 %v2874_v20, %v2115_v63 }
0x1f0d   :  { %v2078_v18 = vadd.f32 %v2872_v48, %v2077_v2 }
0x1f0e   :  { %v2117_v49 = vadd.f32 %v2874_v20, %v2116_v16 }
0x1f0f   :  { %v2082_v53 = vsel %vm2081_vm13, %v2872_v48, %v2078_v18 }
0x1f10   :  { %v2121_v50 = vsel %vm2120_vm14, %v2874_v20, %v2117_v49  ;;  %v2087_v34 = vsel %vm2084_vm15, %v2086_v60, %v2082_v53 }
0x1f11   :  { %v2126_v21 = vsel %vm2123_vm0, %v2125_v44, %v2121_v50  ;;  %v2090_v25 = vmul.f32 %v2087_v34, %v3559_v29 }
0x1f12   :  { %v2129_v14 = vmul.f32 %v2126_v21, %v3554_v32 }
0x1f6e   :  { %v2093_v13 = vpop.permute.xlu0 %2092 }
0x1f6f   :  { %v2132_v39 = vpop.permute.xlu1 %2131  ;;  %v2095_v5 = vmul.f32 %v2093_v13, %v2087_v34 }
0x1f70   :  { %v2134_v23 = vmul.f32 %v2132_v39, %v2126_v21 }
0x1f71   :  { %2097 = vrot.lane.b32.xlu2 %v2095_v5, %s2969_s0 }
0x1f72   :  { %2136 = vrot.lane.b32.xlu0 %v2134_v23, %s2969_s0 }
0x1fcb   :  { %v2098_v9 = vpop.permute.xlu2 %2097 }
0x1fcc   :  { %v3575_v33 = vadd.f32 %v2098_v9, %v2090_v25 }
0x1fce   :  { %2875 = vtanh.f32 %v3575_v33 }
0x1fd4   :  { %v2876_v12 = vpop.eup %2875 }
0x1fd5   :  { %2103 = vrot.lane.b32.xlu1 %v2876_v12, %s2969_s0 }
0x1fe4   :  { %v2137_v57 = vpop.permute.xlu0 %2136 }
0x1fe5   :  { %v3580_v22 = vadd.f32 %v2137_v57, %v2129_v14 }
0x1fe7   :  { %2877 = vtanh.f32 %v3580_v22 }
0x1fed   :  { %v2878_v24 = vpop.eup %2877 }
0x1fee   :  { %2142 = vrot.lane.b32.xlu2 %v2878_v24, %s2969_s0 }
0x2047   :  { %v2104_v17 = vpop.permute.xlu1 %2103 }
0x2048   :  { %v2143_v30 = vpop.permute.xlu2 %2142  ;;  %v2106_v29 = vmul.f32 %v2104_v17, %v2087_v34 }
0x2049   :  { %v2145_v8 = vmul.f32 %v2143_v30, %v2126_v21  ;;  %v1302_v30 = vadd.f32 %v3462_v6, %v3464_v7 }
0x204a   :  { %2147 = vrot.lane.b32.xlu0 %v2106_v29, %s2970_s30  ;;  %v2913_v29 = vld [vmem:[%s3632_s2 + $0x2] ss:$0 sm:$0xff]  ;;  %s2972_s2 = smov [#allocation7]  }
0x204b   :  { %2151 = vrot.lane.b32.xlu1 %v2145_v8, %s2971_s4  ;;  %v1316_v8 = vadd.f32 %v2913_v29, %v1302_v30  ;;  %s2396_s15 = sshll.u32 %s2972_s2, 4  ;;  %s2397_s15 = int_to_ptr.vmem [resolvable:$true] %s2396_s15 }
0x20bc   :  { %v2148_v62 = vpop.permute.xlu0 %2147 }
0x20bd   :  { %v2152_v43 = vpop.permute.xlu1 %2151 }
0x20be   :  { %v2154_v32 = vsel %vm223_vm9, %v2148_v62, %v2152_v43 }
0x20bf   :  { %v2155_v3 = vpack.c.bf16 %v2154_v32, %v2154_v32 }
0x20c1   :  { %2606 = vmatmul.msk.bf16.vlgmr.msra.gmra.mxu0 %vm315_vm10, %v2155_v3  ;;  %2607 = vmatmul.msk.bf16.vlgmr.msra.gmra.mxu1 %vm315_vm10, %v2155_v3 }
0x213e   :  { %v2168_v59 = vpop.f32.mrf.mxu0  ;;  %v2181_v35 = vpop.f32.mrf.mxu1 }
0x213f   :  { %v2186_v31 = vadd.f32 %v2168_v59, %v3388_v40  ;;  %v2225_v1 = vadd.f32 %v2181_v35, %v3360_v28 }
0x2141   :  { %2879 = vtanh.f32 %v2186_v31  ;;  %v2608_v19 = vmul.f32 -1.442695, %v2186_v31  ;;  %v2609_v38 = vmul.f32 -1.442695, %v2225_v1 }
0x2142   :  { %2881 = vtanh.f32 %v2225_v1 }
0x2143   :  { %2883 = vpow2.f32 %v2608_v19 }
0x2146   :  { %v2170_v41 = vpop.f32.mrf.mxu0  ;;  %v2183_v15 = vpop.f32.mrf.mxu1 }
0x2147   :  { %v2880_v4 = vpop.eup %2879 }
0x2148   :  { %v2882_v11 = vpop.eup %2881  ;;  %2209 = vrot.lane.b32.xlu2 %v2880_v4, %s2969_s0 }
0x2149   :  { %2248 = vrot.lane.b32.xlu0 %v2882_v11, %s2969_s0  ;;  %v2884_v36 = vpop.eup %2883 }
0x214a   :  { %v2190_v37 = vadd.f32 1.0, %v2884_v36 }
0x214c   :  { %2885 = vrcp.f32 %v2190_v37  ;;  %v2202_v0 = vand.u32 2147483648, %v2190_v37  ;;  %vm2196_vm2 = vweird.f32 %v2190_v37  ;;  %v2200_v61 = vand.u32 2147483647, %v2190_v37 }
0x214d   :  { %2887 = vpow2.f32 %v2609_v38 }
0x214e   :  { %v2203_v20 = vor.u32 1.1754944e-38, %v2202_v0  ;;  %vm2201_vm4 = vcmp.eq.f32.partialorder %v2200_v61, 8.507059e+37 }
0x2152   :  { %v2886_v42 = vpop.eup %2885 }
0x2153   :  { %v2192_v40 = vmul.f32 %v2886_v42, %v2190_v37  ;;  %v2888_v47 = vpop.eup %2887  ;;  %vm2197_vm1 = vweird.f32 %v2886_v42 }
0x2154   :  { %v2229_v45 = vadd.f32 1.0, %v2888_v47  ;;  %vm2198_vm3 = vmor %vm2196_vm2, %vm2197_vm1  ;;  %vm2389_vm2 = vcmask 523520  }
0x2155   :  { %v2193_v28 = vsub.f32 1.0, %v2192_v40 }
0x2156   :  { %2889 = vrcp.f32 %v2229_v45  ;;  %v2241_v46 = vand.u32 2147483648, %v2229_v45  ;;  %vm2235_vm6 = vweird.f32 %v2229_v45  ;;  %v2239_v58 = vand.u32 2147483647, %v2229_v45 }
0x2157   :  { %v2194_v54 = vmul.f32 %v2886_v42, %v2193_v28 }
0x2158   :  { %v2242_v55 = vor.u32 1.1754944e-38, %v2241_v46  ;;  %vm2240_vm8 = vcmp.eq.f32.partialorder %v2239_v58, 8.507059e+37 }
0x2159   :  { %v2195_v56 = vadd.f32 %v2886_v42, %v2194_v54 }
0x215b   :  { %v2199_v48 = vsel %vm2198_vm3, %v2886_v42, %v2195_v56 }
0x215c   :  { %v2204_v10 = vsel %vm2201_vm4, %v2203_v20, %v2199_v48  ;;  %v2890_v63 = vpop.eup %2889 }
0x215d   :  { %v2231_v2 = vmul.f32 %v2890_v63, %v2229_v45  ;;  %vm2236_vm5 = vweird.f32 %v2890_v63  ;;  %v2207_v44 = vmul.f32 %v2204_v10, %v3575_v33 }
0x215e   :  { %vm2237_vm7 = vmor %vm2235_vm6, %vm2236_vm5 }
0x215f   :  { %v2232_v16 = vsub.f32 1.0, %v2231_v2 }
0x2161   :  { %v2233_v18 = vmul.f32 %v2890_v63, %v2232_v16 }
0x2163   :  { %v2234_v49 = vadd.f32 %v2890_v63, %v2233_v18 }
0x2165   :  { %v2238_v52 = vsel %vm2237_vm7, %v2890_v63, %v2234_v49 }
0x2166   :  { %v2243_v50 = vsel %vm2240_vm8, %v2242_v55, %v2238_v52 }
0x2167   :  { %v2246_v13 = vmul.f32 %v2243_v50, %v3580_v22 }
0x21a2   :  { %v2210_v26 = vpop.permute.xlu2 %2209 }
0x21a3   :  { %v2212_v27 = vmul.f32 %v2210_v26, %v2204_v10 }
0x21a5   :  { %2214 = vrot.lane.b32.xlu1 %v2212_v27, %s2969_s0 }
0x21bb   :  { %v2249_v53 = vpop.permute.xlu0 %2248 }
0x21bc   :  { %v2251_v60 = vmul.f32 %v2249_v53, %v2243_v50 }
0x21be   :  { %2253 = vrot.lane.b32.xlu2 %v2251_v60, %s2969_s0 }
0x2217   :  { %v2215_v34 = vpop.permute.xlu1 %2214 }
0x2218   :  { %v2254_v39 = vpop.permute.xlu2 %2253  ;;  %v3597_v21 = vadd.f32 %v2215_v34, %v2207_v44 }
0x2219   :  { %v3599_v5 = vadd.f32 %v2254_v39, %v2246_v13 }
0x221a   :  { %2891 = vtanh.f32 %v3597_v21 }
0x221b   :  { %2893 = vtanh.f32 %v3599_v5 }
0x2220   :  { %v2892_v23 = vpop.eup %2891 }
0x2221   :  { %v2894_v25 = vpop.eup %2893  ;;  %2220 = vrot.lane.b32.xlu0 %v2892_v23, %s2969_s0 }
0x2222   :  { %2259 = vrot.lane.b32.xlu1 %v2894_v25, %s2969_s0 }
0x2293   :  { %v2221_v9 = vpop.permute.xlu0 %2220 }
0x2294   :  { %v2260_v33 = vpop.permute.xlu1 %2259  ;;  %v2223_v12 = vmul.f32 %v2221_v9, %v2204_v10 }
0x2295   :  { %v2262_v14 = vmul.f32 %v2260_v33, %v2243_v50 }
0x2296   :  { %2264 = vrot.lane.b32.xlu2 %v2223_v12, %s2970_s30 }
0x2297   :  { %2268 = vrot.lane.b32.xlu0 %v2262_v14, %s2971_s4 }
0x22f0   :  { %v2265_v57 = vpop.permute.xlu2 %2264 }
0x2309   :  { %v2269_v22 = vpop.permute.xlu0 %2268 }
0x230a   :  { %v2271_v24 = vsel %vm223_vm9, %v2265_v57, %v2269_v22 }
0x230b   :  { %v2272_v17 = vpack.c.bf16 %v2271_v24, %v2271_v24 }
0x230d   :  { %2610 = vmatmul.msk.bf16.vlgmr.msrb.gmra.mxu2 %vm315_vm10, %v2272_v17  ;;  %2611 = vmatmul.msk.bf16.vlgmr.msrb.gmra.mxu3 %vm315_vm10, %v2272_v17 }
0x2390   :  { %v2285_v62 = vpop.f32.mrf.mxu2  ;;  %v2298_v43 = vpop.f32.mrf.mxu3 }
0x2391   :  { %v2303_v32 = vadd.f32 %v2285_v62, %v1316_v8  ;;  %v2342_v3 = vadd.f32 %v2298_v43, %v3350_v51 }
0x2393   :  { %2895 = vtanh.f32 %v2303_v32  ;;  %v2613_v6 = vmul.f32 -1.442695, %v2342_v3  ;;  %v2612_v4 = vmul.f32 -1.442695, %v2303_v32 }
0x2394   :  { %2897 = vtanh.f32 %v2342_v3 }
0x2395   :  { %2899 = vpow2.f32 %v2613_v6 }
0x2398   :  { %v2287_v59 = vpop.f32.mrf.mxu2  ;;  %v2300_v35 = vpop.f32.mrf.mxu3 }
0x2399   :  { %v2896_v31 = vpop.eup %2895 }
0x239a   :  { %v2898_v1 = vpop.eup %2897  ;;  %2326 = vrot.lane.b32.xlu1 %v2896_v31, %s2969_s0 }
0x239b   :  { %2365 = vrot.lane.b32.xlu2 %v2898_v1, %s2969_s0  ;;  %v2900_v7 = vpop.eup %2899 }
0x239c   :  { %v2346_v41 = vadd.f32 1.0, %v2900_v7 }
0x239e   :  { %2901 = vrcp.f32 %v2346_v41  ;;  %v2358_v38 = vand.u32 2147483648, %v2346_v41  ;;  %vm2352_vm11 = vweird.f32 %v2346_v41  ;;  %v2356_v40 = vand.u32 2147483647, %v2346_v41 }
0x239f   :  { %2903 = vpow2.f32 %v2612_v4 }
0x23a0   :  { %v2359_v54 = vor.u32 1.1754944e-38, %v2358_v38  ;;  %vm2357_vm13 = vcmp.eq.f32.partialorder %v2356_v40, 8.507059e+37 }
0x23a4   :  { %v2902_v15 = vpop.eup %2901 }
0x23a5   :  { %v2348_v11 = vmul.f32 %v2902_v15, %v2346_v41  ;;  %v2904_v19 = vpop.eup %2903  ;;  %vm2353_vm10 = vweird.f32 %v2902_v15 }
0x23a6   :  { %v2307_v37 = vadd.f32 1.0, %v2904_v19  ;;  %vm2354_vm12 = vmor %vm2352_vm11, %vm2353_vm10 }
0x23a7   :  { %v2349_v51 = vsub.f32 1.0, %v2348_v11 }
0x23a8   :  { %2905 = vrcp.f32 %v2307_v37  ;;  %v2319_v10 = vand.u32 2147483648, %v2307_v37  ;;  %vm2313_vm15 = vweird.f32 %v2307_v37  ;;  %v2317_v27 = vand.u32 2147483647, %v2307_v37 }
0x23a9   :  { %v2350_v36 = vmul.f32 %v2902_v15, %v2349_v51 }
0x23aa   :  { %v2320_v2 = vor.u32 1.1754944e-38, %v2319_v10  ;;  %vm2318_vm1 = vcmp.eq.f32.partialorder %v2317_v27, 8.507059e+37 }
0x23ab   :  { %v2351_v42 = vadd.f32 %v2902_v15, %v2350_v36 }
0x23ad   :  { %v2355_v28 = vsel %vm2354_vm12, %v2902_v15, %v2351_v42 }
0x23ae   :  { %v2360_v45 = vsel %vm2357_vm13, %v2359_v54, %v2355_v28  ;;  %v2906_v56 = vpop.eup %2905 }
0x23af   :  { %v2309_v61 = vmul.f32 %v2906_v56, %v2307_v37  ;;  %vm2314_vm14 = vweird.f32 %v2906_v56  ;;  %v2363_v46 = vmul.f32 %v2360_v45, %v3599_v5 }
0x23b0   :  { %vm2315_vm0 = vmor %vm2313_vm15, %vm2314_vm14 }
0x23b1   :  { %v2310_v48 = vsub.f32 1.0, %v2309_v61 }
0x23b3   :  { %v2311_v20 = vmul.f32 %v2906_v56, %v2310_v48 }
0x23b5   :  { %v2312_v26 = vadd.f32 %v2906_v56, %v2311_v20 }
0x23b7   :  { %v2316_v63 = vsel %vm2315_vm0, %v2906_v56, %v2312_v26 }
0x23b8   :  { %v2321_v18 = vsel %vm2318_vm1, %v2320_v2, %v2316_v63 }
0x23b9   :  { %v2324_v53 = vmul.f32 %v2321_v18, %v3597_v21 }
0x23f5   :  { %v2366_v47 = vpop.permute.xlu2 %2365 }
0x23f6   :  { %v2368_v0 = vmul.f32 %v2366_v47, %v2360_v45 }
0x23f8   :  { %2370 = vrot.lane.b32.xlu1 %v2368_v0, %s2969_s0 }
0x240c   :  { %v2327_v16 = vpop.permute.xlu1 %2326 }
0x240d   :  { %v2329_v49 = vmul.f32 %v2327_v16, %v2321_v18 }
0x240f   :  { %2331 = vrot.lane.b32.xlu0 %v2329_v49, %s2969_s0 }
0x246a   :  { %v2371_v58 = vpop.permute.xlu1 %2370 }
0x246b   :  { %v2373_v52 = vadd.f32 %v2371_v58, %v2363_v46 }
0x246d   :  { %2907 = vtanh.f32 %v2373_v52 }
0x2473   :  { %v2908_v55 = vpop.eup %2907 }
0x2474   :  { %2376 = vrot.lane.b32.xlu0 %v2908_v55, %s2969_s0 }
0x2481   :  { %v2332_v50 = vpop.permute.xlu0 %2331 }
0x2482   :  { %v2334_v60 = vadd.f32 %v2332_v50, %v2324_v53 }
0x2484   :  { %2909 = vtanh.f32 %v2334_v60 }
0x248a   :  { %v2910_v44 = vpop.eup %2909 }
0x248b   :  { %2337 = vrot.lane.b32.xlu2 %v2910_v44, %s2969_s0 }
0x24e5   :  { %v2338_v13 = vpop.permute.xlu2 %2337 }
0x24e6   :  { %v2377_v34 = vpop.permute.xlu0 %2376  ;;  %v2340_v39 = vmul.f32 %v2338_v13, %v2321_v18 }
0x24e7   :  { %v2379_v23 = vmul.f32 %v2377_v34, %v2360_v45 }
0x24e8   :  { %2381 = vrot.lane.b32.xlu1 %v2340_v39, %s2970_s30 }
0x24e9   :  { %2386 = vrot.lane.b32.xlu2 %v2379_v23, %s2971_s4 }
0x2543   :  { %v2387_v5 = vpop.permute.xlu2 %2386 }
0x255a   :  { %v2382_v21 = vpop.permute.xlu1 %2381 }
0x255b   :  { %2384 = vst.msk [vmem:[#allocation7] sm:$0xff] %vm223_vm9, %v2382_v21 }
0x255c   :  { %2390 = vst.msk [vmem:[#allocation7] sm:$0xff] %vm2389_vm2, %v2387_v5 }
0x255d   :  { %2401 = dma.vmem_to_hbm [thread:$0]  %s2397_s15, 128, %s2399_s18, [#allocation6]  }
0x255e   :  { %2964 = dma.done.wait [#allocation6], 128  }
0x255f   :  { %2965 = vsyncadd [#allocation6], 4294967168 }
0x2560   :  { %2406 = vsyncpa [#allocation5], 1 }
0x2561   :  { %2407 = vsyncpa [#allocation6], 1 }

</bundles_post_ra>
